<compile_context>
chip_gen: v6e
topology: v6e:2x2x1
jax: 0.10.0
libtpu: 0.0.40
codegen_flags: <defaults>
</compile_context>

<pallas_src>
import jax
import jax.numpy as jnp
from jax.experimental import pallas as pl
from jax.experimental.pallas import tpu as pltpu

# Small synthetic stand-in for TRAINING_WINDOW_BINS (=150 in the original file).
SEQUENCE_LENGTH = 16
B_TILE = 8  # batch sublane tile (one grid step per B_TILE rows)


def _round_up(x, m):
    return ((x + m - 1) // m) * m


# ----------------------------- fused Pallas kernel --------------------------

def _make_fused_kernel(num_layers, T, P_in, P_h, Cp):
    """Fused (RNN stack + Linear) kernel for static sizes.

    Refs (per batch tile):
      x_ref:     (T, B_TILE, P_in)  f32, zero-padded, time-major input
      wih0_ref:  (P_in, P_h)        bf16, layer-0 W_ih^T (padded)
      wihr_ref:  (max(L-1,1), P_h, P_h) bf16, W_ih^T for layers 1..L-1
      whh_ref:   (L, P_h, P_h)      bf16, W_hh^T per layer
      b_ref:     (L, 1, P_h)        f32, combined (b_ih + b_hh) per layer
      wout_hbm:  (T, P_h, Cp)       bf16, classifier weight chunks, in HBM
      bout_ref:  (1, Cp)            f32, classifier bias
      out_ref:   (B_TILE, Cp)       f32, padded logits
      pre0_ref:  (T*B_TILE, P_h)    f32 scratch, hoisted layer-0 projection
      wout_vmem: (T, P_h, Cp)       bf16 scratch, staged classifier weight
      wout_sem:  DMA semaphore
    """
    L = num_layers

    def kernel(x_ref, wih0_ref, wihr_ref, whh_ref, b_ref, wout_hbm, bout_ref,
               out_ref, pre0_ref, wout_vmem, wout_sem):
        # Start the classifier-weight copy; it is hidden under the hoisted
        # projection and the first recurrence wave.
        wout_cp = pltpu.make_async_copy(wout_hbm, wout_vmem, wout_sem)
        wout_cp.start()

        # Hoisted layer-0 input projection: one MXU call covers all T steps.
        x2d = x_ref[...].reshape(T * B_TILE, P_in).astype(jnp.bfloat16)
        pre0_ref[...] = (
            jnp.dot(x2d, wih0_ref[...], preferred_element_type=jnp.float32)
            + b_ref[0])

        # Wavefront over (layer, time): wave w runs layer l at step t = w - l.
        # Every value consumed at wave w was produced at wave w-1, so the L
        # active steps of a wave are independent; chain length = T + L - 1.
        h = [jnp.zeros((B_TILE, P_h), jnp.float32) for _ in range(L)]
        acc = jnp.zeros((B_TILE, Cp), jnp.float32)
        waited = False

        for w in range(T + L - 1):
            h_new = list(h)
            for l in range(L):
                t = w - l
                if not (0 <= t < T):
                    continue
                if l == 0:
                    pre = pre0_ref[t * B_TILE:(t + 1) * B_TILE, :]
                else:
                    pre = (jnp.dot(h[l - 1].astype(jnp.bfloat16),
                                   wihr_ref[l - 1],
                                   preferred_element_type=jnp.float32)
                           + b_ref[l])
                hv = jnp.tanh(
                    pre + jnp.dot(h[l].astype(jnp.bfloat16), whh_ref[l],
                                  preferred_element_type=jnp.float32))
                h_new[l] = hv
                if l == L - 1:
                    # Fused per-step classifier accumulation (off the serial
                    # recurrence chain; overlaps with the next wave's matmuls).
                    if not waited:
                        wout_cp.wait()
                        waited = True
                    acc = acc + jnp.dot(hv.astype(jnp.bfloat16), wout_vmem[t],
                                        preferred_element_type=jnp.float32)
            h = h_new

        out_ref[...] = acc + bout_ref[...]

    return kernel


# ------------------------------ host-side model ------------------------------

class RNNClassifierPallas:
    """Pallas implementation of RNNClassifier (rnn_type='rnn')."""

    def __init__(self, num_features, num_classes, hidden_size, num_layers, key,
                 seq_len=SEQUENCE_LENGTH):
        self.num_features = num_features
        self.num_classes = num_classes
        self.hidden_size = hidden_size
        self.num_layers = num_layers
        self.seq_len = seq_len

        H, F, C, T = hidden_size, num_features, num_classes, seq_len

        # ---- raw parameters (torch.nn.RNN / Linear init), kept for reference
        bound = 1.0 / (H ** 0.5)
        self.layers = []
        for l in range(num_layers):
            in_dim = F if l == 0 else H
            key, k1, k2, k3, k4 = jax.random.split(key, 5)
            w_ih = jax.random.uniform(k1, (H, in_dim), jnp.float32, -bound, bound)
            w_hh = jax.random.uniform(k2, (H, H), jnp.float32, -bound, bound)
            b_ih = jax.random.uniform(k3, (H,), jnp.float32, -bound, bound)
            b_hh = jax.random.uniform(k4, (H,), jnp.float32, -bound, bound)
            self.layers.append((w_ih, w_hh, b_ih, b_hh))

        fan_in = H * T
        lb = 1.0 / (fan_in ** 0.5)
        key, k1, k2 = jax.random.split(key, 3)
        self.w_out = jax.random.uniform(k1, (C, fan_in), jnp.float32, -lb, lb)
        self.b_out = jax.random.uniform(k2, (C,), jnp.float32, -lb, lb)

        # ---- padded / transposed / bf16 MXU operands, prepared once.
        P_in = _round_up(F, 128)   # input-feature lane padding (layer-0 only)
        P_h = _round_up(H, 128)    # hidden lane padding
        Cp = _round_up(C, 128)     # class lane padding
        self.P_in, self.P_h, self.Cp = P_in, P_h, Cp

        wih0 = jnp.zeros((P_in, P_h), jnp.float32).at[:F, :H].set(
            self.layers[0][0].T)
        self.wih0_bf = wih0.astype(jnp.bfloat16)

        n_rest = max(num_layers - 1, 1)
        wihr = jnp.zeros((n_rest, P_h, P_h), jnp.float32)
        whh = jnp.zeros((num_layers, P_h, P_h), jnp.float32)
        b_all = jnp.zeros((num_layers, 1, P_h), jnp.float32)
        for l, (w_ih, w_hh, b_ih, b_hh) in enumerate(self.layers):
            if l > 0:
                wihr = wihr.at[l - 1, :H, :H].set(w_ih.T)
            whh = whh.at[l, :H, :H].set(w_hh.T)
            b_all = b_all.at[l, 0, :H].set(b_ih + b_hh)
        self.wihr_bf = wihr.astype(jnp.bfloat16)
        self.whh_bf = whh.astype(jnp.bfloat16)
        self.b_all = b_all                               # f32 (adds stay f32)

        # Classifier weight chunked per timestep in the padded layout:
        # chunk t, row h, col c  <->  torch W_out[c, t*H + h]
        w_out_thc = jnp.transpose(self.w_out.reshape(C, T, H), (1, 2, 0))  # (T,H,C)
        wout = jnp.zeros((T, P_h, Cp), jnp.float32).at[:, :H, :C].set(w_out_thc)
        self.wout_bf = wout.astype(jnp.bfloat16)
        self.bout_p = jnp.zeros((1, Cp), jnp.float32).at[0, :C].set(self.b_out)

    def __call__(self, inp):
        # inp: (B, T, F), batch_first like the PyTorch module.
        B, T, F = inp.shape
        assert T == self.seq_len and F == self.num_features
        P_in, P_h, Cp = self.P_in, self.P_h, self.Cp
        Bp = _round_up(max(B, 1), B_TILE)

        # time-major, zero-padded to (T, Bp, P_in).
        # TODO(synk): at production T pass F (unpadded) lanes and pad in-kernel
        # to avoid the lane-padded HBM round trip of x.
        x_tm = jnp.transpose(inp.astype(jnp.float32), (1, 0, 2))      # (T, B, F)
        x_pad = jnp.zeros((T, Bp, P_in), jnp.float32).at[:, :B, :F].set(x_tm)

        n_rest = self.wihr_bf.shape[0]
        kernel = _make_fused_kernel(self.num_layers, T, P_in, P_h, Cp)

        out_pad = pl.pallas_call(
            kernel,
            out_shape=jax.ShapeDtypeStruct((Bp, Cp), jnp.float32),
            grid_spec=pltpu.PrefetchScalarGridSpec(
                num_scalar_prefetch=0,
                grid=(Bp // B_TILE,),
                in_specs=[
                    pl.BlockSpec((T, B_TILE, P_in), lambda i: (0, i, 0)),
                    pl.BlockSpec((P_in, P_h), lambda i: (0, 0)),
                    pl.BlockSpec((n_rest, P_h, P_h), lambda i: (0, 0, 0)),
                    pl.BlockSpec((self.num_layers, P_h, P_h),
                                 lambda i: (0, 0, 0)),
                    pl.BlockSpec((self.num_layers, 1, P_h),
                                 lambda i: (0, 0, 0)),
                    pl.BlockSpec(memory_space=pl.ANY),   # wout stays in HBM
                    pl.BlockSpec((1, Cp), lambda i: (0, 0)),
                ],
                out_specs=pl.BlockSpec((B_TILE, Cp), lambda i: (i, 0)),
                scratch_shapes=[
                    pltpu.VMEM((T * B_TILE, P_h), jnp.float32),  # pre0
                    pltpu.VMEM((T, P_h, Cp), jnp.bfloat16),      # wout staging
                    pltpu.SemaphoreType.DMA,
                ],
            ),
            compiler_params=pltpu.CompilerParams(
                dimension_semantics=("parallel",)),
        )(x_pad, self.wih0_bf, self.wihr_bf, self.whh_bf, self.b_all,
          self.wout_bf, self.bout_p)

        return out_pad[:B, :self.num_classes]

    # pure-f32 JAX reference (same math as the torch module, no Pallas/padding)
    def reference(self, inp):
        B, T, _ = inp.shape
        x = inp.astype(jnp.float32)
        for (w_ih, w_hh, b_ih, b_hh) in self.layers:
            h = jnp.zeros((B, self.hidden_size), jnp.float32)
            outs = []
            for t in range(T):
                h = jnp.tanh(x[:, t, :] @ w_ih.T + b_ih + h @ w_hh.T + b_hh)
                outs.append(h)
            x = jnp.stack(outs, axis=1)                          # (B, T, H)
        flat = x.reshape(B, self.hidden_size * T)
        return flat @ self.w_out.T + self.b_out


if __name__ == "__main__":
    key = jax.random.PRNGKey(0)
    kp, kx = jax.random.split(key)

    batch = 2
    num_features = 8
    num_classes = 4
    hidden_size = 32
    num_layers = 2

    model = RNNClassifierPallas(num_features, num_classes, hidden_size,
                                num_layers, kp)

    inp = jax.random.normal(kx, (batch, SEQUENCE_LENGTH, num_features),
                            dtype=jnp.float32)

    out = jax.block_until_ready(model(inp))
    ref = model.reference(inp)

    assert out.shape == (batch, num_classes)
    # bf16 MXU operands (perf-review item) => loosened tolerance vs the f32
    # reference; still tight enough to catch any layout / indexing bug.
    assert jnp.allclose(out, ref, rtol=3e-2, atol=3e-2), "mismatch vs reference"

    print("KERNEL_OK")
</pallas_src>

<mosaic_0001>
module attributes {stable_mosaic.version = 11 : i64} {
  func.func @kernel(%arg0: i32, %arg1: memref<16x8x128xf32, #tpu.memory_space<vmem>>, %arg2: memref<128x128xbf16, #tpu.memory_space<vmem>>, %arg3: memref<1x128x128xbf16, #tpu.memory_space<vmem>>, %arg4: memref<2x128x128xbf16, #tpu.memory_space<vmem>>, %arg5: memref<2x1x128xf32, #tpu.memory_space<vmem>>, %arg6: memref<16x128x128xbf16, #tpu.memory_space<any>>, %arg7: memref<1x128xf32, #tpu.memory_space<vmem>>, %arg8: memref<8x128xf32, #tpu.memory_space<vmem>>, %arg9: memref<128x128xf32, #tpu.memory_space<vmem>>, %arg10: memref<16x128x128xbf16, #tpu.memory_space<vmem>>, %arg11: memref<!tpu.dma_semaphore, #tpu.memory_space<semaphore_mem>>) attributes {dimension_semantics = [#tpu.dimension_semantics<parallel>], iteration_bounds = array<i64: 1>, scalar_prefetch = 0 : i64, scratch_operands = 3 : i64, tpu.core_type = #tpu.core_type<tc>, window_params = [{transform_indices = @transform_0, window_bounds = array<i64: 16, 8, 128>}, {pipeline_mode = #tpu.pipeline_mode<synchronous>, transform_indices = @transform_1, window_bounds = array<i64: 128, 128>}, {pipeline_mode = #tpu.pipeline_mode<synchronous>, transform_indices = @transform_2, window_bounds = array<i64: 1, 128, 128>}, {pipeline_mode = #tpu.pipeline_mode<synchronous>, transform_indices = @transform_3, window_bounds = array<i64: 2, 128, 128>}, {pipeline_mode = #tpu.pipeline_mode<synchronous>, transform_indices = @transform_4, window_bounds = array<i64: 2, 1, 128>}, {}, {pipeline_mode = #tpu.pipeline_mode<synchronous>, transform_indices = @transform_6, window_bounds = array<i64: 1, 128>}, {transform_indices = @transform_7, window_bounds = array<i64: 8, 128>}]} {
    tpu.enqueue_dma source(%arg6 : memref<16x128x128xbf16, #tpu.memory_space<any>>) target(%arg10 : memref<16x128x128xbf16, #tpu.memory_space<vmem>>) target_semaphore(%arg11 : memref<!tpu.dma_semaphore, #tpu.memory_space<semaphore_mem>>)
    %c0 = arith.constant 0 : index
    %c0_0 = arith.constant 0 : index
    %c0_1 = arith.constant 0 : index
    %0 = vector.load %arg1[%c0, %c0_0, %c0_1] : memref<16x8x128xf32, #tpu.memory_space<vmem>>, vector<16x8x128xf32>
    %1 = vector.shape_cast %0 : vector<16x8x128xf32> to vector<128x128xf32>
    %2 = arith.truncf %1 : vector<128x128xf32> to vector<128x128xbf16>
    %c0_2 = arith.constant 0 : index
    %c0_3 = arith.constant 0 : index
    %3 = vector.load %arg2[%c0_2, %c0_3] : memref<128x128xbf16, #tpu.memory_space<vmem>>, vector<128x128xbf16>
    %cst = arith.constant dense<0.000000e+00> : vector<128x128xf32>
    %4 = tpu.matmul %2, %3, %cst {dimension_numbers = #tpu.dot_dimension_numbers<[1], [0], [0], [1], [0, 0, 1, 1], [], []>} : vector<128x128xbf16>, vector<128x128xbf16>, vector<128x128xf32> -> vector<128x128xf32>
    %c0_4 = arith.constant 0 : index
    %c0_5 = arith.constant 0 : index
    %c0_6 = arith.constant 0 : index
    %5 = vector.load %arg5[%c0_4, %c0_5, %c0_6] : memref<2x1x128xf32, #tpu.memory_space<vmem>>, vector<1x1x128xf32>
    %6 = vector.shape_cast %5 : vector<1x1x128xf32> to vector<1x128xf32>
    %7 = vector.broadcast %6 : vector<1x128xf32> to vector<128x128xf32>
    %8 = arith.addf %4, %7 : vector<128x128xf32>
    %c0_7 = arith.constant 0 : index
    %c0_8 = arith.constant 0 : index
    %9 = vector.load %arg9[%c0_7, %c0_8] : memref<128x128xf32, #tpu.memory_space<vmem>>, vector<128x128xf32>
    tpu.vector_store %arg9[%c0_7, %c0_8], %8 {strides = array<i32>} : memref<128x128xf32, #tpu.memory_space<vmem>>, vector<128x128xf32>,
    %cst_9 = arith.constant 0.000000e+00 : f32
    %10 = vector.broadcast %cst_9 : f32 to vector<8x128xf32>
    %cst_10 = arith.constant 0.000000e+00 : f32
    %11 = vector.broadcast %cst_10 : f32 to vector<8x128xf32>
    %cst_11 = arith.constant 0.000000e+00 : f32
    %12 = vector.broadcast %cst_11 : f32 to vector<8x128xf32>
    %c0_12 = arith.constant 0 : index
    %c0_13 = arith.constant 0 : index
    %13 = vector.load %arg9[%c0_12, %c0_13] : memref<128x128xf32, #tpu.memory_space<vmem>>, vector<8x128xf32>
    %14 = arith.truncf %10 : vector<8x128xf32> to vector<8x128xbf16>
    %c0_14 = arith.constant 0 : index
    %c0_15 = arith.constant 0 : index
    %c0_16 = arith.constant 0 : index
    %15 = vector.load %arg4[%c0_14, %c0_15, %c0_16] : memref<2x128x128xbf16, #tpu.memory_space<vmem>>, vector<1x128x128xbf16>
    %16 = vector.shape_cast %15 : vector<1x128x128xbf16> to vector<128x128xbf16>
    %cst_17 = arith.constant dense<0.000000e+00> : vector<8x128xf32>
    %17 = tpu.matmul %14, %16, %cst_17 {dimension_numbers = #tpu.dot_dimension_numbers<[1], [0], [0], [1], [0, 0, 1, 1], [], []>} : vector<8x128xbf16>, vector<128x128xbf16>, vector<8x128xf32> -> vector<8x128xf32>
    %18 = arith.addf %13, %17 : vector<8x128xf32>
    %19 = math.tanh %18 : vector<8x128xf32>
    %c8 = arith.constant 8 : index
    %c0_18 = arith.constant 0 : index
    %20 = vector.load %arg9[%c8, %c0_18] : memref<128x128xf32, #tpu.memory_space<vmem>>, vector<8x128xf32>
    %21 = arith.truncf %19 : vector<8x128xf32> to vector<8x128xbf16>
    %c0_19 = arith.constant 0 : index
    %c0_20 = arith.constant 0 : index
    %c0_21 = arith.constant 0 : index
    %22 = vector.load %arg4[%c0_19, %c0_20, %c0_21] : memref<2x128x128xbf16, #tpu.memory_space<vmem>>, vector<1x128x128xbf16>
    %23 = vector.shape_cast %22 : vector<1x128x128xbf16> to vector<128x128xbf16>
    %cst_22 = arith.constant dense<0.000000e+00> : vector<8x128xf32>
    %24 = tpu.matmul %21, %23, %cst_22 {dimension_numbers = #tpu.dot_dimension_numbers<[1], [0], [0], [1], [0, 0, 1, 1], [], []>} : vector<8x128xbf16>, vector<128x128xbf16>, vector<8x128xf32> -> vector<8x128xf32>
    %25 = arith.addf %20, %24 : vector<8x128xf32>
    %26 = math.tanh %25 : vector<8x128xf32>
    %27 = arith.truncf %19 : vector<8x128xf32> to vector<8x128xbf16>
    %c0_23 = arith.constant 0 : index
    %c0_24 = arith.constant 0 : index
    %c0_25 = arith.constant 0 : index
    %28 = vector.load %arg3[%c0_23, %c0_24, %c0_25] : memref<1x128x128xbf16, #tpu.memory_space<vmem>>, vector<1x128x128xbf16>
    %29 = vector.shape_cast %28 : vector<1x128x128xbf16> to vector<128x128xbf16>
    %cst_26 = arith.constant dense<0.000000e+00> : vector<8x128xf32>
    %30 = tpu.matmul %27, %29, %cst_26 {dimension_numbers = #tpu.dot_dimension_numbers<[1], [0], [0], [1], [0, 0, 1, 1], [], []>} : vector<8x128xbf16>, vector<128x128xbf16>, vector<8x128xf32> -> vector<8x128xf32>
    %c1 = arith.constant 1 : index
    %c0_27 = arith.constant 0 : index
    %c0_28 = arith.constant 0 : index
    %31 = vector.load %arg5[%c1, %c0_27, %c0_28] : memref<2x1x128xf32, #tpu.memory_space<vmem>>, vector<1x1x128xf32>
    %32 = vector.shape_cast %31 : vector<1x1x128xf32> to vector<1x128xf32>
    %33 = vector.broadcast %32 : vector<1x128xf32> to vector<8x128xf32>
    %34 = arith.addf %30, %33 : vector<8x128xf32>
    %35 = arith.truncf %11 : vector<8x128xf32> to vector<8x128xbf16>
    %c1_29 = arith.constant 1 : index
    %c0_30 = arith.constant 0 : index
    %c0_31 = arith.constant 0 : index
    %36 = vector.load %arg4[%c1_29, %c0_30, %c0_31] : memref<2x128x128xbf16, #tpu.memory_space<vmem>>, vector<1x128x128xbf16>
    %37 = vector.shape_cast %36 : vector<1x128x128xbf16> to vector<128x128xbf16>
    %cst_32 = arith.constant dense<0.000000e+00> : vector<8x128xf32>
    %38 = tpu.matmul %35, %37, %cst_32 {dimension_numbers = #tpu.dot_dimension_numbers<[1], [0], [0], [1], [0, 0, 1, 1], [], []>} : vector<8x128xbf16>, vector<128x128xbf16>, vector<8x128xf32> -> vector<8x128xf32>
    %39 = arith.addf %34, %38 : vector<8x128xf32>
    %40 = math.tanh %39 : vector<8x128xf32>
    tpu.wait_dma2 semaphore(%arg11 : memref<!tpu.dma_semaphore, #tpu.memory_space<semaphore_mem>>) src(%arg6 : memref<16x128x128xbf16, #tpu.memory_space<any>>) dst(%arg10 : memref<16x128x128xbf16, #tpu.memory_space<vmem>>)
    %41 = arith.truncf %40 : vector<8x128xf32> to vector<8x128xbf16>
    %c0_33 = arith.constant 0 : index
    %c0_34 = arith.constant 0 : index
    %c0_35 = arith.constant 0 : index
    %42 = vector.load %arg10[%c0_33, %c0_34, %c0_35] : memref<16x128x128xbf16, #tpu.memory_space<vmem>>, vector<1x128x128xbf16>
    %43 = vector.shape_cast %42 : vector<1x128x128xbf16> to vector<128x128xbf16>
    %cst_36 = arith.constant dense<0.000000e+00> : vector<8x128xf32>
    %44 = tpu.matmul %41, %43, %cst_36 {dimension_numbers = #tpu.dot_dimension_numbers<[1], [0], [0], [1], [0, 0, 1, 1], [], []>} : vector<8x128xbf16>, vector<128x128xbf16>, vector<8x128xf32> -> vector<8x128xf32>
    %45 = arith.addf %12, %44 : vector<8x128xf32>
    %c16 = arith.constant 16 : index
    %c0_37 = arith.constant 0 : index
    %46 = vector.load %arg9[%c16, %c0_37] : memref<128x128xf32, #tpu.memory_space<vmem>>, vector<8x128xf32>
    %47 = arith.truncf %26 : vector<8x128xf32> to vector<8x128xbf16>
    %c0_38 = arith.constant 0 : index
    %c0_39 = arith.constant 0 : index
    %c0_40 = arith.constant 0 : index
    %48 = vector.load %arg4[%c0_38, %c0_39, %c0_40] : memref<2x128x128xbf16, #tpu.memory_space<vmem>>, vector<1x128x128xbf16>
    %49 = vector.shape_cast %48 : vector<1x128x128xbf16> to vector<128x128xbf16>
    %cst_41 = arith.constant dense<0.000000e+00> : vector<8x128xf32>
    %50 = tpu.matmul %47, %49, %cst_41 {dimension_numbers = #tpu.dot_dimension_numbers<[1], [0], [0], [1], [0, 0, 1, 1], [], []>} : vector<8x128xbf16>, vector<128x128xbf16>, vector<8x128xf32> -> vector<8x128xf32>
    %51 = arith.addf %46, %50 : vector<8x128xf32>
    %52 = math.tanh %51 : vector<8x128xf32>
    %53 = arith.truncf %26 : vector<8x128xf32> to vector<8x128xbf16>
    %c0_42 = arith.constant 0 : index
    %c0_43 = arith.constant 0 : index
    %c0_44 = arith.constant 0 : index
    %54 = vector.load %arg3[%c0_42, %c0_43, %c0_44] : memref<1x128x128xbf16, #tpu.memory_space<vmem>>, vector<1x128x128xbf16>
    %55 = vector.shape_cast %54 : vector<1x128x128xbf16> to vector<128x128xbf16>
    %cst_45 = arith.constant dense<0.000000e+00> : vector<8x128xf32>
    %56 = tpu.matmul %53, %55, %cst_45 {dimension_numbers = #tpu.dot_dimension_numbers<[1], [0], [0], [1], [0, 0, 1, 1], [], []>} : vector<8x128xbf16>, vector<128x128xbf16>, vector<8x128xf32> -> vector<8x128xf32>
    %c1_46 = arith.constant 1 : index
    %c0_47 = arith.constant 0 : index
    %c0_48 = arith.constant 0 : index
    %57 = vector.load %arg5[%c1_46, %c0_47, %c0_48] : memref<2x1x128xf32, #tpu.memory_space<vmem>>, vector<1x1x128xf32>
    %58 = vector.shape_cast %57 : vector<1x1x128xf32> to vector<1x128xf32>
    %59 = vector.broadcast %58 : vector<1x128xf32> to vector<8x128xf32>
    %60 = arith.addf %56, %59 : vector<8x128xf32>
    %61 = arith.truncf %40 : vector<8x128xf32> to vector<8x128xbf16>
    %c1_49 = arith.constant 1 : index
    %c0_50 = arith.constant 0 : index
    %c0_51 = arith.constant 0 : index
    %62 = vector.load %arg4[%c1_49, %c0_50, %c0_51] : memref<2x128x128xbf16, #tpu.memory_space<vmem>>, vector<1x128x128xbf16>
    %63 = vector.shape_cast %62 : vector<1x128x128xbf16> to vector<128x128xbf16>
    %cst_52 = arith.constant dense<0.000000e+00> : vector<8x128xf32>
    %64 = tpu.matmul %61, %63, %cst_52 {dimension_numbers = #tpu.dot_dimension_numbers<[1], [0], [0], [1], [0, 0, 1, 1], [], []>} : vector<8x128xbf16>, vector<128x128xbf16>, vector<8x128xf32> -> vector<8x128xf32>
    %65 = arith.addf %60, %64 : vector<8x128xf32>
    %66 = math.tanh %65 : vector<8x128xf32>
    %67 = arith.truncf %66 : vector<8x128xf32> to vector<8x128xbf16>
    %c1_53 = arith.constant 1 : index
    %c0_54 = arith.constant 0 : index
    %c0_55 = arith.constant 0 : index
    %68 = vector.load %arg10[%c1_53, %c0_54, %c0_55] : memref<16x128x128xbf16, #tpu.memory_space<vmem>>, vector<1x128x128xbf16>
    %69 = vector.shape_cast %68 : vector<1x128x128xbf16> to vector<128x128xbf16>
    %cst_56 = arith.constant dense<0.000000e+00> : vector<8x128xf32>
    %70 = tpu.matmul %67, %69, %cst_56 {dimension_numbers = #tpu.dot_dimension_numbers<[1], [0], [0], [1], [0, 0, 1, 1], [], []>} : vector<8x128xbf16>, vector<128x128xbf16>, vector<8x128xf32> -> vector<8x128xf32>
    %71 = arith.addf %45, %70 : vector<8x128xf32>
    %c24 = arith.constant 24 : index
    %c0_57 = arith.constant 0 : index
    %72 = vector.load %arg9[%c24, %c0_57] : memref<128x128xf32, #tpu.memory_space<vmem>>, vector<8x128xf32>
    %73 = arith.truncf %52 : vector<8x128xf32> to vector<8x128xbf16>
    %c0_58 = arith.constant 0 : index
    %c0_59 = arith.constant 0 : index
    %c0_60 = arith.constant 0 : index
    %74 = vector.load %arg4[%c0_58, %c0_59, %c0_60] : memref<2x128x128xbf16, #tpu.memory_space<vmem>>, vector<1x128x128xbf16>
    %75 = vector.shape_cast %74 : vector<1x128x128xbf16> to vector<128x128xbf16>
    %cst_61 = arith.constant dense<0.000000e+00> : vector<8x128xf32>
    %76 = tpu.matmul %73, %75, %cst_61 {dimension_numbers = #tpu.dot_dimension_numbers<[1], [0], [0], [1], [0, 0, 1, 1], [], []>} : vector<8x128xbf16>, vector<128x128xbf16>, vector<8x128xf32> -> vector<8x128xf32>
    %77 = arith.addf %72, %76 : vector<8x128xf32>
    %78 = math.tanh %77 : vector<8x128xf32>
    %79 = arith.truncf %52 : vector<8x128xf32> to vector<8x128xbf16>
    %c0_62 = arith.constant 0 : index
    %c0_63 = arith.constant 0 : index
    %c0_64 = arith.constant 0 : index
    %80 = vector.load %arg3[%c0_62, %c0_63, %c0_64] : memref<1x128x128xbf16, #tpu.memory_space<vmem>>, vector<1x128x128xbf16>
    %81 = vector.shape_cast %80 : vector<1x128x128xbf16> to vector<128x128xbf16>
    %cst_65 = arith.constant dense<0.000000e+00> : vector<8x128xf32>
    %82 = tpu.matmul %79, %81, %cst_65 {dimension_numbers = #tpu.dot_dimension_numbers<[1], [0], [0], [1], [0, 0, 1, 1], [], []>} : vector<8x128xbf16>, vector<128x128xbf16>, vector<8x128xf32> -> vector<8x128xf32>
    %c1_66 = arith.constant 1 : index
    %c0_67 = arith.constant 0 : index
    %c0_68 = arith.constant 0 : index
    %83 = vector.load %arg5[%c1_66, %c0_67, %c0_68] : memref<2x1x128xf32, #tpu.memory_space<vmem>>, vector<1x1x128xf32>
    %84 = vector.shape_cast %83 : vector<1x1x128xf32> to vector<1x128xf32>
    %85 = vector.broadcast %84 : vector<1x128xf32> to vector<8x128xf32>
    %86 = arith.addf %82, %85 : vector<8x128xf32>
    %87 = arith.truncf %66 : vector<8x128xf32> to vector<8x128xbf16>
    %c1_69 = arith.constant 1 : index
    %c0_70 = arith.constant 0 : index
    %c0_71 = arith.constant 0 : index
    %88 = vector.load %arg4[%c1_69, %c0_70, %c0_71] : memref<2x128x128xbf16, #tpu.memory_space<vmem>>, vector<1x128x128xbf16>
    %89 = vector.shape_cast %88 : vector<1x128x128xbf16> to vector<128x128xbf16>
    %cst_72 = arith.constant dense<0.000000e+00> : vector<8x128xf32>
    %90 = tpu.matmul %87, %89, %cst_72 {dimension_numbers = #tpu.dot_dimension_numbers<[1], [0], [0], [1], [0, 0, 1, 1], [], []>} : vector<8x128xbf16>, vector<128x128xbf16>, vector<8x128xf32> -> vector<8x128xf32>
    %91 = arith.addf %86, %90 : vector<8x128xf32>
    %92 = math.tanh %91 : vector<8x128xf32>
    %93 = arith.truncf %92 : vector<8x128xf32> to vector<8x128xbf16>
    %c2 = arith.constant 2 : index
    %c0_73 = arith.constant 0 : index
    %c0_74 = arith.constant 0 : index
    %94 = vector.load %arg10[%c2, %c0_73, %c0_74] : memref<16x128x128xbf16, #tpu.memory_space<vmem>>, vector<1x128x128xbf16>
    %95 = vector.shape_cast %94 : vector<1x128x128xbf16> to vector<128x128xbf16>
    %cst_75 = arith.constant dense<0.000000e+00> : vector<8x128xf32>
    %96 = tpu.matmul %93, %95, %cst_75 {dimension_numbers = #tpu.dot_dimension_numbers<[1], [0], [0], [1], [0, 0, 1, 1], [], []>} : vector<8x128xbf16>, vector<128x128xbf16>, vector<8x128xf32> -> vector<8x128xf32>
    %97 = arith.addf %71, %96 : vector<8x128xf32>
    %c32 = arith.constant 32 : index
    %c0_76 = arith.constant 0 : index
    %98 = vector.load %arg9[%c32, %c0_76] : memref<128x128xf32, #tpu.memory_space<vmem>>, vector<8x128xf32>
    %99 = arith.truncf %78 : vector<8x128xf32> to vector<8x128xbf16>
    %c0_77 = arith.constant 0 : index
    %c0_78 = arith.constant 0 : index
    %c0_79 = arith.constant 0 : index
    %100 = vector.load %arg4[%c0_77, %c0_78, %c0_79] : memref<2x128x128xbf16, #tpu.memory_space<vmem>>, vector<1x128x128xbf16>
    %101 = vector.shape_cast %100 : vector<1x128x128xbf16> to vector<128x128xbf16>
    %cst_80 = arith.constant dense<0.000000e+00> : vector<8x128xf32>
    %102 = tpu.matmul %99, %101, %cst_80 {dimension_numbers = #tpu.dot_dimension_numbers<[1], [0], [0], [1], [0, 0, 1, 1], [], []>} : vector<8x128xbf16>, vector<128x128xbf16>, vector<8x128xf32> -> vector<8x128xf32>
    %103 = arith.addf %98, %102 : vector<8x128xf32>
    %104 = math.tanh %103 : vector<8x128xf32>
    %105 = arith.truncf %78 : vector<8x128xf32> to vector<8x128xbf16>
    %c0_81 = arith.constant 0 : index
    %c0_82 = arith.constant 0 : index
    %c0_83 = arith.constant 0 : index
    %106 = vector.load %arg3[%c0_81, %c0_82, %c0_83] : memref<1x128x128xbf16, #tpu.memory_space<vmem>>, vector<1x128x128xbf16>
    %107 = vector.shape_cast %106 : vector<1x128x128xbf16> to vector<128x128xbf16>
    %cst_84 = arith.constant dense<0.000000e+00> : vector<8x128xf32>
    %108 = tpu.matmul %105, %107, %cst_84 {dimension_numbers = #tpu.dot_dimension_numbers<[1], [0], [0], [1], [0, 0, 1, 1], [], []>} : vector<8x128xbf16>, vector<128x128xbf16>, vector<8x128xf32> -> vector<8x128xf32>
    %c1_85 = arith.constant 1 : index
    %c0_86 = arith.constant 0 : index
    %c0_87 = arith.constant 0 : index
    %109 = vector.load %arg5[%c1_85, %c0_86, %c0_87] : memref<2x1x128xf32, #tpu.memory_space<vmem>>, vector<1x1x128xf32>
    %110 = vector.shape_cast %109 : vector<1x1x128xf32> to vector<1x128xf32>
    %111 = vector.broadcast %110 : vector<1x128xf32> to vector<8x128xf32>
    %112 = arith.addf %108, %111 : vector<8x128xf32>
    %113 = arith.truncf %92 : vector<8x128xf32> to vector<8x128xbf16>
    %c1_88 = arith.constant 1 : index
    %c0_89 = arith.constant 0 : index
    %c0_90 = arith.constant 0 : index
    %114 = vector.load %arg4[%c1_88, %c0_89, %c0_90] : memref<2x128x128xbf16, #tpu.memory_space<vmem>>, vector<1x128x128xbf16>
    %115 = vector.shape_cast %114 : vector<1x128x128xbf16> to vector<128x128xbf16>
    %cst_91 = arith.constant dense<0.000000e+00> : vector<8x128xf32>
    %116 = tpu.matmul %113, %115, %cst_91 {dimension_numbers = #tpu.dot_dimension_numbers<[1], [0], [0], [1], [0, 0, 1, 1], [], []>} : vector<8x128xbf16>, vector<128x128xbf16>, vector<8x128xf32> -> vector<8x128xf32>
    %117 = arith.addf %112, %116 : vector<8x128xf32>
    %118 = math.tanh %117 : vector<8x128xf32>
    %119 = arith.truncf %118 : vector<8x128xf32> to vector<8x128xbf16>
    %c3 = arith.constant 3 : index
    %c0_92 = arith.constant 0 : index
    %c0_93 = arith.constant 0 : index
    %120 = vector.load %arg10[%c3, %c0_92, %c0_93] : memref<16x128x128xbf16, #tpu.memory_space<vmem>>, vector<1x128x128xbf16>
    %121 = vector.shape_cast %120 : vector<1x128x128xbf16> to vector<128x128xbf16>
    %cst_94 = arith.constant dense<0.000000e+00> : vector<8x128xf32>
    %122 = tpu.matmul %119, %121, %cst_94 {dimension_numbers = #tpu.dot_dimension_numbers<[1], [0], [0], [1], [0, 0, 1, 1], [], []>} : vector<8x128xbf16>, vector<128x128xbf16>, vector<8x128xf32> -> vector<8x128xf32>
    %123 = arith.addf %97, %122 : vector<8x128xf32>
    %c40 = arith.constant 40 : index
    %c0_95 = arith.constant 0 : index
    %124 = vector.load %arg9[%c40, %c0_95] : memref<128x128xf32, #tpu.memory_space<vmem>>, vector<8x128xf32>
    %125 = arith.truncf %104 : vector<8x128xf32> to vector<8x128xbf16>
    %c0_96 = arith.constant 0 : index
    %c0_97 = arith.constant 0 : index
    %c0_98 = arith.constant 0 : index
    %126 = vector.load %arg4[%c0_96, %c0_97, %c0_98] : memref<2x128x128xbf16, #tpu.memory_space<vmem>>, vector<1x128x128xbf16>
    %127 = vector.shape_cast %126 : vector<1x128x128xbf16> to vector<128x128xbf16>
    %cst_99 = arith.constant dense<0.000000e+00> : vector<8x128xf32>
    %128 = tpu.matmul %125, %127, %cst_99 {dimension_numbers = #tpu.dot_dimension_numbers<[1], [0], [0], [1], [0, 0, 1, 1], [], []>} : vector<8x128xbf16>, vector<128x128xbf16>, vector<8x128xf32> -> vector<8x128xf32>
    %129 = arith.addf %124, %128 : vector<8x128xf32>
    %130 = math.tanh %129 : vector<8x128xf32>
    %131 = arith.truncf %104 : vector<8x128xf32> to vector<8x128xbf16>
    %c0_100 = arith.constant 0 : index
    %c0_101 = arith.constant 0 : index
    %c0_102 = arith.constant 0 : index
    %132 = vector.load %arg3[%c0_100, %c0_101, %c0_102] : memref<1x128x128xbf16, #tpu.memory_space<vmem>>, vector<1x128x128xbf16>
    %133 = vector.shape_cast %132 : vector<1x128x128xbf16> to vector<128x128xbf16>
    %cst_103 = arith.constant dense<0.000000e+00> : vector<8x128xf32>
    %134 = tpu.matmul %131, %133, %cst_103 {dimension_numbers = #tpu.dot_dimension_numbers<[1], [0], [0], [1], [0, 0, 1, 1], [], []>} : vector<8x128xbf16>, vector<128x128xbf16>, vector<8x128xf32> -> vector<8x128xf32>
    %c1_104 = arith.constant 1 : index
    %c0_105 = arith.constant 0 : index
    %c0_106 = arith.constant 0 : index
    %135 = vector.load %arg5[%c1_104, %c0_105, %c0_106] : memref<2x1x128xf32, #tpu.memory_space<vmem>>, vector<1x1x128xf32>
    %136 = vector.shape_cast %135 : vector<1x1x128xf32> to vector<1x128xf32>
    %137 = vector.broadcast %136 : vector<1x128xf32> to vector<8x128xf32>
    %138 = arith.addf %134, %137 : vector<8x128xf32>
    %139 = arith.truncf %118 : vector<8x128xf32> to vector<8x128xbf16>
    %c1_107 = arith.constant 1 : index
    %c0_108 = arith.constant 0 : index
    %c0_109 = arith.constant 0 : index
    %140 = vector.load %arg4[%c1_107, %c0_108, %c0_109] : memref<2x128x128xbf16, #tpu.memory_space<vmem>>, vector<1x128x128xbf16>
    %141 = vector.shape_cast %140 : vector<1x128x128xbf16> to vector<128x128xbf16>
    %cst_110 = arith.constant dense<0.000000e+00> : vector<8x128xf32>
    %142 = tpu.matmul %139, %141, %cst_110 {dimension_numbers = #tpu.dot_dimension_numbers<[1], [0], [0], [1], [0, 0, 1, 1], [], []>} : vector<8x128xbf16>, vector<128x128xbf16>, vector<8x128xf32> -> vector<8x128xf32>
    %143 = arith.addf %138, %142 : vector<8x128xf32>
    %144 = math.tanh %143 : vector<8x128xf32>
    %145 = arith.truncf %144 : vector<8x128xf32> to vector<8x128xbf16>
    %c4 = arith.constant 4 : index
    %c0_111 = arith.constant 0 : index
    %c0_112 = arith.constant 0 : index
    %146 = vector.load %arg10[%c4, %c0_111, %c0_112] : memref<16x128x128xbf16, #tpu.memory_space<vmem>>, vector<1x128x128xbf16>
    %147 = vector.shape_cast %146 : vector<1x128x128xbf16> to vector<128x128xbf16>
    %cst_113 = arith.constant dense<0.000000e+00> : vector<8x128xf32>
    %148 = tpu.matmul %145, %147, %cst_113 {dimension_numbers = #tpu.dot_dimension_numbers<[1], [0], [0], [1], [0, 0, 1, 1], [], []>} : vector<8x128xbf16>, vector<128x128xbf16>, vector<8x128xf32> -> vector<8x128xf32>
    %149 = arith.addf %123, %148 : vector<8x128xf32>
    %c48 = arith.constant 48 : index
    %c0_114 = arith.constant 0 : index
    %150 = vector.load %arg9[%c48, %c0_114] : memref<128x128xf32, #tpu.memory_space<vmem>>, vector<8x128xf32>
    %151 = arith.truncf %130 : vector<8x128xf32> to vector<8x128xbf16>
    %c0_115 = arith.constant 0 : index
    %c0_116 = arith.constant 0 : index
    %c0_117 = arith.constant 0 : index
    %152 = vector.load %arg4[%c0_115, %c0_116, %c0_117] : memref<2x128x128xbf16, #tpu.memory_space<vmem>>, vector<1x128x128xbf16>
    %153 = vector.shape_cast %152 : vector<1x128x128xbf16> to vector<128x128xbf16>
    %cst_118 = arith.constant dense<0.000000e+00> : vector<8x128xf32>
    %154 = tpu.matmul %151, %153, %cst_118 {dimension_numbers = #tpu.dot_dimension_numbers<[1], [0], [0], [1], [0, 0, 1, 1], [], []>} : vector<8x128xbf16>, vector<128x128xbf16>, vector<8x128xf32> -> vector<8x128xf32>
    %155 = arith.addf %150, %154 : vector<8x128xf32>
    %156 = math.tanh %155 : vector<8x128xf32>
    %157 = arith.truncf %130 : vector<8x128xf32> to vector<8x128xbf16>
    %c0_119 = arith.constant 0 : index
    %c0_120 = arith.constant 0 : index
    %c0_121 = arith.constant 0 : index
    %158 = vector.load %arg3[%c0_119, %c0_120, %c0_121] : memref<1x128x128xbf16, #tpu.memory_space<vmem>>, vector<1x128x128xbf16>
    %159 = vector.shape_cast %158 : vector<1x128x128xbf16> to vector<128x128xbf16>
    %cst_122 = arith.constant dense<0.000000e+00> : vector<8x128xf32>
    %160 = tpu.matmul %157, %159, %cst_122 {dimension_numbers = #tpu.dot_dimension_numbers<[1], [0], [0], [1], [0, 0, 1, 1], [], []>} : vector<8x128xbf16>, vector<128x128xbf16>, vector<8x128xf32> -> vector<8x128xf32>
    %c1_123 = arith.constant 1 : index
    %c0_124 = arith.constant 0 : index
    %c0_125 = arith.constant 0 : index
    %161 = vector.load %arg5[%c1_123, %c0_124, %c0_125] : memref<2x1x128xf32, #tpu.memory_space<vmem>>, vector<1x1x128xf32>
    %162 = vector.shape_cast %161 : vector<1x1x128xf32> to vector<1x128xf32>
    %163 = vector.broadcast %162 : vector<1x128xf32> to vector<8x128xf32>
    %164 = arith.addf %160, %163 : vector<8x128xf32>
    %165 = arith.truncf %144 : vector<8x128xf32> to vector<8x128xbf16>
    %c1_126 = arith.constant 1 : index
    %c0_127 = arith.constant 0 : index
    %c0_128 = arith.constant 0 : index
    %166 = vector.load %arg4[%c1_126, %c0_127, %c0_128] : memref<2x128x128xbf16, #tpu.memory_space<vmem>>, vector<1x128x128xbf16>
    %167 = vector.shape_cast %166 : vector<1x128x128xbf16> to vector<128x128xbf16>
    %cst_129 = arith.constant dense<0.000000e+00> : vector<8x128xf32>
    %168 = tpu.matmul %165, %167, %cst_129 {dimension_numbers = #tpu.dot_dimension_numbers<[1], [0], [0], [1], [0, 0, 1, 1], [], []>} : vector<8x128xbf16>, vector<128x128xbf16>, vector<8x128xf32> -> vector<8x128xf32>
    %169 = arith.addf %164, %168 : vector<8x128xf32>
    %170 = math.tanh %169 : vector<8x128xf32>
    %171 = arith.truncf %170 : vector<8x128xf32> to vector<8x128xbf16>
    %c5 = arith.constant 5 : index
    %c0_130 = arith.constant 0 : index
    %c0_131 = arith.constant 0 : index
    %172 = vector.load %arg10[%c5, %c0_130, %c0_131] : memref<16x128x128xbf16, #tpu.memory_space<vmem>>, vector<1x128x128xbf16>
    %173 = vector.shape_cast %172 : vector<1x128x128xbf16> to vector<128x128xbf16>
    %cst_132 = arith.constant dense<0.000000e+00> : vector<8x128xf32>
    %174 = tpu.matmul %171, %173, %cst_132 {dimension_numbers = #tpu.dot_dimension_numbers<[1], [0], [0], [1], [0, 0, 1, 1], [], []>} : vector<8x128xbf16>, vector<128x128xbf16>, vector<8x128xf32> -> vector<8x128xf32>
    %175 = arith.addf %149, %174 : vector<8x128xf32>
    %c56 = arith.constant 56 : index
    %c0_133 = arith.constant 0 : index
    %176 = vector.load %arg9[%c56, %c0_133] : memref<128x128xf32, #tpu.memory_space<vmem>>, vector<8x128xf32>
    %177 = arith.truncf %156 : vector<8x128xf32> to vector<8x128xbf16>
    %c0_134 = arith.constant 0 : index
    %c0_135 = arith.constant 0 : index
    %c0_136 = arith.constant 0 : index
    %178 = vector.load %arg4[%c0_134, %c0_135, %c0_136] : memref<2x128x128xbf16, #tpu.memory_space<vmem>>, vector<1x128x128xbf16>
    %179 = vector.shape_cast %178 : vector<1x128x128xbf16> to vector<128x128xbf16>
    %cst_137 = arith.constant dense<0.000000e+00> : vector<8x128xf32>
    %180 = tpu.matmul %177, %179, %cst_137 {dimension_numbers = #tpu.dot_dimension_numbers<[1], [0], [0], [1], [0, 0, 1, 1], [], []>} : vector<8x128xbf16>, vector<128x128xbf16>, vector<8x128xf32> -> vector<8x128xf32>
    %181 = arith.addf %176, %180 : vector<8x128xf32>
    %182 = math.tanh %181 : vector<8x128xf32>
    %183 = arith.truncf %156 : vector<8x128xf32> to vector<8x128xbf16>
    %c0_138 = arith.constant 0 : index
    %c0_139 = arith.constant 0 : index
    %c0_140 = arith.constant 0 : index
    %184 = vector.load %arg3[%c0_138, %c0_139, %c0_140] : memref<1x128x128xbf16, #tpu.memory_space<vmem>>, vector<1x128x128xbf16>
    %185 = vector.shape_cast %184 : vector<1x128x128xbf16> to vector<128x128xbf16>
    %cst_141 = arith.constant dense<0.000000e+00> : vector<8x128xf32>
    %186 = tpu.matmul %183, %185, %cst_141 {dimension_numbers = #tpu.dot_dimension_numbers<[1], [0], [0], [1], [0, 0, 1, 1], [], []>} : vector<8x128xbf16>, vector<128x128xbf16>, vector<8x128xf32> -> vector<8x128xf32>
    %c1_142 = arith.constant 1 : index
    %c0_143 = arith.constant 0 : index
    %c0_144 = arith.constant 0 : index
    %187 = vector.load %arg5[%c1_142, %c0_143, %c0_144] : memref<2x1x128xf32, #tpu.memory_space<vmem>>, vector<1x1x128xf32>
    %188 = vector.shape_cast %187 : vector<1x1x128xf32> to vector<1x128xf32>
    %189 = vector.broadcast %188 : vector<1x128xf32> to vector<8x128xf32>
    %190 = arith.addf %186, %189 : vector<8x128xf32>
    %191 = arith.truncf %170 : vector<8x128xf32> to vector<8x128xbf16>
    %c1_145 = arith.constant 1 : index
    %c0_146 = arith.constant 0 : index
    %c0_147 = arith.constant 0 : index
    %192 = vector.load %arg4[%c1_145, %c0_146, %c0_147] : memref<2x128x128xbf16, #tpu.memory_space<vmem>>, vector<1x128x128xbf16>
    %193 = vector.shape_cast %192 : vector<1x128x128xbf16> to vector<128x128xbf16>
    %cst_148 = arith.constant dense<0.000000e+00> : vector<8x128xf32>
    %194 = tpu.matmul %191, %193, %cst_148 {dimension_numbers = #tpu.dot_dimension_numbers<[1], [0], [0], [1], [0, 0, 1, 1], [], []>} : vector<8x128xbf16>, vector<128x128xbf16>, vector<8x128xf32> -> vector<8x128xf32>
    %195 = arith.addf %190, %194 : vector<8x128xf32>
    %196 = math.tanh %195 : vector<8x128xf32>
    %197 = arith.truncf %196 : vector<8x128xf32> to vector<8x128xbf16>
    %c6 = arith.constant 6 : index
    %c0_149 = arith.constant 0 : index
    %c0_150 = arith.constant 0 : index
    %198 = vector.load %arg10[%c6, %c0_149, %c0_150] : memref<16x128x128xbf16, #tpu.memory_space<vmem>>, vector<1x128x128xbf16>
    %199 = vector.shape_cast %198 : vector<1x128x128xbf16> to vector<128x128xbf16>
    %cst_151 = arith.constant dense<0.000000e+00> : vector<8x128xf32>
    %200 = tpu.matmul %197, %199, %cst_151 {dimension_numbers = #tpu.dot_dimension_numbers<[1], [0], [0], [1], [0, 0, 1, 1], [], []>} : vector<8x128xbf16>, vector<128x128xbf16>, vector<8x128xf32> -> vector<8x128xf32>
    %201 = arith.addf %175, %200 : vector<8x128xf32>
    %c64 = arith.constant 64 : index
    %c0_152 = arith.constant 0 : index
    %202 = vector.load %arg9[%c64, %c0_152] : memref<128x128xf32, #tpu.memory_space<vmem>>, vector<8x128xf32>
    %203 = arith.truncf %182 : vector<8x128xf32> to vector<8x128xbf16>
    %c0_153 = arith.constant 0 : index
    %c0_154 = arith.constant 0 : index
    %c0_155 = arith.constant 0 : index
    %204 = vector.load %arg4[%c0_153, %c0_154, %c0_155] : memref<2x128x128xbf16, #tpu.memory_space<vmem>>, vector<1x128x128xbf16>
    %205 = vector.shape_cast %204 : vector<1x128x128xbf16> to vector<128x128xbf16>
    %cst_156 = arith.constant dense<0.000000e+00> : vector<8x128xf32>
    %206 = tpu.matmul %203, %205, %cst_156 {dimension_numbers = #tpu.dot_dimension_numbers<[1], [0], [0], [1], [0, 0, 1, 1], [], []>} : vector<8x128xbf16>, vector<128x128xbf16>, vector<8x128xf32> -> vector<8x128xf32>
    %207 = arith.addf %202, %206 : vector<8x128xf32>
    %208 = math.tanh %207 : vector<8x128xf32>
    %209 = arith.truncf %182 : vector<8x128xf32> to vector<8x128xbf16>
    %c0_157 = arith.constant 0 : index
    %c0_158 = arith.constant 0 : index
    %c0_159 = arith.constant 0 : index
    %210 = vector.load %arg3[%c0_157, %c0_158, %c0_159] : memref<1x128x128xbf16, #tpu.memory_space<vmem>>, vector<1x128x128xbf16>
    %211 = vector.shape_cast %210 : vector<1x128x128xbf16> to vector<128x128xbf16>
    %cst_160 = arith.constant dense<0.000000e+00> : vector<8x128xf32>
    %212 = tpu.matmul %209, %211, %cst_160 {dimension_numbers = #tpu.dot_dimension_numbers<[1], [0], [0], [1], [0, 0, 1, 1], [], []>} : vector<8x128xbf16>, vector<128x128xbf16>, vector<8x128xf32> -> vector<8x128xf32>
    %c1_161 = arith.constant 1 : index
    %c0_162 = arith.constant 0 : index
    %c0_163 = arith.constant 0 : index
    %213 = vector.load %arg5[%c1_161, %c0_162, %c0_163] : memref<2x1x128xf32, #tpu.memory_space<vmem>>, vector<1x1x128xf32>
    %214 = vector.shape_cast %213 : vector<1x1x128xf32> to vector<1x128xf32>
    %215 = vector.broadcast %214 : vector<1x128xf32> to vector<8x128xf32>
    %216 = arith.addf %212, %215 : vector<8x128xf32>
    %217 = arith.truncf %196 : vector<8x128xf32> to vector<8x128xbf16>
    %c1_164 = arith.constant 1 : index
    %c0_165 = arith.constant 0 : index
    %c0_166 = arith.constant 0 : index
    %218 = vector.load %arg4[%c1_164, %c0_165, %c0_166] : memref<2x128x128xbf16, #tpu.memory_space<vmem>>, vector<1x128x128xbf16>
    %219 = vector.shape_cast %218 : vector<1x128x128xbf16> to vector<128x128xbf16>
    %cst_167 = arith.constant dense<0.000000e+00> : vector<8x128xf32>
    %220 = tpu.matmul %217, %219, %cst_167 {dimension_numbers = #tpu.dot_dimension_numbers<[1], [0], [0], [1], [0, 0, 1, 1], [], []>} : vector<8x128xbf16>, vector<128x128xbf16>, vector<8x128xf32> -> vector<8x128xf32>
    %221 = arith.addf %216, %220 : vector<8x128xf32>
    %222 = math.tanh %221 : vector<8x128xf32>
    %223 = arith.truncf %222 : vector<8x128xf32> to vector<8x128xbf16>
    %c7 = arith.constant 7 : index
    %c0_168 = arith.constant 0 : index
    %c0_169 = arith.constant 0 : index
    %224 = vector.load %arg10[%c7, %c0_168, %c0_169] : memref<16x128x128xbf16, #tpu.memory_space<vmem>>, vector<1x128x128xbf16>
    %225 = vector.shape_cast %224 : vector<1x128x128xbf16> to vector<128x128xbf16>
    %cst_170 = arith.constant dense<0.000000e+00> : vector<8x128xf32>
    %226 = tpu.matmul %223, %225, %cst_170 {dimension_numbers = #tpu.dot_dimension_numbers<[1], [0], [0], [1], [0, 0, 1, 1], [], []>} : vector<8x128xbf16>, vector<128x128xbf16>, vector<8x128xf32> -> vector<8x128xf32>
    %227 = arith.addf %201, %226 : vector<8x128xf32>
    %c72 = arith.constant 72 : index
    %c0_171 = arith.constant 0 : index
    %228 = vector.load %arg9[%c72, %c0_171] : memref<128x128xf32, #tpu.memory_space<vmem>>, vector<8x128xf32>
    %229 = arith.truncf %208 : vector<8x128xf32> to vector<8x128xbf16>
    %c0_172 = arith.constant 0 : index
    %c0_173 = arith.constant 0 : index
    %c0_174 = arith.constant 0 : index
    %230 = vector.load %arg4[%c0_172, %c0_173, %c0_174] : memref<2x128x128xbf16, #tpu.memory_space<vmem>>, vector<1x128x128xbf16>
    %231 = vector.shape_cast %230 : vector<1x128x128xbf16> to vector<128x128xbf16>
    %cst_175 = arith.constant dense<0.000000e+00> : vector<8x128xf32>
    %232 = tpu.matmul %229, %231, %cst_175 {dimension_numbers = #tpu.dot_dimension_numbers<[1], [0], [0], [1], [0, 0, 1, 1], [], []>} : vector<8x128xbf16>, vector<128x128xbf16>, vector<8x128xf32> -> vector<8x128xf32>
    %233 = arith.addf %228, %232 : vector<8x128xf32>
    %234 = math.tanh %233 : vector<8x128xf32>
    %235 = arith.truncf %208 : vector<8x128xf32> to vector<8x128xbf16>
    %c0_176 = arith.constant 0 : index
    %c0_177 = arith.constant 0 : index
    %c0_178 = arith.constant 0 : index
    %236 = vector.load %arg3[%c0_176, %c0_177, %c0_178] : memref<1x128x128xbf16, #tpu.memory_space<vmem>>, vector<1x128x128xbf16>
    %237 = vector.shape_cast %236 : vector<1x128x128xbf16> to vector<128x128xbf16>
    %cst_179 = arith.constant dense<0.000000e+00> : vector<8x128xf32>
    %238 = tpu.matmul %235, %237, %cst_179 {dimension_numbers = #tpu.dot_dimension_numbers<[1], [0], [0], [1], [0, 0, 1, 1], [], []>} : vector<8x128xbf16>, vector<128x128xbf16>, vector<8x128xf32> -> vector<8x128xf32>
    %c1_180 = arith.constant 1 : index
    %c0_181 = arith.constant 0 : index
    %c0_182 = arith.constant 0 : index
    %239 = vector.load %arg5[%c1_180, %c0_181, %c0_182] : memref<2x1x128xf32, #tpu.memory_space<vmem>>, vector<1x1x128xf32>
    %240 = vector.shape_cast %239 : vector<1x1x128xf32> to vector<1x128xf32>
    %241 = vector.broadcast %240 : vector<1x128xf32> to vector<8x128xf32>
    %242 = arith.addf %238, %241 : vector<8x128xf32>
    %243 = arith.truncf %222 : vector<8x128xf32> to vector<8x128xbf16>
    %c1_183 = arith.constant 1 : index
    %c0_184 = arith.constant 0 : index
    %c0_185 = arith.constant 0 : index
    %244 = vector.load %arg4[%c1_183, %c0_184, %c0_185] : memref<2x128x128xbf16, #tpu.memory_space<vmem>>, vector<1x128x128xbf16>
    %245 = vector.shape_cast %244 : vector<1x128x128xbf16> to vector<128x128xbf16>
    %cst_186 = arith.constant dense<0.000000e+00> : vector<8x128xf32>
    %246 = tpu.matmul %243, %245, %cst_186 {dimension_numbers = #tpu.dot_dimension_numbers<[1], [0], [0], [1], [0, 0, 1, 1], [], []>} : vector<8x128xbf16>, vector<128x128xbf16>, vector<8x128xf32> -> vector<8x128xf32>
    %247 = arith.addf %242, %246 : vector<8x128xf32>
    %248 = math.tanh %247 : vector<8x128xf32>
    %249 = arith.truncf %248 : vector<8x128xf32> to vector<8x128xbf16>
    %c8_187 = arith.constant 8 : index
    %c0_188 = arith.constant 0 : index
    %c0_189 = arith.constant 0 : index
    %250 = vector.load %arg10[%c8_187, %c0_188, %c0_189] : memref<16x128x128xbf16, #tpu.memory_space<vmem>>, vector<1x128x128xbf16>
    %251 = vector.shape_cast %250 : vector<1x128x128xbf16> to vector<128x128xbf16>
    %cst_190 = arith.constant dense<0.000000e+00> : vector<8x128xf32>
    %252 = tpu.matmul %249, %251, %cst_190 {dimension_numbers = #tpu.dot_dimension_numbers<[1], [0], [0], [1], [0, 0, 1, 1], [], []>} : vector<8x128xbf16>, vector<128x128xbf16>, vector<8x128xf32> -> vector<8x128xf32>
    %253 = arith.addf %227, %252 : vector<8x128xf32>
    %c80 = arith.constant 80 : index
    %c0_191 = arith.constant 0 : index
    %254 = vector.load %arg9[%c80, %c0_191] : memref<128x128xf32, #tpu.memory_space<vmem>>, vector<8x128xf32>
    %255 = arith.truncf %234 : vector<8x128xf32> to vector<8x128xbf16>
    %c0_192 = arith.constant 0 : index
    %c0_193 = arith.constant 0 : index
    %c0_194 = arith.constant 0 : index
    %256 = vector.load %arg4[%c0_192, %c0_193, %c0_194] : memref<2x128x128xbf16, #tpu.memory_space<vmem>>, vector<1x128x128xbf16>
    %257 = vector.shape_cast %256 : vector<1x128x128xbf16> to vector<128x128xbf16>
    %cst_195 = arith.constant dense<0.000000e+00> : vector<8x128xf32>
    %258 = tpu.matmul %255, %257, %cst_195 {dimension_numbers = #tpu.dot_dimension_numbers<[1], [0], [0], [1], [0, 0, 1, 1], [], []>} : vector<8x128xbf16>, vector<128x128xbf16>, vector<8x128xf32> -> vector<8x128xf32>
    %259 = arith.addf %254, %258 : vector<8x128xf32>
    %260 = math.tanh %259 : vector<8x128xf32>
    %261 = arith.truncf %234 : vector<8x128xf32> to vector<8x128xbf16>
    %c0_196 = arith.constant 0 : index
    %c0_197 = arith.constant 0 : index
    %c0_198 = arith.constant 0 : index
    %262 = vector.load %arg3[%c0_196, %c0_197, %c0_198] : memref<1x128x128xbf16, #tpu.memory_space<vmem>>, vector<1x128x128xbf16>
    %263 = vector.shape_cast %262 : vector<1x128x128xbf16> to vector<128x128xbf16>
    %cst_199 = arith.constant dense<0.000000e+00> : vector<8x128xf32>
    %264 = tpu.matmul %261, %263, %cst_199 {dimension_numbers = #tpu.dot_dimension_numbers<[1], [0], [0], [1], [0, 0, 1, 1], [], []>} : vector<8x128xbf16>, vector<128x128xbf16>, vector<8x128xf32> -> vector<8x128xf32>
    %c1_200 = arith.constant 1 : index
    %c0_201 = arith.constant 0 : index
    %c0_202 = arith.constant 0 : index
    %265 = vector.load %arg5[%c1_200, %c0_201, %c0_202] : memref<2x1x128xf32, #tpu.memory_space<vmem>>, vector<1x1x128xf32>
    %266 = vector.shape_cast %265 : vector<1x1x128xf32> to vector<1x128xf32>
    %267 = vector.broadcast %266 : vector<1x128xf32> to vector<8x128xf32>
    %268 = arith.addf %264, %267 : vector<8x128xf32>
    %269 = arith.truncf %248 : vector<8x128xf32> to vector<8x128xbf16>
    %c1_203 = arith.constant 1 : index
    %c0_204 = arith.constant 0 : index
    %c0_205 = arith.constant 0 : index
    %270 = vector.load %arg4[%c1_203, %c0_204, %c0_205] : memref<2x128x128xbf16, #tpu.memory_space<vmem>>, vector<1x128x128xbf16>
    %271 = vector.shape_cast %270 : vector<1x128x128xbf16> to vector<128x128xbf16>
    %cst_206 = arith.constant dense<0.000000e+00> : vector<8x128xf32>
    %272 = tpu.matmul %269, %271, %cst_206 {dimension_numbers = #tpu.dot_dimension_numbers<[1], [0], [0], [1], [0, 0, 1, 1], [], []>} : vector<8x128xbf16>, vector<128x128xbf16>, vector<8x128xf32> -> vector<8x128xf32>
    %273 = arith.addf %268, %272 : vector<8x128xf32>
    %274 = math.tanh %273 : vector<8x128xf32>
    %275 = arith.truncf %274 : vector<8x128xf32> to vector<8x128xbf16>
    %c9 = arith.constant 9 : index
    %c0_207 = arith.constant 0 : index
    %c0_208 = arith.constant 0 : index
    %276 = vector.load %arg10[%c9, %c0_207, %c0_208] : memref<16x128x128xbf16, #tpu.memory_space<vmem>>, vector<1x128x128xbf16>
    %277 = vector.shape_cast %276 : vector<1x128x128xbf16> to vector<128x128xbf16>
    %cst_209 = arith.constant dense<0.000000e+00> : vector<8x128xf32>
    %278 = tpu.matmul %275, %277, %cst_209 {dimension_numbers = #tpu.dot_dimension_numbers<[1], [0], [0], [1], [0, 0, 1, 1], [], []>} : vector<8x128xbf16>, vector<128x128xbf16>, vector<8x128xf32> -> vector<8x128xf32>
    %279 = arith.addf %253, %278 : vector<8x128xf32>
    %c88 = arith.constant 88 : index
    %c0_210 = arith.constant 0 : index
    %280 = vector.load %arg9[%c88, %c0_210] : memref<128x128xf32, #tpu.memory_space<vmem>>, vector<8x128xf32>
    %281 = arith.truncf %260 : vector<8x128xf32> to vector<8x128xbf16>
    %c0_211 = arith.constant 0 : index
    %c0_212 = arith.constant 0 : index
    %c0_213 = arith.constant 0 : index
    %282 = vector.load %arg4[%c0_211, %c0_212, %c0_213] : memref<2x128x128xbf16, #tpu.memory_space<vmem>>, vector<1x128x128xbf16>
    %283 = vector.shape_cast %282 : vector<1x128x128xbf16> to vector<128x128xbf16>
    %cst_214 = arith.constant dense<0.000000e+00> : vector<8x128xf32>
    %284 = tpu.matmul %281, %283, %cst_214 {dimension_numbers = #tpu.dot_dimension_numbers<[1], [0], [0], [1], [0, 0, 1, 1], [], []>} : vector<8x128xbf16>, vector<128x128xbf16>, vector<8x128xf32> -> vector<8x128xf32>
    %285 = arith.addf %280, %284 : vector<8x128xf32>
    %286 = math.tanh %285 : vector<8x128xf32>
    %287 = arith.truncf %260 : vector<8x128xf32> to vector<8x128xbf16>
    %c0_215 = arith.constant 0 : index
    %c0_216 = arith.constant 0 : index
    %c0_217 = arith.constant 0 : index
    %288 = vector.load %arg3[%c0_215, %c0_216, %c0_217] : memref<1x128x128xbf16, #tpu.memory_space<vmem>>, vector<1x128x128xbf16>
    %289 = vector.shape_cast %288 : vector<1x128x128xbf16> to vector<128x128xbf16>
    %cst_218 = arith.constant dense<0.000000e+00> : vector<8x128xf32>
    %290 = tpu.matmul %287, %289, %cst_218 {dimension_numbers = #tpu.dot_dimension_numbers<[1], [0], [0], [1], [0, 0, 1, 1], [], []>} : vector<8x128xbf16>, vector<128x128xbf16>, vector<8x128xf32> -> vector<8x128xf32>
    %c1_219 = arith.constant 1 : index
    %c0_220 = arith.constant 0 : index
    %c0_221 = arith.constant 0 : index
    %291 = vector.load %arg5[%c1_219, %c0_220, %c0_221] : memref<2x1x128xf32, #tpu.memory_space<vmem>>, vector<1x1x128xf32>
    %292 = vector.shape_cast %291 : vector<1x1x128xf32> to vector<1x128xf32>
    %293 = vector.broadcast %292 : vector<1x128xf32> to vector<8x128xf32>
    %294 = arith.addf %290, %293 : vector<8x128xf32>
    %295 = arith.truncf %274 : vector<8x128xf32> to vector<8x128xbf16>
    %c1_222 = arith.constant 1 : index
    %c0_223 = arith.constant 0 : index
    %c0_224 = arith.constant 0 : index
    %296 = vector.load %arg4[%c1_222, %c0_223, %c0_224] : memref<2x128x128xbf16, #tpu.memory_space<vmem>>, vector<1x128x128xbf16>
    %297 = vector.shape_cast %296 : vector<1x128x128xbf16> to vector<128x128xbf16>
    %cst_225 = arith.constant dense<0.000000e+00> : vector<8x128xf32>
    %298 = tpu.matmul %295, %297, %cst_225 {dimension_numbers = #tpu.dot_dimension_numbers<[1], [0], [0], [1], [0, 0, 1, 1], [], []>} : vector<8x128xbf16>, vector<128x128xbf16>, vector<8x128xf32> -> vector<8x128xf32>
    %299 = arith.addf %294, %298 : vector<8x128xf32>
    %300 = math.tanh %299 : vector<8x128xf32>
    %301 = arith.truncf %300 : vector<8x128xf32> to vector<8x128xbf16>
    %c10 = arith.constant 10 : index
    %c0_226 = arith.constant 0 : index
    %c0_227 = arith.constant 0 : index
    %302 = vector.load %arg10[%c10, %c0_226, %c0_227] : memref<16x128x128xbf16, #tpu.memory_space<vmem>>, vector<1x128x128xbf16>
    %303 = vector.shape_cast %302 : vector<1x128x128xbf16> to vector<128x128xbf16>
    %cst_228 = arith.constant dense<0.000000e+00> : vector<8x128xf32>
    %304 = tpu.matmul %301, %303, %cst_228 {dimension_numbers = #tpu.dot_dimension_numbers<[1], [0], [0], [1], [0, 0, 1, 1], [], []>} : vector<8x128xbf16>, vector<128x128xbf16>, vector<8x128xf32> -> vector<8x128xf32>
    %305 = arith.addf %279, %304 : vector<8x128xf32>
    %c96 = arith.constant 96 : index
    %c0_229 = arith.constant 0 : index
    %306 = vector.load %arg9[%c96, %c0_229] : memref<128x128xf32, #tpu.memory_space<vmem>>, vector<8x128xf32>
    %307 = arith.truncf %286 : vector<8x128xf32> to vector<8x128xbf16>
    %c0_230 = arith.constant 0 : index
    %c0_231 = arith.constant 0 : index
    %c0_232 = arith.constant 0 : index
    %308 = vector.load %arg4[%c0_230, %c0_231, %c0_232] : memref<2x128x128xbf16, #tpu.memory_space<vmem>>, vector<1x128x128xbf16>
    %309 = vector.shape_cast %308 : vector<1x128x128xbf16> to vector<128x128xbf16>
    %cst_233 = arith.constant dense<0.000000e+00> : vector<8x128xf32>
    %310 = tpu.matmul %307, %309, %cst_233 {dimension_numbers = #tpu.dot_dimension_numbers<[1], [0], [0], [1], [0, 0, 1, 1], [], []>} : vector<8x128xbf16>, vector<128x128xbf16>, vector<8x128xf32> -> vector<8x128xf32>
    %311 = arith.addf %306, %310 : vector<8x128xf32>
    %312 = math.tanh %311 : vector<8x128xf32>
    %313 = arith.truncf %286 : vector<8x128xf32> to vector<8x128xbf16>
    %c0_234 = arith.constant 0 : index
    %c0_235 = arith.constant 0 : index
    %c0_236 = arith.constant 0 : index
    %314 = vector.load %arg3[%c0_234, %c0_235, %c0_236] : memref<1x128x128xbf16, #tpu.memory_space<vmem>>, vector<1x128x128xbf16>
    %315 = vector.shape_cast %314 : vector<1x128x128xbf16> to vector<128x128xbf16>
    %cst_237 = arith.constant dense<0.000000e+00> : vector<8x128xf32>
    %316 = tpu.matmul %313, %315, %cst_237 {dimension_numbers = #tpu.dot_dimension_numbers<[1], [0], [0], [1], [0, 0, 1, 1], [], []>} : vector<8x128xbf16>, vector<128x128xbf16>, vector<8x128xf32> -> vector<8x128xf32>
    %c1_238 = arith.constant 1 : index
    %c0_239 = arith.constant 0 : index
    %c0_240 = arith.constant 0 : index
    %317 = vector.load %arg5[%c1_238, %c0_239, %c0_240] : memref<2x1x128xf32, #tpu.memory_space<vmem>>, vector<1x1x128xf32>
    %318 = vector.shape_cast %317 : vector<1x1x128xf32> to vector<1x128xf32>
    %319 = vector.broadcast %318 : vector<1x128xf32> to vector<8x128xf32>
    %320 = arith.addf %316, %319 : vector<8x128xf32>
    %321 = arith.truncf %300 : vector<8x128xf32> to vector<8x128xbf16>
    %c1_241 = arith.constant 1 : index
    %c0_242 = arith.constant 0 : index
    %c0_243 = arith.constant 0 : index
    %322 = vector.load %arg4[%c1_241, %c0_242, %c0_243] : memref<2x128x128xbf16, #tpu.memory_space<vmem>>, vector<1x128x128xbf16>
    %323 = vector.shape_cast %322 : vector<1x128x128xbf16> to vector<128x128xbf16>
    %cst_244 = arith.constant dense<0.000000e+00> : vector<8x128xf32>
    %324 = tpu.matmul %321, %323, %cst_244 {dimension_numbers = #tpu.dot_dimension_numbers<[1], [0], [0], [1], [0, 0, 1, 1], [], []>} : vector<8x128xbf16>, vector<128x128xbf16>, vector<8x128xf32> -> vector<8x128xf32>
    %325 = arith.addf %320, %324 : vector<8x128xf32>
    %326 = math.tanh %325 : vector<8x128xf32>
    %327 = arith.truncf %326 : vector<8x128xf32> to vector<8x128xbf16>
    %c11 = arith.constant 11 : index
    %c0_245 = arith.constant 0 : index
    %c0_246 = arith.constant 0 : index
    %328 = vector.load %arg10[%c11, %c0_245, %c0_246] : memref<16x128x128xbf16, #tpu.memory_space<vmem>>, vector<1x128x128xbf16>
    %329 = vector.shape_cast %328 : vector<1x128x128xbf16> to vector<128x128xbf16>
    %cst_247 = arith.constant dense<0.000000e+00> : vector<8x128xf32>
    %330 = tpu.matmul %327, %329, %cst_247 {dimension_numbers = #tpu.dot_dimension_numbers<[1], [0], [0], [1], [0, 0, 1, 1], [], []>} : vector<8x128xbf16>, vector<128x128xbf16>, vector<8x128xf32> -> vector<8x128xf32>
    %331 = arith.addf %305, %330 : vector<8x128xf32>
    %c104 = arith.constant 104 : index
    %c0_248 = arith.constant 0 : index
    %332 = vector.load %arg9[%c104, %c0_248] : memref<128x128xf32, #tpu.memory_space<vmem>>, vector<8x128xf32>
    %333 = arith.truncf %312 : vector<8x128xf32> to vector<8x128xbf16>
    %c0_249 = arith.constant 0 : index
    %c0_250 = arith.constant 0 : index
    %c0_251 = arith.constant 0 : index
    %334 = vector.load %arg4[%c0_249, %c0_250, %c0_251] : memref<2x128x128xbf16, #tpu.memory_space<vmem>>, vector<1x128x128xbf16>
    %335 = vector.shape_cast %334 : vector<1x128x128xbf16> to vector<128x128xbf16>
    %cst_252 = arith.constant dense<0.000000e+00> : vector<8x128xf32>
    %336 = tpu.matmul %333, %335, %cst_252 {dimension_numbers = #tpu.dot_dimension_numbers<[1], [0], [0], [1], [0, 0, 1, 1], [], []>} : vector<8x128xbf16>, vector<128x128xbf16>, vector<8x128xf32> -> vector<8x128xf32>
    %337 = arith.addf %332, %336 : vector<8x128xf32>
    %338 = math.tanh %337 : vector<8x128xf32>
    %339 = arith.truncf %312 : vector<8x128xf32> to vector<8x128xbf16>
    %c0_253 = arith.constant 0 : index
    %c0_254 = arith.constant 0 : index
    %c0_255 = arith.constant 0 : index
    %340 = vector.load %arg3[%c0_253, %c0_254, %c0_255] : memref<1x128x128xbf16, #tpu.memory_space<vmem>>, vector<1x128x128xbf16>
    %341 = vector.shape_cast %340 : vector<1x128x128xbf16> to vector<128x128xbf16>
    %cst_256 = arith.constant dense<0.000000e+00> : vector<8x128xf32>
    %342 = tpu.matmul %339, %341, %cst_256 {dimension_numbers = #tpu.dot_dimension_numbers<[1], [0], [0], [1], [0, 0, 1, 1], [], []>} : vector<8x128xbf16>, vector<128x128xbf16>, vector<8x128xf32> -> vector<8x128xf32>
    %c1_257 = arith.constant 1 : index
    %c0_258 = arith.constant 0 : index
    %c0_259 = arith.constant 0 : index
    %343 = vector.load %arg5[%c1_257, %c0_258, %c0_259] : memref<2x1x128xf32, #tpu.memory_space<vmem>>, vector<1x1x128xf32>
    %344 = vector.shape_cast %343 : vector<1x1x128xf32> to vector<1x128xf32>
    %345 = vector.broadcast %344 : vector<1x128xf32> to vector<8x128xf32>
    %346 = arith.addf %342, %345 : vector<8x128xf32>
    %347 = arith.truncf %326 : vector<8x128xf32> to vector<8x128xbf16>
    %c1_260 = arith.constant 1 : index
    %c0_261 = arith.constant 0 : index
    %c0_262 = arith.constant 0 : index
    %348 = vector.load %arg4[%c1_260, %c0_261, %c0_262] : memref<2x128x128xbf16, #tpu.memory_space<vmem>>, vector<1x128x128xbf16>
    %349 = vector.shape_cast %348 : vector<1x128x128xbf16> to vector<128x128xbf16>
    %cst_263 = arith.constant dense<0.000000e+00> : vector<8x128xf32>
    %350 = tpu.matmul %347, %349, %cst_263 {dimension_numbers = #tpu.dot_dimension_numbers<[1], [0], [0], [1], [0, 0, 1, 1], [], []>} : vector<8x128xbf16>, vector<128x128xbf16>, vector<8x128xf32> -> vector<8x128xf32>
    %351 = arith.addf %346, %350 : vector<8x128xf32>
    %352 = math.tanh %351 : vector<8x128xf32>
    %353 = arith.truncf %352 : vector<8x128xf32> to vector<8x128xbf16>
    %c12 = arith.constant 12 : index
    %c0_264 = arith.constant 0 : index
    %c0_265 = arith.constant 0 : index
    %354 = vector.load %arg10[%c12, %c0_264, %c0_265] : memref<16x128x128xbf16, #tpu.memory_space<vmem>>, vector<1x128x128xbf16>
    %355 = vector.shape_cast %354 : vector<1x128x128xbf16> to vector<128x128xbf16>
    %cst_266 = arith.constant dense<0.000000e+00> : vector<8x128xf32>
    %356 = tpu.matmul %353, %355, %cst_266 {dimension_numbers = #tpu.dot_dimension_numbers<[1], [0], [0], [1], [0, 0, 1, 1], [], []>} : vector<8x128xbf16>, vector<128x128xbf16>, vector<8x128xf32> -> vector<8x128xf32>
    %357 = arith.addf %331, %356 : vector<8x128xf32>
    %c112 = arith.constant 112 : index
    %c0_267 = arith.constant 0 : index
    %358 = vector.load %arg9[%c112, %c0_267] : memref<128x128xf32, #tpu.memory_space<vmem>>, vector<8x128xf32>
    %359 = arith.truncf %338 : vector<8x128xf32> to vector<8x128xbf16>
    %c0_268 = arith.constant 0 : index
    %c0_269 = arith.constant 0 : index
    %c0_270 = arith.constant 0 : index
    %360 = vector.load %arg4[%c0_268, %c0_269, %c0_270] : memref<2x128x128xbf16, #tpu.memory_space<vmem>>, vector<1x128x128xbf16>
    %361 = vector.shape_cast %360 : vector<1x128x128xbf16> to vector<128x128xbf16>
    %cst_271 = arith.constant dense<0.000000e+00> : vector<8x128xf32>
    %362 = tpu.matmul %359, %361, %cst_271 {dimension_numbers = #tpu.dot_dimension_numbers<[1], [0], [0], [1], [0, 0, 1, 1], [], []>} : vector<8x128xbf16>, vector<128x128xbf16>, vector<8x128xf32> -> vector<8x128xf32>
    %363 = arith.addf %358, %362 : vector<8x128xf32>
    %364 = math.tanh %363 : vector<8x128xf32>
    %365 = arith.truncf %338 : vector<8x128xf32> to vector<8x128xbf16>
    %c0_272 = arith.constant 0 : index
    %c0_273 = arith.constant 0 : index
    %c0_274 = arith.constant 0 : index
    %366 = vector.load %arg3[%c0_272, %c0_273, %c0_274] : memref<1x128x128xbf16, #tpu.memory_space<vmem>>, vector<1x128x128xbf16>
    %367 = vector.shape_cast %366 : vector<1x128x128xbf16> to vector<128x128xbf16>
    %cst_275 = arith.constant dense<0.000000e+00> : vector<8x128xf32>
    %368 = tpu.matmul %365, %367, %cst_275 {dimension_numbers = #tpu.dot_dimension_numbers<[1], [0], [0], [1], [0, 0, 1, 1], [], []>} : vector<8x128xbf16>, vector<128x128xbf16>, vector<8x128xf32> -> vector<8x128xf32>
    %c1_276 = arith.constant 1 : index
    %c0_277 = arith.constant 0 : index
    %c0_278 = arith.constant 0 : index
    %369 = vector.load %arg5[%c1_276, %c0_277, %c0_278] : memref<2x1x128xf32, #tpu.memory_space<vmem>>, vector<1x1x128xf32>
    %370 = vector.shape_cast %369 : vector<1x1x128xf32> to vector<1x128xf32>
    %371 = vector.broadcast %370 : vector<1x128xf32> to vector<8x128xf32>
    %372 = arith.addf %368, %371 : vector<8x128xf32>
    %373 = arith.truncf %352 : vector<8x128xf32> to vector<8x128xbf16>
    %c1_279 = arith.constant 1 : index
    %c0_280 = arith.constant 0 : index
    %c0_281 = arith.constant 0 : index
    %374 = vector.load %arg4[%c1_279, %c0_280, %c0_281] : memref<2x128x128xbf16, #tpu.memory_space<vmem>>, vector<1x128x128xbf16>
    %375 = vector.shape_cast %374 : vector<1x128x128xbf16> to vector<128x128xbf16>
    %cst_282 = arith.constant dense<0.000000e+00> : vector<8x128xf32>
    %376 = tpu.matmul %373, %375, %cst_282 {dimension_numbers = #tpu.dot_dimension_numbers<[1], [0], [0], [1], [0, 0, 1, 1], [], []>} : vector<8x128xbf16>, vector<128x128xbf16>, vector<8x128xf32> -> vector<8x128xf32>
    %377 = arith.addf %372, %376 : vector<8x128xf32>
    %378 = math.tanh %377 : vector<8x128xf32>
    %379 = arith.truncf %378 : vector<8x128xf32> to vector<8x128xbf16>
    %c13 = arith.constant 13 : index
    %c0_283 = arith.constant 0 : index
    %c0_284 = arith.constant 0 : index
    %380 = vector.load %arg10[%c13, %c0_283, %c0_284] : memref<16x128x128xbf16, #tpu.memory_space<vmem>>, vector<1x128x128xbf16>
    %381 = vector.shape_cast %380 : vector<1x128x128xbf16> to vector<128x128xbf16>
    %cst_285 = arith.constant dense<0.000000e+00> : vector<8x128xf32>
    %382 = tpu.matmul %379, %381, %cst_285 {dimension_numbers = #tpu.dot_dimension_numbers<[1], [0], [0], [1], [0, 0, 1, 1], [], []>} : vector<8x128xbf16>, vector<128x128xbf16>, vector<8x128xf32> -> vector<8x128xf32>
    %383 = arith.addf %357, %382 : vector<8x128xf32>
    %c120 = arith.constant 120 : index
    %c0_286 = arith.constant 0 : index
    %384 = vector.load %arg9[%c120, %c0_286] : memref<128x128xf32, #tpu.memory_space<vmem>>, vector<8x128xf32>
    %385 = arith.truncf %364 : vector<8x128xf32> to vector<8x128xbf16>
    %c0_287 = arith.constant 0 : index
    %c0_288 = arith.constant 0 : index
    %c0_289 = arith.constant 0 : index
    %386 = vector.load %arg4[%c0_287, %c0_288, %c0_289] : memref<2x128x128xbf16, #tpu.memory_space<vmem>>, vector<1x128x128xbf16>
    %387 = vector.shape_cast %386 : vector<1x128x128xbf16> to vector<128x128xbf16>
    %cst_290 = arith.constant dense<0.000000e+00> : vector<8x128xf32>
    %388 = tpu.matmul %385, %387, %cst_290 {dimension_numbers = #tpu.dot_dimension_numbers<[1], [0], [0], [1], [0, 0, 1, 1], [], []>} : vector<8x128xbf16>, vector<128x128xbf16>, vector<8x128xf32> -> vector<8x128xf32>
    %389 = arith.addf %384, %388 : vector<8x128xf32>
    %390 = math.tanh %389 : vector<8x128xf32>
    %391 = arith.truncf %364 : vector<8x128xf32> to vector<8x128xbf16>
    %c0_291 = arith.constant 0 : index
    %c0_292 = arith.constant 0 : index
    %c0_293 = arith.constant 0 : index
    %392 = vector.load %arg3[%c0_291, %c0_292, %c0_293] : memref<1x128x128xbf16, #tpu.memory_space<vmem>>, vector<1x128x128xbf16>
    %393 = vector.shape_cast %392 : vector<1x128x128xbf16> to vector<128x128xbf16>
    %cst_294 = arith.constant dense<0.000000e+00> : vector<8x128xf32>
    %394 = tpu.matmul %391, %393, %cst_294 {dimension_numbers = #tpu.dot_dimension_numbers<[1], [0], [0], [1], [0, 0, 1, 1], [], []>} : vector<8x128xbf16>, vector<128x128xbf16>, vector<8x128xf32> -> vector<8x128xf32>
    %c1_295 = arith.constant 1 : index
    %c0_296 = arith.constant 0 : index
    %c0_297 = arith.constant 0 : index
    %395 = vector.load %arg5[%c1_295, %c0_296, %c0_297] : memref<2x1x128xf32, #tpu.memory_space<vmem>>, vector<1x1x128xf32>
    %396 = vector.shape_cast %395 : vector<1x1x128xf32> to vector<1x128xf32>
    %397 = vector.broadcast %396 : vector<1x128xf32> to vector<8x128xf32>
    %398 = arith.addf %394, %397 : vector<8x128xf32>
    %399 = arith.truncf %378 : vector<8x128xf32> to vector<8x128xbf16>
    %c1_298 = arith.constant 1 : index
    %c0_299 = arith.constant 0 : index
    %c0_300 = arith.constant 0 : index
    %400 = vector.load %arg4[%c1_298, %c0_299, %c0_300] : memref<2x128x128xbf16, #tpu.memory_space<vmem>>, vector<1x128x128xbf16>
    %401 = vector.shape_cast %400 : vector<1x128x128xbf16> to vector<128x128xbf16>
    %cst_301 = arith.constant dense<0.000000e+00> : vector<8x128xf32>
    %402 = tpu.matmul %399, %401, %cst_301 {dimension_numbers = #tpu.dot_dimension_numbers<[1], [0], [0], [1], [0, 0, 1, 1], [], []>} : vector<8x128xbf16>, vector<128x128xbf16>, vector<8x128xf32> -> vector<8x128xf32>
    %403 = arith.addf %398, %402 : vector<8x128xf32>
    %404 = math.tanh %403 : vector<8x128xf32>
    %405 = arith.truncf %404 : vector<8x128xf32> to vector<8x128xbf16>
    %c14 = arith.constant 14 : index
    %c0_302 = arith.constant 0 : index
    %c0_303 = arith.constant 0 : index
    %406 = vector.load %arg10[%c14, %c0_302, %c0_303] : memref<16x128x128xbf16, #tpu.memory_space<vmem>>, vector<1x128x128xbf16>
    %407 = vector.shape_cast %406 : vector<1x128x128xbf16> to vector<128x128xbf16>
    %cst_304 = arith.constant dense<0.000000e+00> : vector<8x128xf32>
    %408 = tpu.matmul %405, %407, %cst_304 {dimension_numbers = #tpu.dot_dimension_numbers<[1], [0], [0], [1], [0, 0, 1, 1], [], []>} : vector<8x128xbf16>, vector<128x128xbf16>, vector<8x128xf32> -> vector<8x128xf32>
    %409 = arith.addf %383, %408 : vector<8x128xf32>
    %410 = arith.truncf %390 : vector<8x128xf32> to vector<8x128xbf16>
    %c0_305 = arith.constant 0 : index
    %c0_306 = arith.constant 0 : index
    %c0_307 = arith.constant 0 : index
    %411 = vector.load %arg3[%c0_305, %c0_306, %c0_307] : memref<1x128x128xbf16, #tpu.memory_space<vmem>>, vector<1x128x128xbf16>
    %412 = vector.shape_cast %411 : vector<1x128x128xbf16> to vector<128x128xbf16>
    %cst_308 = arith.constant dense<0.000000e+00> : vector<8x128xf32>
    %413 = tpu.matmul %410, %412, %cst_308 {dimension_numbers = #tpu.dot_dimension_numbers<[1], [0], [0], [1], [0, 0, 1, 1], [], []>} : vector<8x128xbf16>, vector<128x128xbf16>, vector<8x128xf32> -> vector<8x128xf32>
    %c1_309 = arith.constant 1 : index
    %c0_310 = arith.constant 0 : index
    %c0_311 = arith.constant 0 : index
    %414 = vector.load %arg5[%c1_309, %c0_310, %c0_311] : memref<2x1x128xf32, #tpu.memory_space<vmem>>, vector<1x1x128xf32>
    %415 = vector.shape_cast %414 : vector<1x1x128xf32> to vector<1x128xf32>
    %416 = vector.broadcast %415 : vector<1x128xf32> to vector<8x128xf32>
    %417 = arith.addf %413, %416 : vector<8x128xf32>
    %418 = arith.truncf %404 : vector<8x128xf32> to vector<8x128xbf16>
    %c1_312 = arith.constant 1 : index
    %c0_313 = arith.constant 0 : index
    %c0_314 = arith.constant 0 : index
    %419 = vector.load %arg4[%c1_312, %c0_313, %c0_314] : memref<2x128x128xbf16, #tpu.memory_space<vmem>>, vector<1x128x128xbf16>
    %420 = vector.shape_cast %419 : vector<1x128x128xbf16> to vector<128x128xbf16>
    %cst_315 = arith.constant dense<0.000000e+00> : vector<8x128xf32>
    %421 = tpu.matmul %418, %420, %cst_315 {dimension_numbers = #tpu.dot_dimension_numbers<[1], [0], [0], [1], [0, 0, 1, 1], [], []>} : vector<8x128xbf16>, vector<128x128xbf16>, vector<8x128xf32> -> vector<8x128xf32>
    %422 = arith.addf %417, %421 : vector<8x128xf32>
    %423 = math.tanh %422 : vector<8x128xf32>
    %424 = arith.truncf %423 : vector<8x128xf32> to vector<8x128xbf16>
    %c15 = arith.constant 15 : index
    %c0_316 = arith.constant 0 : index
    %c0_317 = arith.constant 0 : index
    %425 = vector.load %arg10[%c15, %c0_316, %c0_317] : memref<16x128x128xbf16, #tpu.memory_space<vmem>>, vector<1x128x128xbf16>
    %426 = vector.shape_cast %425 : vector<1x128x128xbf16> to vector<128x128xbf16>
    %cst_318 = arith.constant dense<0.000000e+00> : vector<8x128xf32>
    %427 = tpu.matmul %424, %426, %cst_318 {dimension_numbers = #tpu.dot_dimension_numbers<[1], [0], [0], [1], [0, 0, 1, 1], [], []>} : vector<8x128xbf16>, vector<128x128xbf16>, vector<8x128xf32> -> vector<8x128xf32>
    %428 = arith.addf %409, %427 : vector<8x128xf32>
    %c0_319 = arith.constant 0 : index
    %c0_320 = arith.constant 0 : index
    %429 = vector.load %arg7[%c0_319, %c0_320] : memref<1x128xf32, #tpu.memory_space<vmem>>, vector<1x128xf32>
    %430 = vector.broadcast %429 : vector<1x128xf32> to vector<8x128xf32>
    %431 = arith.addf %428, %430 : vector<8x128xf32>
    %c0_321 = arith.constant 0 : index
    %c0_322 = arith.constant 0 : index
    %432 = vector.load %arg8[%c0_321, %c0_322] : memref<8x128xf32, #tpu.memory_space<vmem>>, vector<8x128xf32>
    tpu.vector_store %arg8[%c0_321, %c0_322], %431 {strides = array<i32>} : memref<8x128xf32, #tpu.memory_space<vmem>>, vector<8x128xf32>,
    return
  }
  func.func @transform_0(%arg0: i32) -> (i32, i32, i32) {
    %c0_i32 = arith.constant 0 : i32
    %c0_i32_0 = arith.constant 0 : i32
    %c0_i32_1 = arith.constant 0 : i32
    return %c0_i32, %arg0, %c0_i32_0 : i32, i32, i32
  }
  func.func @transform_1(%arg0: i32) -> (i32, i32) {
    %c0_i32 = arith.constant 0 : i32
    %c0_i32_0 = arith.constant 0 : i32
    %c0_i32_1 = arith.constant 0 : i32
    return %c0_i32, %c0_i32_0 : i32, i32
  }
  func.func @transform_2(%arg0: i32) -> (i32, i32, i32) {
    %c0_i32 = arith.constant 0 : i32
    %c0_i32_0 = arith.constant 0 : i32
    %c0_i32_1 = arith.constant 0 : i32
    %c0_i32_2 = arith.constant 0 : i32
    return %c0_i32, %c0_i32_0, %c0_i32_1 : i32, i32, i32
  }
  func.func @transform_3(%arg0: i32) -> (i32, i32, i32) {
    %c0_i32 = arith.constant 0 : i32
    %c0_i32_0 = arith.constant 0 : i32
    %c0_i32_1 = arith.constant 0 : i32
    %c0_i32_2 = arith.constant 0 : i32
    return %c0_i32, %c0_i32_0, %c0_i32_1 : i32, i32, i32
  }
  func.func @transform_4(%arg0: i32) -> (i32, i32, i32) {
    %c0_i32 = arith.constant 0 : i32
    %c0_i32_0 = arith.constant 0 : i32
    %c0_i32_1 = arith.constant 0 : i32
    %c0_i32_2 = arith.constant 0 : i32
    return %c0_i32, %c0_i32_0, %c0_i32_1 : i32, i32, i32
  }
  func.func @transform_6(%arg0: i32) -> (i32, i32) {
    %c0_i32 = arith.constant 0 : i32
    %c0_i32_0 = arith.constant 0 : i32
    %c0_i32_1 = arith.constant 0 : i32
    return %c0_i32, %c0_i32_0 : i32, i32
  }
  func.func @transform_7(%arg0: i32) -> (i32, i32) {
    %c0_i32 = arith.constant 0 : i32
    %c0_i32_0 = arith.constant 0 : i32
    return %arg0, %c0_i32 : i32, i32
  }
}

</mosaic_0001>

<bundles_post_ra>
// kernel: tpu_custom_call.1
= control target key start
LH: loop header
LB: loop body
LE: loop exit
PB: predicated region body
PF: predicated region fallthrough
CT: control target
= control target key end

     0   :  { %12 = vsyncpa [#allocation6], 0  ;;  %s8453_s0 = inlined_call_operand.hbm [shape: f32[16,8,128], index: 0, kind: input, shape index: {}]   ;;  %s8454_s1 = inlined_call_operand.hbm [shape: bf16[128,128], index: 1, kind: input, shape index: {}]   ;;  %s8455_s2 = inlined_call_operand.hbm [shape: bf16[1,128,128], index: 2, kind: input, shape index: {}]   ;;  %s8456_s3 = inlined_call_operand.hbm [shape: bf16[2,128,128], index: 3, kind: input, shape index: {}]   ;;  %s8457_s4 = inlined_call_operand.vmem [shape: f32[2,1,128], index: 4, kind: input, shape index: {}]   ;;  %s8458_s5 = inlined_call_operand.hbm [shape: bf16[16,128,128], index: 5, kind: input, shape index: {}]   ;;  %s8459_s6 = inlined_call_operand.vmem [shape: f32[1,128], index: 6, kind: input, shape index: {}]   ;;  %s8460_s7 = inlined_call_operand.hbm [shape: f32[8,128], index: 7, kind: output, shape index: {}]  }
   0x1   :  { %13 = vsyncpa [#allocation9], 0 }
   0x2   :  { %14 = vsyncpa [#allocation12], 0 }
   0x3   :  { %15 = vsyncpa [#allocation7], 0  ;;  %s7020_s24 = smov [#allocation8]  }
   0x4   :  { %s33_s25 = sshll.u32 %s7020_s24, 4  ;;  %s34_s25 = int_to_ptr.vmem [resolvable:$true] %s33_s25 }
   0x5   :  { %s6898_s26 = scalar_lea.vmem %s34_s25, 1024  ;;  %p6903_p1 = scmp.lt.s32.totalorder %s34_s25, %s34_s25 }
   0x6   :  { %p6899_p0 = scmp.ne.s32.totalorder %s34_s25, %s6898_s26  ;;  %p6904_p2 = scmp.lt.s32.totalorder %s6898_s26, %s6898_s26 }
   0x8   :  { %p6905_p3 = por %p6904_p2, %p6903_p1 }
   0xa   :  { %p6906_p4 = pnand %p6905_p3, %p6899_p0 }
   0xc   :  { %6909 = shalt.err (!%p6906_p4)
}
   0xd   :  { %s7021_s27 = smov 64   ;;  %s7022_s28 = smov 4  }
   0xe   :  { %39 = dma.hbm_to_vmem [thread:$0]  %s8454_s1, 1024, %s34_s25, [#allocation9], %s7021_s27, %s7021_s27, %s7022_s28  }
   0xf   :  { %s7023_s8 = smov [#allocation5]  }
  0x10   :  { %s21_s9 = sshll.u32 %s7023_s8, 4  ;;  %s22_s9 = int_to_ptr.vmem [resolvable:$true] %s21_s9 }
  0x11   :  { %s6918_s10 = scalar_lea.vmem %s22_s9, 2048  ;;  %p6923_p6 = scmp.lt.s32.totalorder %s22_s9, %s22_s9 }
  0x12   :  { %p6919_p5 = scmp.ne.s32.totalorder %s22_s9, %s6918_s10  ;;  %p6924_p7 = scmp.lt.s32.totalorder %s6918_s10, %s6918_s10 }
  0x14   :  { %p6925_p8 = por %p6924_p7, %p6923_p6 }
  0x16   :  { %p6926_p9 = pnand %p6925_p8, %p6919_p5 }
  0x18   :  { %6929 = shalt.err (!%p6926_p9)
}
  0x19   :  { %s7024_s11 = smov 128   ;;  %s7025_s12 = smov 8  }
  0x1a   :  { %27 = dma.hbm_to_vmem [thread:$0]  %s8453_s0, 2048, %s22_s9, [#allocation6], %s7024_s11, %s7024_s11, %s7025_s12  }
  0x1b   :  { %s7026_s15 = smov [#allocation10]   ;;  %s7027_s17 = smov [#allocation11]  }
  0x1c   :  { %s45_s16 = sshll.u32 %s7026_s15, 4  ;;  %s57_s1 = sshll.u32 %s7027_s17, 4  ;;  %s46_s16 = int_to_ptr.vmem [resolvable:$true] %s45_s16  ;;  %s58_s1 = int_to_ptr.vmem [resolvable:$true] %s57_s1 }
  0x1d   :  { %s6938_s18 = scalar_lea.vmem %s46_s16, 1024  ;;  %p6943_p11 = scmp.lt.s32.totalorder %s46_s16, %s46_s16 }
  0x1e   :  { %p6939_p10 = scmp.ne.s32.totalorder %s46_s16, %s6938_s18  ;;  %p6944_p12 = scmp.lt.s32.totalorder %s6938_s18, %s6938_s18 }
  0x20   :  { %p6945_p13 = por %p6944_p12, %p6943_p11 }
  0x22   :  { %p6946_p0 = pnand %p6945_p13, %p6939_p10 }
  0x24   :  { %6949 = shalt.err (!%p6946_p0)
}
  0x25   :  { %51 = dma.hbm_to_vmem [thread:$0]  %s8455_s2, 1024, %s46_s16, [#allocation9], %s7021_s27, %s7021_s27, %s7022_s28  }
  0x26   :  { %s6958_s0 = scalar_lea.vmem %s58_s1, 2048  ;;  %p6963_p2 = scmp.lt.s32.totalorder %s58_s1, %s58_s1 }
  0x27   :  { %p6959_p1 = scmp.ne.s32.totalorder %s58_s1, %s6958_s0  ;;  %p6964_p3 = scmp.lt.s32.totalorder %s6958_s0, %s6958_s0 }
  0x29   :  { %p6965_p4 = por %p6964_p3, %p6963_p2 }
  0x2b   :  { %p6966_p5 = pnand %p6965_p4, %p6959_p1 }
  0x2d   :  { %6969 = shalt.err (!%p6966_p5)
}
  0x2e   :  { %63 = dma.hbm_to_vmem [thread:$0]  %s8456_s3, 2048, %s58_s1, [#allocation12], %s7021_s27, %s7021_s27, %s7022_s28  }
  0x2f   :  { %7010 = dma.done.wait [#allocation6], 2048  }
  0x30   :  { %7011 = vsyncadd [#allocation6], 4294965248 }
  0x31   :  { %7012 = dma.done.wait [#allocation9], 2048  }
  0x32   :  { %7013 = vsyncadd [#allocation9], 4294965248 }
  0x33   :  { %7014 = dma.done.wait [#allocation12], 2048  }
  0x34   :  { %7015 = vsyncadd [#allocation12], 4294965248  ;;  %v7028_v0 = vmov 0.0   ;;  %vm7029_vm0 = vmmov 0   ;;  %v6570_v1 = vld [vmem:[#allocation8 + $0x38] sm:$0xff]   ;;  %v6572_v3 = vld [vmem:[#allocation8 + $0x30] sm:$0xff]  }
  0x35   :  { %5277 = vmatprep.subr.bf16.mxu1 %v7028_v0  ;;  %5293 = vmatprep.mubr.msk.bf16.mxu1 %vm7029_vm0, %v7028_v0  ;;  %v6571_v2 = vld [vmem:[#allocation11 + $0x38] sm:$0xff]   ;;  %v7097_v4 = vld [vmem:[#allocation11 + $0x30] sm:$0xff]   ;;  %v6574_v5 = vld [vmem:[#allocation8 + $0x28] sm:$0xff]   ;;  %v7030_v27 = vmov 0   ;;  %s7031_s23 = smov [#allocation3]  }
  0x36   :  { %5245 = vmatprep.subr.bf16.mxu0 %v6570_v1  ;;  %5278 = vmatpush3.bf16.msra.mxu1 %v6571_v2  ;;  %v7101_v6 = vld [vmem:[#allocation11 + $0x28] sm:$0xff]   ;;  %v6576_v7 = vld [vmem:[#allocation8 + $0x20] sm:$0xff]   ;;  %v6578_v9 = vld [vmem:[#allocation8 + $0x18] sm:$0xff]   ;;  %s88_s24 = sshll.u32 %s7031_s23, 4  ;;  %s89_s24 = int_to_ptr.vmem [resolvable:$true] %s88_s24 }
  0x37   :  { %5246 = vmatpush3.bf16.msra.mxu0 %v6570_v1  ;;  %5279 = vmatprep.subr.bf16.mxu1 %v7028_v0  ;;  %v6577_v8 = vld [vmem:[#allocation11 + $0x20] sm:$0xff]   ;;  %v6579_v10 = vld [vmem:[#allocation11 + $0x18] sm:$0xff]   ;;  %v6580_v11 = vld [vmem:[#allocation8 + $0x10] sm:$0xff]   ;;  %s6978_s25 = scalar_lea.vmem %s89_s24, 16384  ;;  %p6983_p7 = scmp.lt.s32.totalorder %s89_s24, %s89_s24 }
  0x38   :  { %5247 = vmatprep.subr.bf16.mxu0 %v6572_v3  ;;  %v92_v12 = vld [vmem:[#allocation5] sm:$0xff]  ;;  %v93_v13 = vld [vmem:[#allocation5 + $0x8] sm:$0xff]  ;;  %v6581_v15 = vld [vmem:[#allocation11 + $0x10] sm:$0xff]   ;;  %p6979_p6 = scmp.ne.s32.totalorder %s89_s24, %s6978_s25  ;;  %p6984_p8 = scmp.lt.s32.totalorder %s6978_s25, %s6978_s25 }
  0x39   :  { %v108_v14 = vpack.c.bf16 %v93_v13, %v92_v12  ;;  %v6582_v16 = vld [vmem:[#allocation8 + $0x8] sm:$0xff]   ;;  %v6584_v18 = vld [vmem:[#allocation8] sm:$0xff]   ;;  %v94_v20 = vld [vmem:[#allocation5 + $0x10] sm:$0xff] }
  0x3a   :  { %5280 = vmatpush3.bf16.msra.mxu1 %v7097_v4  ;;  %v6583_v17 = vld [vmem:[#allocation11 + $0x8] sm:$0xff]   ;;  %v6585_v19 = vld [vmem:[#allocation11] sm:$0xff]   ;;  %v95_v21 = vld [vmem:[#allocation5 + $0x18] sm:$0xff]  ;;  %p6985_p9 = por %p6984_p8, %p6983_p7 }
  0x3b   :  { %5248 = vmatpush3.bf16.msra.mxu0 %v6572_v3  ;;  %5281 = vmatprep.subr.bf16.mxu1 %v7028_v0  ;;  %v96_v22 = vld [vmem:[#allocation5 + $0x20] sm:$0xff]  ;;  %v97_v23 = vld [vmem:[#allocation5 + $0x28] sm:$0xff]  ;;  %v109_v24 = vpack.c.bf16 %v95_v21, %v94_v20  ;;  %v6586_v26 = vld [vmem:[#allocation10 + $0x38] sm:$0xff]  }
  0x3c   :  { %5249 = vmatprep.subr.bf16.mxu0 %v6574_v5  ;;  %5261 = vmatprep.mubr.bf16.mxu0 %v108_v14  ;;  %v110_v25 = vpack.c.bf16 %v97_v23, %v96_v22  ;;  %v98_v28 = vld [vmem:[#allocation5 + $0x30] sm:$0xff]  ;;  %v99_v29 = vld [vmem:[#allocation5 + $0x38] sm:$0xff]  ;;  %v100_v32 = vld [vmem:[#allocation5 + $0x40] sm:$0xff]  ;;  %p6986_p10 = pnand %p6985_p9, %p6979_p6 }
  0x3d   :  { %v6587_v30 = vld [vmem:[#allocation10 + $0x30] sm:$0xff]   ;;  %v111_v31 = vpack.c.bf16 %v99_v29, %v98_v28  ;;  %v101_v33 = vld [vmem:[#allocation5 + $0x48] sm:$0xff]  ;;  %v103_v37 = vld [vmem:[#allocation5 + $0x58] sm:$0xff] }
  0x3e   :  { %5282 = vmatpush3.bf16.msra.mxu1 %v7101_v6  ;;  %v112_v34 = vpack.c.bf16 %v101_v33, %v100_v32  ;;  %v6588_v35 = vld [vmem:[#allocation10 + $0x28] sm:$0xff]   ;;  %v102_v36 = vld [vmem:[#allocation5 + $0x50] sm:$0xff]  ;;  %v6589_v39 = vld [vmem:[#allocation10 + $0x20] sm:$0xff]  }
  0x3f   :  { %5250 = vmatpush3.bf16.msra.mxu0 %v6574_v5  ;;  %5283 = vmatprep.subr.bf16.mxu1 %v7028_v0  ;;  %v113_v38 = vpack.c.bf16 %v103_v37, %v102_v36  ;;  %v104_v40 = vld [vmem:[#allocation5 + $0x60] sm:$0xff]  ;;  %v105_v41 = vld [vmem:[#allocation5 + $0x68] sm:$0xff]  ;;  %v6590_v43 = vld [vmem:[#allocation10 + $0x18] sm:$0xff]  }
  0x40   :  { %5251 = vmatprep.subr.bf16.mxu0 %v6576_v7  ;;  %v114_v42 = vpack.c.bf16 %v105_v41, %v104_v40  ;;  %v106_v44 = vld [vmem:[#allocation5 + $0x70] sm:$0xff]  ;;  %v107_v45 = vld [vmem:[#allocation5 + $0x78] sm:$0xff]  ;;  %v6592_v48 = vld [vmem:[#allocation10 + $0x8] sm:$0xff]  }
  0x41   :  { %v115_v46 = vpack.c.bf16 %v107_v45, %v106_v44  ;;  %v6591_v47 = vld [vmem:[#allocation10 + $0x10] sm:$0xff]   ;;  %v6593_v49 = vld [vmem:[#allocation10] sm:$0xff]   ;;  %v6596_v12 = vld [vmem:[#allocation11 + $0x68] sm:$0xff]  }
  0x42   :  { %5284 = vmatpush3.bf16.msra.mxu1 %v6577_v8  ;;  %v7137_v50 = vld [vmem:[%s8457_s4] ss:$0 sm:$0xff]  ;;  %v6598_v14 = vld [vmem:[#allocation11 + $0x58] sm:$0xff]  }
  0x43   :  { %5252 = vmatpush3.bf16.msra.mxu0 %v6576_v7  ;;  %5285 = vmatprep.subr.bf16.mxu1 %v7028_v0  ;;  %v6597_v13 = vld [vmem:[#allocation11 + $0x60] sm:$0xff]  }
  0x44   :  { %5253 = vmatprep.subr.bf16.mxu0 %v6578_v9 }
  0x46   :  { %5286 = vmatpush3.bf16.msra.mxu1 %v6579_v10 }
  0x47   :  { %5254 = vmatpush3.bf16.msra.mxu0 %v6578_v9  ;;  %5287 = vmatprep.subr.bf16.mxu1 %v7028_v0  ;;  %v6594_v9 = vld [vmem:[#allocation11 + $0x78] sm:$0xff]  }
  0x48   :  { %5255 = vmatprep.subr.bf16.mxu0 %v6580_v11 }
  0x4a   :  { %5288 = vmatpush3.bf16.msra.mxu1 %v6581_v15 }
  0x4b   :  { %5256 = vmatpush3.bf16.msra.mxu0 %v6580_v11  ;;  %5289 = vmatprep.subr.bf16.mxu1 %v7028_v0  ;;  %v6595_v11 = vld [vmem:[#allocation11 + $0x70] sm:$0xff]  }
  0x4c   :  { %5257 = vmatprep.subr.bf16.mxu0 %v6582_v16 }
  0x4e   :  { %5290 = vmatpush3.bf16.msra.mxu1 %v6583_v17 }
  0x4f   :  { %5258 = vmatpush3.bf16.msra.mxu0 %v6582_v16  ;;  %5291 = vmatprep.subr.bf16.mxu1 %v7028_v0  ;;  %v6600_v16 = vld [vmem:[#allocation11 + $0x48] sm:$0xff]  }
  0x50   :  { %5259 = vmatprep.subr.bf16.mxu0 %v6584_v18 }
  0x52   :  { %5292 = vmatpush3.bf16.msra.mxu1 %v6585_v19 }
  0x53   :  { %5260 = vmatpush3.bf16.msra.mxu0 %v6584_v18  ;;  %5317 = vmatprep.subr.bf16.mxu1 %v7028_v0 }
  0x54   :  { %5297 = vmatprep.subr.bf16.mxu0 %v7028_v0 }
  0x55   :  { %5294 = vmatmul.mubr.bf16.vlgmr.msra.gmra.mxu1 %v7030_v27 }
  0x56   :  { %5262 = vmatmul.mubr.bf16.vlgmr.msra.gmra.mxu0 %v109_v24  ;;  %5318 = vmatpush3.bf16.msra.mxu1 %v6586_v26 }
  0x57   :  { %5298 = vmatpush3.bf16.msra.mxu0 %v6571_v2  ;;  %5265 = vmatprep.mubr.bf16.mxu0 %v110_v25 }
  0x58   :  { %5299 = vmatprep.subr.bf16.mxu0 %v7028_v0  ;;  %5319 = vmatprep.subr.bf16.mxu1 %v7028_v0 }
  0x59   :  { %5333 = vmatprep.mubr.msk.bf16.mxu1 %vm7029_vm0, %v7028_v0 }
  0x5a   :  { %5320 = vmatpush3.bf16.msra.mxu1 %v6587_v30 }
  0x5b   :  { %5300 = vmatpush3.bf16.msra.mxu0 %v7097_v4  ;;  %5321 = vmatprep.subr.bf16.mxu1 %v7028_v0 }
  0x5c   :  { %5301 = vmatprep.subr.bf16.mxu0 %v7028_v0 }
  0x5e   :  { %5266 = vmatmul.mubr.bf16.gmra.mxu0 %v111_v31  ;;  %5322 = vmatpush3.bf16.msra.mxu1 %v6588_v35 }
  0x5f   :  { %5302 = vmatpush3.bf16.msra.mxu0 %v7101_v6  ;;  %5269 = vmatprep.mubr.bf16.mxu0 %v112_v34 }
  0x60   :  { %5303 = vmatprep.subr.bf16.mxu0 %v7028_v0  ;;  %5323 = vmatprep.subr.bf16.mxu1 %v7028_v0 }
  0x62   :  { %5324 = vmatpush3.bf16.msra.mxu1 %v6589_v39 }
  0x63   :  { %5304 = vmatpush3.bf16.msra.mxu0 %v6577_v8  ;;  %5325 = vmatprep.subr.bf16.mxu1 %v7028_v0 }
  0x64   :  { %5305 = vmatprep.subr.bf16.mxu0 %v7028_v0 }
  0x66   :  { %5270 = vmatmul.mubr.bf16.gmra.mxu0 %v113_v38  ;;  %5326 = vmatpush3.bf16.msra.mxu1 %v6590_v43 }
  0x67   :  { %5306 = vmatpush3.bf16.msra.mxu0 %v6579_v10  ;;  %5273 = vmatprep.mubr.bf16.mxu0 %v114_v42 }
  0x68   :  { %5307 = vmatprep.subr.bf16.mxu0 %v7028_v0  ;;  %5327 = vmatprep.subr.bf16.mxu1 %v7028_v0 }
  0x6a   :  { %5328 = vmatpush3.bf16.msra.mxu1 %v6591_v47 }
  0x6b   :  { %5308 = vmatpush3.bf16.msra.mxu0 %v6581_v15  ;;  %5329 = vmatprep.subr.bf16.mxu1 %v7028_v0  ;;  %v6599_v15 = vld [vmem:[#allocation11 + $0x50] sm:$0xff]  }
  0x6c   :  { %5309 = vmatprep.subr.bf16.mxu0 %v7028_v0 }
  0x6e   :  { %5274 = vmatmul.mubr.bf16.gmra.mxu0 %v115_v46  ;;  %5330 = vmatpush3.bf16.msra.mxu1 %v6592_v48 }
  0x6f   :  { %5310 = vmatpush3.bf16.msra.mxu0 %v6583_v17  ;;  %5313 = vmatprep.mubr.msk.bf16.mxu0 %vm7029_vm0, %v7028_v0  ;;  %v6601_v17 = vld [vmem:[#allocation11 + $0x40] sm:$0xff]  }
  0x70   :  { %5311 = vmatprep.subr.bf16.mxu0 %v7028_v0  ;;  %5331 = vmatprep.subr.bf16.mxu1 %v7028_v0 }
  0x72   :  { %5332 = vmatpush3.bf16.msra.mxu1 %v6593_v49 }
  0x73   :  { %5312 = vmatpush3.bf16.msra.mxu0 %v6585_v19 }
  0x74   :  { %5337 = vmatprep.subr.bf16.mxu0 %v7028_v0 }
 0x115   :  { %v399_v51 = vpop.f32.mrf.mxu1 }
 0x116   :  { %v5263_v52 = vpop.f32.mrf.mxu0 }
 0x117   :  { %v7140_v53 = vadd.f32 %v5263_v52, %v7137_v50  ;;  %v5295_v54 = vpop.f32.mrf.mxu1 }
 0x118   :  { %v221_v55 = vpop.f32.mrf.mxu0 }
 0x119   :  { %v222_v56 = vadd.f32 %v7137_v50, %v221_v55  ;;  %v402_v57 = vpop.f32.mrf.mxu1 }
 0x11a   :  { %v5264_v58 = vpop.f32.mrf.mxu0 }
 0x11b   :  { %v405_v59 = vadd.f32 %v399_v51, %v222_v56  ;;  %v7144_v60 = vadd.f32 %v5264_v58, %v7137_v50  ;;  %v5296_v61 = vpop.f32.mrf.mxu1 }
 0x11c   :  { %v7146_v62 = vpop.f32.mrf.mxu0 }
 0x11d   :  { %6602 = vtanh.f32 %v405_v59 }
 0x11e   :  { %v5267_v63 = vpop.f32.mrf.mxu0 }
 0x11f   :  { %v7149_v1 = vadd.f32 %v5267_v63, %v7137_v50 }
 0x120   :  { %v237_v2 = vpop.f32.mrf.mxu0 }
 0x121   :  { %v7152_v3 = vadd.f32 %v7137_v50, %v237_v2 }
 0x122   :  { %v5268_v4 = vpop.f32.mrf.mxu0 }
 0x123   :  { %v7155_v5 = vadd.f32 %v5268_v4, %v7137_v50 }
 0x124   :  { %v240_v6 = vpop.f32.mrf.mxu0 }
 0x125   :  { %v7158_v7 = vadd.f32 %v7137_v50, %v240_v6 }
 0x126   :  { %v5271_v18 = vpop.f32.mrf.mxu0 }
 0x127   :  { %v7171_v19 = vadd.f32 %v5271_v18, %v7137_v50 }
 0x128   :  { %v253_v20 = vpop.f32.mrf.mxu0 }
 0x129   :  { %v7174_v21 = vadd.f32 %v7137_v50, %v253_v20 }
 0x12a   :  { %v6603_v8 = vpop.eup %6602  ;;  %v5272_v22 = vpop.f32.mrf.mxu0 }
 0x12b   :  { %v408_v10 = vpack.c.bf16 %v6603_v8, %v6603_v8  ;;  %v7177_v23 = vadd.f32 %v5272_v22, %v7137_v50 }
 0x12c   :  { %v256_v24 = vpop.f32.mrf.mxu0 }
 0x12d   :  { %5314 = vmatmul.mubr.bf16.vlgmr.msra.gmra.mxu0 %v408_v10  ;;  %5334 = vmatmul.mubr.bf16.vlgmr.msra.gmra.mxu1 %v408_v10  ;;  %v7180_v25 = vadd.f32 %v7137_v50, %v256_v24 }
 0x12e   :  { %5338 = vmatpush3.bf16.msra.mxu0 %v6594_v9  ;;  %5353 = vmatprep.mubr.msk.bf16.mxu0 %vm7029_vm0, %v7028_v0  ;;  %v5275_v26 = vpop.f32.mrf.mxu0 }
 0x12f   :  { %5339 = vmatprep.subr.bf16.mxu0 %v7028_v0  ;;  %v7183_v28 = vadd.f32 %v5275_v26, %v7137_v50 }
 0x132   :  { %5340 = vmatpush3.bf16.msra.mxu0 %v6595_v11 }
 0x133   :  { %5341 = vmatprep.subr.bf16.mxu0 %v7028_v0 }
 0x136   :  { %5342 = vmatpush3.bf16.msra.mxu0 %v6596_v12 }
 0x137   :  { %5343 = vmatprep.subr.bf16.mxu0 %v7028_v0 }
 0x13a   :  { %5344 = vmatpush3.bf16.msra.mxu0 %v6597_v13 }
 0x13b   :  { %5345 = vmatprep.subr.bf16.mxu0 %v7028_v0 }
 0x13e   :  { %5346 = vmatpush3.bf16.msra.mxu0 %v6598_v14 }
 0x13f   :  { %5347 = vmatprep.subr.bf16.mxu0 %v7028_v0 }
 0x142   :  { %5348 = vmatpush3.bf16.msra.mxu0 %v6599_v15 }
 0x143   :  { %5349 = vmatprep.subr.bf16.mxu0 %v7028_v0 }
 0x146   :  { %5350 = vmatpush3.bf16.msra.mxu0 %v6600_v16 }
 0x147   :  { %5351 = vmatprep.subr.bf16.mxu0 %v7028_v0 }
 0x14a   :  { %5352 = vmatpush3.bf16.msra.mxu0 %v6601_v17 }
 0x14d   :  { %5354 = vmatmul.mubr.bf16.vlgmr.msra.gmra.mxu0 %v7030_v27  ;;  %v269_v27 = vpop.f32.mrf.mxu0 }
 0x14e   :  { %v7186_v29 = vadd.f32 %v7137_v50, %v269_v27 }
 0x14f   :  { %v5276_v30 = vpop.f32.mrf.mxu0 }
 0x150   :  { %v7189_v31 = vadd.f32 %v5276_v30, %v7137_v50 }
 0x151   :  { %v272_v32 = vpop.f32.mrf.mxu0 }
 0x152   :  { %v7192_v33 = vadd.f32 %v7137_v50, %v272_v32 }
 0x153   :  { %6989 = shalt.err (!%p6986_p10)  }
 0x154   :  { %91 = dma.hbm_to_vmem [thread:$0]  %s8458_s5, 16384, %s89_s24, [#allocation4]  ;;  %v225_v34 = vadd.f32 %v7137_v50, %v7146_v62  ;;  %v4480_v45 = vld [vmem:[%s8457_s4 + $0x1] ss:$0 sm:$0xff] }
 0x1ed   :  { %v443_v35 = vpop.f32.mrf.mxu0  ;;  %v557_v36 = vpop.f32.mrf.mxu1 }
 0x1ee   :  { %v449_v37 = vadd.f32 %v443_v35, %v225_v34  ;;  %v558_v46 = vadd.f32 %v4480_v45, %v557_v36 }
 0x1ef   :  { %v5315_v38 = vpop.f32.mrf.mxu0  ;;  %v5335_v39 = vpop.f32.mrf.mxu1 }
 0x1f0   :  { %6604 = vtanh.f32 %v449_v37 }
 0x1f1   :  { %v446_v40 = vpop.f32.mrf.mxu0  ;;  %v560_v41 = vpop.f32.mrf.mxu1 }
 0x1f3   :  { %v5316_v42 = vpop.f32.mrf.mxu0  ;;  %v5336_v43 = vpop.f32.mrf.mxu1 }
 0x1fd   :  { %v6605_v44 = vpop.eup %6604 }
 0x20d   :  { %v662_v47 = vpop.f32.mrf.mxu0 }
 0x20e   :  { %v668_v48 = vadd.f32 %v662_v47, %v558_v46 }
 0x20f   :  { %v5355_v49 = vpop.f32.mrf.mxu0 }
 0x210   :  { %6606 = vtanh.f32 %v668_v48 }
 0x211   :  { %v665_v50 = vpop.f32.mrf.mxu0 }
 0x213   :  { %v5356_v51 = vpop.f32.mrf.mxu0 }
 0x21d   :  { %v7202_v52 = vpop.eup %6606 }
 0x21e   :  { %7016 = dma.done.wait [#allocation4], 16384 }
 0x21f   :  { %7017 = vsyncadd [#allocation4], 4294950912  ;;  %5357 = vmatprep.subr.bf16.mxu1 %v7028_v0  ;;  %5377 = vmatprep.subr.bf16.mxu0 %v7028_v0  ;;  %v7210_v54 = vld [vmem:[#allocation11 + $0x38] sm:$0xff]   ;;  %v7213_v55 = vld [vmem:[#allocation11 + $0x30] sm:$0xff]   ;;  %v693_v10 = vpack.c.bf16 %v6605_v44, %v6605_v44  ;;  %v675_v26 = vpack.c.bf16 %v7202_v52, %v7202_v52  ;;  %s7032_s13 = smov [#allocation13]  }
 0x220   :  { %5373 = vmatprep.mubr.msk.bf16.mxu1 %vm7029_vm0, %v7028_v0  ;;  %5393 = vmatprep.mubr.msk.bf16.mxu0 %vm7029_vm0, %v7028_v0  ;;  %v7217_v56 = vld [vmem:[#allocation11 + $0x28] sm:$0xff]   ;;  %v7220_v57 = vld [vmem:[#allocation10 + $0x38] sm:$0xff]   ;;  %v7223_v58 = vld [vmem:[#allocation10 + $0x30] sm:$0xff]   ;;  %s4445_s14 = sshll.u32 %s7032_s13, 4  ;;  %s4446_s14 = int_to_ptr.vmem [resolvable:$true] %s4445_s14 }
 0x221   :  { %5358 = vmatpush3.bf16.msra.mxu1 %v7210_v54  ;;  %5378 = vmatpush3.bf16.msra.mxu0 %v7220_v57  ;;  %v7226_v59 = vld [vmem:[#allocation11 + $0x20] sm:$0xff]   ;;  %v7231_v61 = vld [vmem:[#allocation10 + $0x28] sm:$0xff]   ;;  %v7234_v62 = vld [vmem:[#allocation11 + $0x18] sm:$0xff]   ;;  %s6990_s15 = scalar_lea.vmem %s4446_s14, 128  ;;  %p6995_p12 = scmp.lt.s32.totalorder %s4446_s14, %s4446_s14 }
 0x222   :  { %5359 = vmatprep.subr.bf16.mxu1 %v7028_v0  ;;  %5379 = vmatprep.subr.bf16.mxu0 %v7028_v0  ;;  %v7239_v63 = vld [vmem:[#allocation10 + $0x20] sm:$0xff]   ;;  %v7242_v2 = vld [vmem:[#allocation11 + $0x10] sm:$0xff]   ;;  %v7247_v4 = vld [vmem:[#allocation10 + $0x18] sm:$0xff]   ;;  %p6991_p11 = scmp.ne.s32.totalorder %s4446_s14, %s6990_s15  ;;  %p6996_p13 = scmp.lt.s32.totalorder %s6990_s15, %s6990_s15 }
 0x223   :  { %v7250_v6 = vld [vmem:[#allocation11 + $0x8] sm:$0xff]   ;;  %v7255_v8 = vld [vmem:[#allocation10 + $0x10] sm:$0xff]   ;;  %v7258_v9 = vld [vmem:[#allocation11] sm:$0xff]  }
 0x224   :  { %v7263_v11 = vld [vmem:[#allocation10 + $0x8] sm:$0xff]   ;;  %v7266_v12 = vld [vmem:[#allocation11 + $0x78] sm:$0xff]   ;;  %v7270_v13 = vld [vmem:[#allocation10] sm:$0xff]   ;;  %p6997_p0 = por %p6996_p13, %p6995_p12 }
 0x225   :  { %5360 = vmatpush3.bf16.msra.mxu1 %v7213_v55  ;;  %5380 = vmatpush3.bf16.msra.mxu0 %v7223_v58  ;;  %v7272_v14 = vld [vmem:[#allocation11 + $0x70] sm:$0xff]   ;;  %v7280_v15 = vld [vmem:[#allocation11 + $0x68] sm:$0xff]   ;;  %v7286_v16 = vld [vmem:[#allocation11 + $0x60] sm:$0xff]  }
 0x226   :  { %5361 = vmatprep.subr.bf16.mxu1 %v7028_v0  ;;  %5381 = vmatprep.subr.bf16.mxu0 %v7028_v0  ;;  %v7292_v17 = vld [vmem:[#allocation11 + $0x58] sm:$0xff]   ;;  %v7296_v18 = vld [vmem:[#allocation11 + $0x50] sm:$0xff]   ;;  %v7300_v20 = vld [vmem:[#allocation11 + $0x48] sm:$0xff]   ;;  %p6998_p1 = pnand %p6997_p0, %p6991_p11 }
 0x227   :  { %v7304_v22 = vld [vmem:[#allocation11 + $0x40] sm:$0xff]   ;;  %v6632_v24 = vld [vmem:[#allocation3 + $0x38] sm:$0xff]   ;;  %v6633_v27 = vld [vmem:[#allocation3 + $0x30] sm:$0xff]  }
 0x228   :  { %v6634_v30 = vld [vmem:[#allocation3 + $0x28] sm:$0xff]   ;;  %v6635_v32 = vld [vmem:[#allocation3 + $0x20] sm:$0xff]   ;;  %v6636_v34 = vld [vmem:[#allocation3 + $0x18] sm:$0xff]  }
 0x229   :  { %5362 = vmatpush3.bf16.msra.mxu1 %v7217_v56  ;;  %5382 = vmatpush3.bf16.msra.mxu0 %v7231_v61  ;;  %v6637_v35 = vld [vmem:[#allocation3 + $0x10] sm:$0xff]   ;;  %v6638_v36 = vld [vmem:[#allocation3 + $0x8] sm:$0xff]   ;;  %v6639_v37 = vld [vmem:[#allocation3] sm:$0xff]  }
 0x22a   :  { %5363 = vmatprep.subr.bf16.mxu1 %v7028_v0  ;;  %5383 = vmatprep.subr.bf16.mxu0 %v7028_v0  ;;  %v6640_v38 = vld [vmem:[#allocation3 + $0x78] sm:$0xff]   ;;  %v6641_v39 = vld [vmem:[#allocation3 + $0x70] sm:$0xff]   ;;  %v6642_v40 = vld [vmem:[#allocation3 + $0x68] sm:$0xff]  }
 0x22b   :  { %v6643_v41 = vld [vmem:[#allocation3 + $0x60] sm:$0xff]   ;;  %v6644_v42 = vld [vmem:[#allocation3 + $0x58] sm:$0xff]   ;;  %v6645_v43 = vld [vmem:[#allocation3 + $0x50] sm:$0xff]  }
 0x22c   :  { %v6646_v44 = vld [vmem:[#allocation3 + $0x48] sm:$0xff]   ;;  %v6647_v45 = vld [vmem:[#allocation3 + $0x40] sm:$0xff]  }
 0x22d   :  { %5364 = vmatpush3.bf16.msra.mxu1 %v7226_v59  ;;  %5384 = vmatpush3.bf16.msra.mxu0 %v7239_v63 }
 0x22e   :  { %5365 = vmatprep.subr.bf16.mxu1 %v7028_v0  ;;  %5385 = vmatprep.subr.bf16.mxu0 %v7028_v0 }
 0x231   :  { %5366 = vmatpush3.bf16.msra.mxu1 %v7234_v62  ;;  %5386 = vmatpush3.bf16.msra.mxu0 %v7247_v4 }
 0x232   :  { %5367 = vmatprep.subr.bf16.mxu1 %v7028_v0  ;;  %5387 = vmatprep.subr.bf16.mxu0 %v7028_v0 }
 0x235   :  { %5368 = vmatpush3.bf16.msra.mxu1 %v7242_v2  ;;  %5388 = vmatpush3.bf16.msra.mxu0 %v7255_v8 }
 0x236   :  { %5369 = vmatprep.subr.bf16.mxu1 %v7028_v0  ;;  %5389 = vmatprep.subr.bf16.mxu0 %v7028_v0 }
 0x239   :  { %5370 = vmatpush3.bf16.msra.mxu1 %v7250_v6  ;;  %5390 = vmatpush3.bf16.msra.mxu0 %v7263_v11 }
 0x23a   :  { %5371 = vmatprep.subr.bf16.mxu1 %v7028_v0  ;;  %5391 = vmatprep.subr.bf16.mxu0 %v7028_v0 }
 0x23d   :  { %5372 = vmatpush3.bf16.msra.mxu1 %v7258_v9  ;;  %5392 = vmatpush3.bf16.msra.mxu0 %v7270_v13 }
 0x23e   :  { %5397 = vmatprep.subr.bf16.mxu1 %v7028_v0  ;;  %5417 = vmatprep.subr.bf16.mxu0 %v7028_v0 }
 0x240   :  { %5374 = vmatmul.mubr.bf16.vlgmr.msra.gmra.mxu1 %v693_v10  ;;  %5394 = vmatmul.mubr.bf16.vlgmr.msra.gmra.mxu0 %v693_v10 }
 0x241   :  { %5398 = vmatpush3.bf16.msra.mxu1 %v7266_v12  ;;  %5413 = vmatprep.mubr.msk.bf16.mxu1 %vm7029_vm0, %v7028_v0 }
 0x242   :  { %5399 = vmatprep.subr.bf16.mxu1 %v7028_v0  ;;  %5433 = vmatprep.mubr.msk.bf16.mxu0 %vm7029_vm0, %v7028_v0 }
 0x243   :  { %5418 = vmatpush3.bf16.msra.mxu0 %v6640_v38 }
 0x244   :  { %5419 = vmatprep.subr.bf16.mxu0 %v7028_v0 }
 0x245   :  { %5400 = vmatpush3.bf16.msra.mxu1 %v7272_v14 }
 0x246   :  { %5401 = vmatprep.subr.bf16.mxu1 %v7028_v0 }
 0x247   :  { %5420 = vmatpush3.bf16.msra.mxu0 %v6641_v39 }
 0x248   :  { %5421 = vmatprep.subr.bf16.mxu0 %v7028_v0 }
 0x249   :  { %5402 = vmatpush3.bf16.msra.mxu1 %v7280_v15 }
 0x24a   :  { %5403 = vmatprep.subr.bf16.mxu1 %v7028_v0 }
 0x24b   :  { %5422 = vmatpush3.bf16.msra.mxu0 %v6642_v40 }
 0x24c   :  { %5423 = vmatprep.subr.bf16.mxu0 %v7028_v0 }
 0x24d   :  { %5404 = vmatpush3.bf16.msra.mxu1 %v7286_v16 }
 0x24e   :  { %5405 = vmatprep.subr.bf16.mxu1 %v7028_v0 }
 0x24f   :  { %5424 = vmatpush3.bf16.msra.mxu0 %v6643_v41 }
 0x250   :  { %5425 = vmatprep.subr.bf16.mxu0 %v7028_v0 }
 0x251   :  { %5406 = vmatpush3.bf16.msra.mxu1 %v7292_v17 }
 0x252   :  { %5407 = vmatprep.subr.bf16.mxu1 %v7028_v0 }
 0x253   :  { %5426 = vmatpush3.bf16.msra.mxu0 %v6644_v42 }
 0x254   :  { %5427 = vmatprep.subr.bf16.mxu0 %v7028_v0 }
 0x255   :  { %5408 = vmatpush3.bf16.msra.mxu1 %v7296_v18 }
 0x256   :  { %5409 = vmatprep.subr.bf16.mxu1 %v7028_v0 }
 0x257   :  { %5428 = vmatpush3.bf16.msra.mxu0 %v6645_v43 }
 0x258   :  { %5429 = vmatprep.subr.bf16.mxu0 %v7028_v0 }
 0x259   :  { %5410 = vmatpush3.bf16.msra.mxu1 %v7300_v20 }
 0x25a   :  { %5411 = vmatprep.subr.bf16.mxu1 %v7028_v0 }
 0x25b   :  { %5430 = vmatpush3.bf16.msra.mxu0 %v6646_v44 }
 0x25c   :  { %5431 = vmatprep.subr.bf16.mxu0 %v7028_v0 }
 0x25d   :  { %5412 = vmatpush3.bf16.msra.mxu1 %v7304_v22 }
 0x25e   :  { %5437 = vmatprep.subr.bf16.mxu1 %v7028_v0 }
 0x25f   :  { %5432 = vmatpush3.bf16.msra.mxu0 %v6647_v45 }
 0x260   :  { %5414 = vmatmul.mubr.bf16.vlgmr.msra.gmra.mxu1 %v675_v26  ;;  %5457 = vmatprep.subr.bf16.mxu0 %v7028_v0 }
 0x261   :  { %5438 = vmatpush3.bf16.msra.mxu1 %v6632_v24  ;;  %5453 = vmatprep.mubr.msk.bf16.mxu1 %vm7029_vm0, %v7028_v0 }
 0x262   :  { %5439 = vmatprep.subr.bf16.mxu1 %v7028_v0 }
 0x265   :  { %5440 = vmatpush3.bf16.msra.mxu1 %v6633_v27 }
 0x266   :  { %5441 = vmatprep.subr.bf16.mxu1 %v7028_v0 }
 0x269   :  { %5442 = vmatpush3.bf16.msra.mxu1 %v6634_v30 }
 0x26a   :  { %5443 = vmatprep.subr.bf16.mxu1 %v7028_v0 }
 0x26d   :  { %5444 = vmatpush3.bf16.msra.mxu1 %v6635_v32 }
 0x26e   :  { %5445 = vmatprep.subr.bf16.mxu1 %v7028_v0 }
 0x271   :  { %5446 = vmatpush3.bf16.msra.mxu1 %v6636_v34 }
 0x272   :  { %5447 = vmatprep.subr.bf16.mxu1 %v7028_v0 }
 0x275   :  { %5448 = vmatpush3.bf16.msra.mxu1 %v6637_v35  ;;  %v7401_v35 = vld [vmem:[#allocation11 + $0x30] sm:$0xff]  }
 0x276   :  { %5449 = vmatprep.subr.bf16.mxu1 %v7028_v0 }
 0x279   :  { %5450 = vmatpush3.bf16.msra.mxu1 %v6638_v36  ;;  %v6654_v36 = vld [vmem:[#allocation3 + $0x88] sm:$0xff]  }
 0x27a   :  { %5451 = vmatprep.subr.bf16.mxu1 %v7028_v0 }
 0x27d   :  { %5452 = vmatpush3.bf16.msra.mxu1 %v6639_v37  ;;  %v6655_v37 = vld [vmem:[#allocation3 + $0x80] sm:$0xff]  }
 0x27e   :  { %5477 = vmatprep.subr.bf16.mxu1 %v7028_v0 }
 0x280   :  { %5454 = vmatmul.mubr.bf16.vlgmr.msra.gmra.mxu1 %v675_v26 }
 0x281   :  { %5478 = vmatpush3.bf16.msra.mxu1 %v7220_v57  ;;  %5493 = vmatprep.mubr.msk.bf16.mxu1 %vm7029_vm0, %v7028_v0 }
 0x282   :  { %5479 = vmatprep.subr.bf16.mxu1 %v7028_v0 }
 0x285   :  { %5480 = vmatpush3.bf16.msra.mxu1 %v7223_v58 }
 0x286   :  { %5481 = vmatprep.subr.bf16.mxu1 %v7028_v0 }
 0x289   :  { %5482 = vmatpush3.bf16.msra.mxu1 %v7231_v61 }
 0x28a   :  { %5483 = vmatprep.subr.bf16.mxu1 %v7028_v0 }
 0x28d   :  { %5484 = vmatpush3.bf16.msra.mxu1 %v7239_v63 }
 0x28e   :  { %5485 = vmatprep.subr.bf16.mxu1 %v7028_v0 }
 0x291   :  { %5486 = vmatpush3.bf16.msra.mxu1 %v7247_v4  ;;  %v7354_v4 = vld [vmem:[%s8457_s4 + $0x1] ss:$0 sm:$0xff] }
 0x292   :  { %5487 = vmatprep.subr.bf16.mxu1 %v7028_v0 }
 0x295   :  { %5488 = vmatpush3.bf16.msra.mxu1 %v7255_v8 }
 0x296   :  { %5489 = vmatprep.subr.bf16.mxu1 %v7028_v0 }
 0x299   :  { %5490 = vmatpush3.bf16.msra.mxu1 %v7263_v11 }
 0x29a   :  { %5491 = vmatprep.subr.bf16.mxu1 %v7028_v0 }
 0x29d   :  { %5492 = vmatpush3.bf16.msra.mxu1 %v7270_v13 }
 0x29e   :  { %5517 = vmatprep.subr.bf16.mxu1 %v7028_v0 }
 0x300   :  { %v792_v46 = vpop.f32.mrf.mxu1  ;;  %v905_v51 = vpop.f32.mrf.mxu0 }
 0x301   :  { %v798_v47 = vadd.f32 %v792_v46, %v7140_v53  ;;  %v906_v53 = vadd.f32 %v7354_v4, %v905_v51 }
 0x302   :  { %v5375_v48 = vpop.f32.mrf.mxu1  ;;  %v5395_v52 = vpop.f32.mrf.mxu0 }
 0x303   :  { %6760 = vtanh.f32 %v798_v47 }
 0x304   :  { %v795_v49 = vpop.f32.mrf.mxu1  ;;  %v908_v57 = vpop.f32.mrf.mxu0 }
 0x306   :  { %v5376_v50 = vpop.f32.mrf.mxu1  ;;  %v5396_v58 = vpop.f32.mrf.mxu0 }
 0x310   :  { %v6761_v61 = vpop.eup %6760 }
 0x311   :  { %v1212_v63 = vpack.c.bf16 %v6761_v61, %v6761_v61 }
 0x313   :  { %5494 = vmatmul.mubr.bf16.vlgmr.msra.gmra.mxu1 %v1212_v63 }
 0x314   :  { %5533 = vmatprep.mubr.msk.bf16.mxu1 %vm7029_vm0, %v7028_v0 }
 0x320   :  { %v1009_v8 = vpop.f32.mrf.mxu1 }
 0x321   :  { %v1015_v10 = vadd.f32 %v1009_v8, %v906_v53  ;;  %v7470_v53 = vld [vmem:[#allocation11 + $0x28] sm:$0xff]   ;;  %v7474_v8 = vld [vmem:[#allocation10 + $0x20] sm:$0xff]  }
 0x322   :  { %v5415_v11 = vpop.f32.mrf.mxu1 }
 0x323   :  { %6762 = vtanh.f32 %v1015_v10  ;;  %v7478_v10 = vld [vmem:[#allocation11 + $0x20] sm:$0xff]   ;;  %v7482_v11 = vld [vmem:[#allocation10 + $0x18] sm:$0xff]  }
 0x324   :  { %v1012_v13 = vpop.f32.mrf.mxu1 }
 0x325   :  { %v7486_v13 = vld [vmem:[#allocation11 + $0x18] sm:$0xff]  }
 0x326   :  { %v5416_v24 = vpop.f32.mrf.mxu1 }
 0x327   :  { %v7490_v24 = vld [vmem:[#allocation10 + $0x10] sm:$0xff]  }
 0x330   :  { %v6763_v26 = vpop.eup %6762 }
 0x331   :  { %v1017_v27 = vpack.c.bf16 %v6763_v26, %v6763_v26  ;;  %v7494_v26 = vld [vmem:[#allocation11 + $0x10] sm:$0xff]  }
 0x333   :  { %5434 = vmatmul.mubr.bf16.vlgmr.msra.gmra.mxu0 %v1017_v27 }
 0x334   :  { %5458 = vmatpush3.bf16.msra.mxu0 %v7210_v54  ;;  %5473 = vmatprep.mubr.msk.bf16.mxu0 %vm7029_vm0, %v7028_v0 }
 0x335   :  { %5459 = vmatprep.subr.bf16.mxu0 %v7028_v0 }
 0x338   :  { %5460 = vmatpush3.bf16.msra.mxu0 %v7213_v55  ;;  %v7395_v55 = vld [vmem:[#allocation11 + $0x38] sm:$0xff]  }
 0x339   :  { %5461 = vmatprep.subr.bf16.mxu0 %v7028_v0 }
 0x33c   :  { %5462 = vmatpush3.bf16.msra.mxu0 %v7217_v56 }
 0x33d   :  { %5463 = vmatprep.subr.bf16.mxu0 %v7028_v0 }
 0x340   :  { %5464 = vmatpush3.bf16.msra.mxu0 %v7226_v59  ;;  %v7366_v30 = vpop.f32.mrf.mxu1 }
 0x341   :  { %5465 = vmatprep.subr.bf16.mxu0 %v7028_v0 }
 0x342   :  { %v5455_v54 = vpop.f32.mrf.mxu1 }
 0x343   :  { %v7502_v54 = vld [vmem:[#allocation11 + $0x8] sm:$0xff]  }
 0x344   :  { %5466 = vmatpush3.bf16.msra.mxu0 %v7234_v62  ;;  %v1208_v32 = vpop.f32.mrf.mxu1 }
 0x345   :  { %5467 = vmatprep.subr.bf16.mxu0 %v7028_v0  ;;  %v7506_v32 = vld [vmem:[#allocation10] sm:$0xff]  }
 0x346   :  { %v5456_v34 = vpop.f32.mrf.mxu1 }
 0x347   :  { %v7509_v34 = vld [vmem:[#allocation11] sm:$0xff]  }
 0x348   :  { %5468 = vmatpush3.bf16.msra.mxu0 %v7242_v2 }
 0x349   :  { %5469 = vmatprep.subr.bf16.mxu0 %v7028_v0 }
 0x34c   :  { %5470 = vmatpush3.bf16.msra.mxu0 %v7250_v6 }
 0x34d   :  { %5471 = vmatprep.subr.bf16.mxu0 %v7028_v0 }
 0x350   :  { %5472 = vmatpush3.bf16.msra.mxu0 %v7258_v9 }
 0x351   :  { %5497 = vmatprep.subr.bf16.mxu0 %v7028_v0 }
 0x353   :  { %5474 = vmatmul.mubr.bf16.vlgmr.msra.gmra.mxu0 %v1212_v63  ;;  %v7466_v63 = vld [vmem:[#allocation10 + $0x28] sm:$0xff]  }
 0x354   :  { %5498 = vmatpush3.bf16.msra.mxu0 %v7266_v12  ;;  %5513 = vmatprep.mubr.msk.bf16.mxu0 %vm7029_vm0, %v7028_v0 }
 0x355   :  { %5499 = vmatprep.subr.bf16.mxu0 %v7028_v0 }
 0x358   :  { %5500 = vmatpush3.bf16.msra.mxu0 %v7272_v14 }
 0x359   :  { %5501 = vmatprep.subr.bf16.mxu0 %v7028_v0 }
 0x35c   :  { %5502 = vmatpush3.bf16.msra.mxu0 %v7280_v15 }
 0x35d   :  { %5503 = vmatprep.subr.bf16.mxu0 %v7028_v0 }
 0x360   :  { %5504 = vmatpush3.bf16.msra.mxu0 %v7286_v16 }
 0x361   :  { %5505 = vmatprep.subr.bf16.mxu0 %v7028_v0 }
 0x364   :  { %5506 = vmatpush3.bf16.msra.mxu0 %v7292_v17 }
 0x365   :  { %5507 = vmatprep.subr.bf16.mxu0 %v7028_v0 }
 0x368   :  { %5508 = vmatpush3.bf16.msra.mxu0 %v7296_v18 }
 0x369   :  { %5509 = vmatprep.subr.bf16.mxu0 %v7028_v0 }
 0x36c   :  { %5510 = vmatpush3.bf16.msra.mxu0 %v7300_v20 }
 0x36d   :  { %5511 = vmatprep.subr.bf16.mxu0 %v7028_v0 }
 0x370   :  { %5512 = vmatpush3.bf16.msra.mxu0 %v7304_v22 }
 0x371   :  { %5537 = vmatprep.subr.bf16.mxu0 %v7028_v0 }
 0x373   :  { %5514 = vmatmul.mubr.bf16.vlgmr.msra.gmra.mxu0 %v1017_v27  ;;  %v7498_v27 = vld [vmem:[#allocation10 + $0x8] sm:$0xff]  }
 0x374   :  { %5538 = vmatpush3.bf16.msra.mxu0 %v7395_v55  ;;  %5553 = vmatprep.mubr.msk.bf16.mxu0 %vm7029_vm0, %v7028_v0 }
 0x375   :  { %5539 = vmatprep.subr.bf16.mxu0 %v7028_v0 }
 0x378   :  { %5540 = vmatpush3.bf16.msra.mxu0 %v7401_v35 }
 0x379   :  { %5541 = vmatprep.subr.bf16.mxu0 %v7028_v0 }
 0x37c   :  { %5542 = vmatpush3.bf16.msra.mxu0 %v7217_v56  ;;  %v6648_v56 = vld [vmem:[#allocation3 + $0xb8] sm:$0xff]  }
 0x37d   :  { %5543 = vmatprep.subr.bf16.mxu0 %v7028_v0  ;;  %5518 = vmatpush3.bf16.msra.mxu1 %v6648_v56  ;;  %v6656_v56 = vld [vmem:[#allocation3 + $0xf8] sm:$0xff]  }
 0x37e   :  { %5519 = vmatprep.subr.bf16.mxu1 %v7028_v0 }
 0x380   :  { %5544 = vmatpush3.bf16.msra.mxu0 %v7226_v59  ;;  %v6649_v59 = vld [vmem:[#allocation3 + $0xb0] sm:$0xff]  }
 0x381   :  { %5545 = vmatprep.subr.bf16.mxu0 %v7028_v0  ;;  %5520 = vmatpush3.bf16.msra.mxu1 %v6649_v59  ;;  %v6657_v59 = vld [vmem:[#allocation3 + $0xf0] sm:$0xff]  }
 0x382   :  { %5521 = vmatprep.subr.bf16.mxu1 %v7028_v0 }
 0x384   :  { %5546 = vmatpush3.bf16.msra.mxu0 %v7234_v62  ;;  %v6650_v62 = vld [vmem:[#allocation3 + $0xa8] sm:$0xff]  }
 0x385   :  { %5547 = vmatprep.subr.bf16.mxu0 %v7028_v0  ;;  %5522 = vmatpush3.bf16.msra.mxu1 %v6650_v62  ;;  %v6658_v62 = vld [vmem:[#allocation3 + $0xe8] sm:$0xff]  }
 0x386   :  { %5523 = vmatprep.subr.bf16.mxu1 %v7028_v0 }
 0x388   :  { %5548 = vmatpush3.bf16.msra.mxu0 %v7242_v2  ;;  %v6651_v2 = vld [vmem:[#allocation3 + $0xa0] sm:$0xff]  }
 0x389   :  { %5549 = vmatprep.subr.bf16.mxu0 %v7028_v0  ;;  %5524 = vmatpush3.bf16.msra.mxu1 %v6651_v2  ;;  %v6659_v2 = vld [vmem:[#allocation3 + $0xe0] sm:$0xff]  }
 0x38a   :  { %5525 = vmatprep.subr.bf16.mxu1 %v7028_v0 }
 0x38c   :  { %5550 = vmatpush3.bf16.msra.mxu0 %v7250_v6  ;;  %v6652_v6 = vld [vmem:[#allocation3 + $0x98] sm:$0xff]  }
 0x38d   :  { %5551 = vmatprep.subr.bf16.mxu0 %v7028_v0  ;;  %5526 = vmatpush3.bf16.msra.mxu1 %v6652_v6  ;;  %v6660_v6 = vld [vmem:[#allocation3 + $0xd8] sm:$0xff]  }
 0x38e   :  { %5527 = vmatprep.subr.bf16.mxu1 %v7028_v0 }
 0x390   :  { %5552 = vmatpush3.bf16.msra.mxu0 %v7258_v9  ;;  %v6653_v9 = vld [vmem:[#allocation3 + $0x90] sm:$0xff]  }
 0x391   :  { %5577 = vmatprep.subr.bf16.mxu0 %v7028_v0  ;;  %5528 = vmatpush3.bf16.msra.mxu1 %v6653_v9  ;;  %v6661_v9 = vld [vmem:[#allocation3 + $0xd0] sm:$0xff]  }
 0x392   :  { %5529 = vmatprep.subr.bf16.mxu1 %v7028_v0 }
 0x395   :  { %5530 = vmatpush3.bf16.msra.mxu1 %v6654_v36  ;;  %v6662_v36 = vld [vmem:[#allocation3 + $0xc8] sm:$0xff]  }
 0x396   :  { %5531 = vmatprep.subr.bf16.mxu1 %v7028_v0 }
 0x399   :  { %5532 = vmatpush3.bf16.msra.mxu1 %v6655_v37  ;;  %v6663_v37 = vld [vmem:[#allocation3 + $0xc0] sm:$0xff]  }
 0x39a   :  { %5557 = vmatprep.subr.bf16.mxu1 %v7028_v0 }
 0x3d3   :  { %v1289_v38 = vpop.f32.mrf.mxu1 }
 0x3d5   :  { %v5495_v39 = vpop.f32.mrf.mxu1 }
 0x3d7   :  { %v1292_v40 = vpop.f32.mrf.mxu1 }
 0x3d9   :  { %v5496_v41 = vpop.f32.mrf.mxu1 }
 0x3f3   :  { %v7425_v42 = vpop.f32.mrf.mxu0 }
 0x3f5   :  { %v5435_v43 = vpop.f32.mrf.mxu0 }
 0x3f7   :  { %v1120_v44 = vpop.f32.mrf.mxu0 }
 0x3f9   :  { %v5436_v45 = vpop.f32.mrf.mxu0 }
 0x413   :  { %v1247_v46 = vpop.f32.mrf.mxu0 }
 0x414   :  { %v1253_v47 = vadd.f32 %v1247_v46, %v7144_v60  ;;  %v1290_v60 = vadd.f32 %v7354_v4, %v1289_v38  ;;  %v7529_v46 = vld [vmem:[#allocation11 + $0x78] sm:$0xff]  }
 0x415   :  { %v5475_v48 = vpop.f32.mrf.mxu0 }
 0x416   :  { %6764 = vtanh.f32 %v1253_v47  ;;  %v7535_v47 = vld [vmem:[#allocation11 + $0x70] sm:$0xff]   ;;  %v1206_v48 = vadd.f32 %v7366_v30, %v7425_v42 }
 0x417   :  { %v1250_v49 = vpop.f32.mrf.mxu0 }
 0x419   :  { %v5476_v50 = vpop.f32.mrf.mxu0 }
 0x423   :  { %v6765_v51 = vpop.eup %6764 }
 0x424   :  { %v7428_v52 = vpack.c.bf16 %v6765_v51, %v6765_v51  ;;  %v7545_v51 = vld [vmem:[#allocation11 + $0x60] sm:$0xff]  }
 0x426   :  { %5554 = vmatmul.mubr.bf16.vlgmr.msra.gmra.mxu0 %v7428_v52 }
 0x427   :  { %5578 = vmatpush3.bf16.msra.mxu0 %v7266_v12  ;;  %5593 = vmatprep.mubr.msk.bf16.mxu0 %vm7029_vm0, %v7028_v0 }
 0x428   :  { %5579 = vmatprep.subr.bf16.mxu0 %v7028_v0 }
 0x42b   :  { %5580 = vmatpush3.bf16.msra.mxu0 %v7272_v14 }
 0x42c   :  { %5581 = vmatprep.subr.bf16.mxu0 %v7028_v0 }
 0x42f   :  { %5582 = vmatpush3.bf16.msra.mxu0 %v7280_v15 }
 0x430   :  { %5583 = vmatprep.subr.bf16.mxu0 %v7028_v0 }
 0x433   :  { %v1329_v57 = vpop.f32.mrf.mxu0  ;;  %5584 = vmatpush3.bf16.msra.mxu0 %v7286_v16 }
 0x434   :  { %v1335_v58 = vadd.f32 %v1329_v57, %v1290_v60  ;;  %5585 = vmatprep.subr.bf16.mxu0 %v7028_v0 }
 0x435   :  { %v5515_v12 = vpop.f32.mrf.mxu0 }
 0x436   :  { %6766 = vtanh.f32 %v1335_v58 }
 0x437   :  { %v1332_v61 = vpop.f32.mrf.mxu0  ;;  %5586 = vmatpush3.bf16.msra.mxu0 %v7292_v17  ;;  %v7450_v17 = vld [vmem:[#allocation10 + $0x38] sm:$0xff]  }
 0x438   :  { %5587 = vmatprep.subr.bf16.mxu0 %v7028_v0  ;;  %v7551_v61 = vld [vmem:[#allocation11 + $0x58] sm:$0xff]  }
 0x439   :  { %v5516_v14 = vpop.f32.mrf.mxu0 }
 0x43a   :  { %v7555_v14 = vld [vmem:[#allocation11 + $0x50] sm:$0xff]  }
 0x43b   :  { %5588 = vmatpush3.bf16.msra.mxu0 %v7296_v18  ;;  %v7460_v18 = vld [vmem:[#allocation10 + $0x30] sm:$0xff]  }
 0x43c   :  { %5589 = vmatprep.subr.bf16.mxu0 %v7028_v0 }
 0x43f   :  { %5590 = vmatpush3.bf16.msra.mxu0 %v7300_v20 }
 0x440   :  { %5591 = vmatprep.subr.bf16.mxu0 %v7028_v0 }
 0x443   :  { %v6767_v15 = vpop.eup %6766  ;;  %5592 = vmatpush3.bf16.msra.mxu0 %v7304_v22 }
 0x444   :  { %v1337_v16 = vpack.c.bf16 %v6767_v15, %v6767_v15  ;;  %5617 = vmatprep.subr.bf16.mxu0 %v7028_v0 }
 0x446   :  { %5534 = vmatmul.mubr.bf16.vlgmr.msra.gmra.mxu1 %v1337_v16  ;;  %5594 = vmatmul.mubr.bf16.vlgmr.msra.gmra.mxu0 %v1337_v16 }
 0x447   :  { %5558 = vmatpush3.bf16.msra.mxu1 %v7450_v17  ;;  %5573 = vmatprep.mubr.msk.bf16.mxu1 %vm7029_vm0, %v7028_v0 }
 0x448   :  { %5559 = vmatprep.subr.bf16.mxu1 %v7028_v0  ;;  %5618 = vmatpush3.bf16.msra.mxu0 %v7395_v55 }
 0x449   :  { %5619 = vmatprep.subr.bf16.mxu0 %v7028_v0  ;;  %5633 = vmatprep.mubr.msk.bf16.mxu0 %vm7029_vm0, %v7028_v0 }
 0x44b   :  { %5560 = vmatpush3.bf16.msra.mxu1 %v7460_v18 }
 0x44c   :  { %5561 = vmatprep.subr.bf16.mxu1 %v7028_v0  ;;  %5620 = vmatpush3.bf16.msra.mxu0 %v7401_v35 }
 0x44d   :  { %5621 = vmatprep.subr.bf16.mxu0 %v7028_v0 }
 0x44f   :  { %5562 = vmatpush3.bf16.msra.mxu1 %v7466_v63 }
 0x450   :  { %5563 = vmatprep.subr.bf16.mxu1 %v7028_v0  ;;  %5622 = vmatpush3.bf16.msra.mxu0 %v7470_v53 }
 0x451   :  { %5623 = vmatprep.subr.bf16.mxu0 %v7028_v0 }
 0x453   :  { %5564 = vmatpush3.bf16.msra.mxu1 %v7474_v8 }
 0x454   :  { %5565 = vmatprep.subr.bf16.mxu1 %v7028_v0  ;;  %5624 = vmatpush3.bf16.msra.mxu0 %v7478_v10 }
 0x455   :  { %5625 = vmatprep.subr.bf16.mxu0 %v7028_v0 }
 0x457   :  { %5566 = vmatpush3.bf16.msra.mxu1 %v7482_v11 }
 0x458   :  { %5567 = vmatprep.subr.bf16.mxu1 %v7028_v0  ;;  %5626 = vmatpush3.bf16.msra.mxu0 %v7486_v13 }
 0x459   :  { %5627 = vmatprep.subr.bf16.mxu0 %v7028_v0 }
 0x45b   :  { %5568 = vmatpush3.bf16.msra.mxu1 %v7490_v24 }
 0x45c   :  { %5569 = vmatprep.subr.bf16.mxu1 %v7028_v0  ;;  %5628 = vmatpush3.bf16.msra.mxu0 %v7494_v26 }
 0x45d   :  { %5629 = vmatprep.subr.bf16.mxu0 %v7028_v0 }
 0x45f   :  { %5570 = vmatpush3.bf16.msra.mxu1 %v7498_v27 }
 0x460   :  { %5571 = vmatprep.subr.bf16.mxu1 %v7028_v0  ;;  %5630 = vmatpush3.bf16.msra.mxu0 %v7502_v54 }
 0x461   :  { %5631 = vmatprep.subr.bf16.mxu0 %v7028_v0 }
 0x463   :  { %5572 = vmatpush3.bf16.msra.mxu1 %v7506_v32 }
 0x464   :  { %5632 = vmatpush3.bf16.msra.mxu0 %v7509_v34  ;;  %5597 = vmatprep.subr.bf16.mxu1 %v7028_v0 }
 0x465   :  { %5657 = vmatprep.subr.bf16.mxu0 %v7028_v0 }
 0x466   :  { %5574 = vmatmul.mubr.bf16.vlgmr.msra.gmra.mxu1 %v7428_v52 }
 0x467   :  { %5613 = vmatprep.mubr.msk.bf16.mxu1 %vm7029_vm0, %v7028_v0  ;;  %5598 = vmatpush3.bf16.msra.mxu1 %v6656_v56 }
 0x468   :  { %5599 = vmatprep.subr.bf16.mxu1 %v7028_v0 }
 0x46b   :  { %5600 = vmatpush3.bf16.msra.mxu1 %v6657_v59 }
 0x46c   :  { %5601 = vmatprep.subr.bf16.mxu1 %v7028_v0 }
 0x46f   :  { %5602 = vmatpush3.bf16.msra.mxu1 %v6658_v62 }
 0x470   :  { %5603 = vmatprep.subr.bf16.mxu1 %v7028_v0 }
 0x473   :  { %5604 = vmatpush3.bf16.msra.mxu1 %v6659_v2 }
 0x474   :  { %5605 = vmatprep.subr.bf16.mxu1 %v7028_v0 }
 0x477   :  { %5606 = vmatpush3.bf16.msra.mxu1 %v6660_v6 }
 0x478   :  { %5607 = vmatprep.subr.bf16.mxu1 %v7028_v0 }
 0x47b   :  { %5608 = vmatpush3.bf16.msra.mxu1 %v6661_v9 }
 0x47c   :  { %5609 = vmatprep.subr.bf16.mxu1 %v7028_v0 }
 0x47f   :  { %5610 = vmatpush3.bf16.msra.mxu1 %v6662_v36  ;;  %v6666_v36 = vld [vmem:[#allocation3 + $0x128] sm:$0xff]  }
 0x480   :  { %5611 = vmatprep.subr.bf16.mxu1 %v7028_v0 }
 0x483   :  { %5612 = vmatpush3.bf16.msra.mxu1 %v6663_v37  ;;  %v6667_v37 = vld [vmem:[#allocation3 + $0x120] sm:$0xff]  }
 0x484   :  { %5637 = vmatprep.subr.bf16.mxu1 %v7028_v0 }
 0x4e6   :  { %v1480_v38 = vpop.f32.mrf.mxu0 }
 0x4e7   :  { %v1486_v39 = vadd.f32 %v1480_v38, %v7152_v3  ;;  %v7539_v3 = vld [vmem:[#allocation11 + $0x68] sm:$0xff]   ;;  %v6668_v38 = vld [vmem:[#allocation3 + $0x118] sm:$0xff]  }
 0x4e8   :  { %v5555_v40 = vpop.f32.mrf.mxu0 }
 0x4e9   :  { %6768 = vtanh.f32 %v1486_v39  ;;  %v6669_v39 = vld [vmem:[#allocation3 + $0x110] sm:$0xff]   ;;  %v6670_v40 = vld [vmem:[#allocation3 + $0x108] sm:$0xff]  }
 0x4ea   :  { %v1483_v41 = vpop.f32.mrf.mxu0 }
 0x4eb   :  { %v6671_v41 = vld [vmem:[#allocation3 + $0x100] sm:$0xff]  }
 0x4ec   :  { %v5556_v43 = vpop.f32.mrf.mxu0 }
 0x4f6   :  { %v6769_v44 = vpop.eup %6768 }
 0x4f7   :  { %v7526_v45 = vpack.c.bf16 %v6769_v44, %v6769_v44 }
 0x4f9   :  { %5634 = vmatmul.mubr.bf16.vlgmr.msra.gmra.mxu0 %v7526_v45 }
 0x4fa   :  { %5658 = vmatpush3.bf16.msra.mxu0 %v7529_v46  ;;  %5673 = vmatprep.mubr.msk.bf16.mxu0 %vm7029_vm0, %v7028_v0 }
 0x4fb   :  { %5659 = vmatprep.subr.bf16.mxu0 %v7028_v0 }
 0x4fe   :  { %5660 = vmatpush3.bf16.msra.mxu0 %v7535_v47 }
 0x4ff   :  { %5661 = vmatprep.subr.bf16.mxu0 %v7028_v0 }
 0x502   :  { %5662 = vmatpush3.bf16.msra.mxu0 %v7539_v3 }
 0x503   :  { %5663 = vmatprep.subr.bf16.mxu0 %v7028_v0 }
 0x506   :  { %v1437_v49 = vpop.f32.mrf.mxu1  ;;  %v1562_v50 = vpop.f32.mrf.mxu0  ;;  %5664 = vmatpush3.bf16.msra.mxu0 %v7545_v51 }
 0x507   :  { %v7548_v52 = vadd.f32 %v1437_v49, %v1206_v48  ;;  %5665 = vmatprep.subr.bf16.mxu0 %v7028_v0 }
 0x508   :  { %v5535_v60 = vpop.f32.mrf.mxu1  ;;  %v5595_v57 = vpop.f32.mrf.mxu0 }
 0x509   :  { %v7633_v57 = vld [vmem:[#allocation11 + $0x40] sm:$0xff]  }
 0x50a   :  { %v1440_v58 = vpop.f32.mrf.mxu1  ;;  %v1565_v12 = vpop.f32.mrf.mxu0  ;;  %5666 = vmatpush3.bf16.msra.mxu0 %v7551_v61 }
 0x50b   :  { %5667 = vmatprep.subr.bf16.mxu0 %v7028_v0 }
 0x50c   :  { %v5536_v30 = vpop.f32.mrf.mxu1  ;;  %v5596_v42 = vpop.f32.mrf.mxu0 }
 0x50e   :  { %5668 = vmatpush3.bf16.msra.mxu0 %v7555_v14 }
 0x50f   :  { %5669 = vmatprep.subr.bf16.mxu0 %v7028_v0 }
 0x512   :  { %5670 = vmatpush3.bf16.msra.mxu0 %v7300_v20  ;;  %v6664_v20 = vld [vmem:[#allocation3 + $0x138] sm:$0xff]  }
 0x513   :  { %5671 = vmatprep.subr.bf16.mxu0 %v7028_v0 }
 0x516   :  { %5672 = vmatpush3.bf16.msra.mxu0 %v7304_v22  ;;  %v6665_v22 = vld [vmem:[#allocation3 + $0x130] sm:$0xff]  }
 0x517   :  { %5697 = vmatprep.subr.bf16.mxu0 %v7028_v0 }
 0x526   :  { %v1522_v15 = vpop.f32.mrf.mxu1 }
 0x527   :  { %v1523_v16 = vadd.f32 %v7354_v4, %v1522_v15 }
 0x528   :  { %v5575_v56 = vpop.f32.mrf.mxu1 }
 0x529   :  { %v1568_v59 = vadd.f32 %v1562_v50, %v1523_v16 }
 0x52a   :  { %v1525_v62 = vpop.f32.mrf.mxu1 }
 0x52b   :  { %6770 = vtanh.f32 %v1568_v59 }
 0x52c   :  { %v5576_v2 = vpop.f32.mrf.mxu1 }
 0x538   :  { %v6771_v6 = vpop.eup %6770 }
 0x539   :  { %v1570_v9 = vpack.c.bf16 %v6771_v6, %v6771_v6 }
 0x53b   :  { %5614 = vmatmul.mubr.bf16.vlgmr.msra.gmra.mxu1 %v1570_v9  ;;  %5674 = vmatmul.mubr.bf16.vlgmr.msra.gmra.mxu0 %v1570_v9 }
 0x53c   :  { %5638 = vmatpush3.bf16.msra.mxu1 %v7450_v17  ;;  %5653 = vmatprep.mubr.msk.bf16.mxu1 %vm7029_vm0, %v7028_v0 }
 0x53d   :  { %5639 = vmatprep.subr.bf16.mxu1 %v7028_v0  ;;  %5698 = vmatpush3.bf16.msra.mxu0 %v7395_v55 }
 0x53e   :  { %5699 = vmatprep.subr.bf16.mxu0 %v7028_v0  ;;  %5713 = vmatprep.mubr.msk.bf16.mxu0 %vm7029_vm0, %v7028_v0 }
 0x540   :  { %5640 = vmatpush3.bf16.msra.mxu1 %v7460_v18 }
 0x541   :  { %5641 = vmatprep.subr.bf16.mxu1 %v7028_v0  ;;  %5700 = vmatpush3.bf16.msra.mxu0 %v7401_v35 }
 0x542   :  { %5701 = vmatprep.subr.bf16.mxu0 %v7028_v0 }
 0x544   :  { %5642 = vmatpush3.bf16.msra.mxu1 %v7466_v63 }
 0x545   :  { %5643 = vmatprep.subr.bf16.mxu1 %v7028_v0  ;;  %5702 = vmatpush3.bf16.msra.mxu0 %v7470_v53 }
 0x546   :  { %5703 = vmatprep.subr.bf16.mxu0 %v7028_v0 }
 0x548   :  { %5644 = vmatpush3.bf16.msra.mxu1 %v7474_v8 }
 0x549   :  { %5645 = vmatprep.subr.bf16.mxu1 %v7028_v0  ;;  %5704 = vmatpush3.bf16.msra.mxu0 %v7478_v10 }
 0x54a   :  { %5705 = vmatprep.subr.bf16.mxu0 %v7028_v0 }
 0x54c   :  { %5646 = vmatpush3.bf16.msra.mxu1 %v7482_v11 }
 0x54d   :  { %5647 = vmatprep.subr.bf16.mxu1 %v7028_v0  ;;  %5706 = vmatpush3.bf16.msra.mxu0 %v7486_v13 }
 0x54e   :  { %5707 = vmatprep.subr.bf16.mxu0 %v7028_v0 }
 0x550   :  { %5648 = vmatpush3.bf16.msra.mxu1 %v7490_v24 }
 0x551   :  { %5649 = vmatprep.subr.bf16.mxu1 %v7028_v0  ;;  %5708 = vmatpush3.bf16.msra.mxu0 %v7494_v26 }
 0x552   :  { %5709 = vmatprep.subr.bf16.mxu0 %v7028_v0 }
 0x554   :  { %5650 = vmatpush3.bf16.msra.mxu1 %v7498_v27 }
 0x555   :  { %5651 = vmatprep.subr.bf16.mxu1 %v7028_v0  ;;  %5710 = vmatpush3.bf16.msra.mxu0 %v7502_v54 }
 0x556   :  { %5711 = vmatprep.subr.bf16.mxu0 %v7028_v0 }
 0x558   :  { %5652 = vmatpush3.bf16.msra.mxu1 %v7506_v32 }
 0x559   :  { %5712 = vmatpush3.bf16.msra.mxu0 %v7509_v34  ;;  %5677 = vmatprep.subr.bf16.mxu1 %v7028_v0 }
 0x55a   :  { %5737 = vmatprep.subr.bf16.mxu0 %v7028_v0 }
 0x55b   :  { %5654 = vmatmul.mubr.bf16.vlgmr.msra.gmra.mxu1 %v7526_v45 }
 0x55c   :  { %5693 = vmatprep.mubr.msk.bf16.mxu1 %vm7029_vm0, %v7028_v0  ;;  %5678 = vmatpush3.bf16.msra.mxu1 %v6664_v20 }
 0x55d   :  { %5679 = vmatprep.subr.bf16.mxu1 %v7028_v0 }
 0x560   :  { %5680 = vmatpush3.bf16.msra.mxu1 %v6665_v22 }
 0x561   :  { %5681 = vmatprep.subr.bf16.mxu1 %v7028_v0 }
 0x564   :  { %5682 = vmatpush3.bf16.msra.mxu1 %v6666_v36 }
 0x565   :  { %5683 = vmatprep.subr.bf16.mxu1 %v7028_v0 }
 0x568   :  { %5684 = vmatpush3.bf16.msra.mxu1 %v6667_v37 }
 0x569   :  { %5685 = vmatprep.subr.bf16.mxu1 %v7028_v0 }
 0x56c   :  { %5686 = vmatpush3.bf16.msra.mxu1 %v6668_v38 }
 0x56d   :  { %5687 = vmatprep.subr.bf16.mxu1 %v7028_v0 }
 0x570   :  { %5688 = vmatpush3.bf16.msra.mxu1 %v6669_v39  ;;  %v6673_v39 = vld [vmem:[#allocation3 + $0x170] sm:$0xff]  }
 0x571   :  { %5689 = vmatprep.subr.bf16.mxu1 %v7028_v0 }
 0x574   :  { %5690 = vmatpush3.bf16.msra.mxu1 %v6670_v40  ;;  %v6674_v40 = vld [vmem:[#allocation3 + $0x168] sm:$0xff]  }
 0x575   :  { %5691 = vmatprep.subr.bf16.mxu1 %v7028_v0 }
 0x578   :  { %5692 = vmatpush3.bf16.msra.mxu1 %v6671_v41 }
 0x579   :  { %5717 = vmatprep.subr.bf16.mxu1 %v7028_v0 }
 0x5b9   :  { %v1713_v43 = vpop.f32.mrf.mxu0 }
 0x5ba   :  { %v1719_v44 = vadd.f32 %v1713_v43, %v7158_v7  ;;  %v7629_v7 = vld [vmem:[#allocation11 + $0x48] sm:$0xff]  }
 0x5bb   :  { %v5635_v45 = vpop.f32.mrf.mxu0 }
 0x5bc   :  { %6772 = vtanh.f32 %v1719_v44  ;;  %v6675_v45 = vld [vmem:[#allocation3 + $0x160] sm:$0xff]  }
 0x5bd   :  { %v1716_v48 = vpop.f32.mrf.mxu0 }
 0x5bf   :  { %v5636_v49 = vpop.f32.mrf.mxu0 }
 0x5c9   :  { %v6773_v50 = vpop.eup %6772 }
 0x5ca   :  { %v7612_v60 = vpack.c.bf16 %v6773_v50, %v6773_v50  ;;  %v6676_v50 = vld [vmem:[#allocation3 + $0x158] sm:$0xff]  }
 0x5cc   :  { %5714 = vmatmul.mubr.bf16.vlgmr.msra.gmra.mxu0 %v7612_v60 }
 0x5cd   :  { %5738 = vmatpush3.bf16.msra.mxu0 %v7529_v46  ;;  %5753 = vmatprep.mubr.msk.bf16.mxu0 %vm7029_vm0, %v7028_v0 }
 0x5ce   :  { %5739 = vmatprep.subr.bf16.mxu0 %v7028_v0 }
 0x5d1   :  { %5740 = vmatpush3.bf16.msra.mxu0 %v7535_v47 }
 0x5d2   :  { %5741 = vmatprep.subr.bf16.mxu0 %v7028_v0 }
 0x5d5   :  { %5742 = vmatpush3.bf16.msra.mxu0 %v7539_v3 }
 0x5d6   :  { %5743 = vmatprep.subr.bf16.mxu0 %v7028_v0 }
 0x5d9   :  { %5744 = vmatpush3.bf16.msra.mxu0 %v7545_v51 }
 0x5da   :  { %5745 = vmatprep.subr.bf16.mxu0 %v7028_v0 }
 0x5dd   :  { %5746 = vmatpush3.bf16.msra.mxu0 %v7551_v61 }
 0x5de   :  { %5747 = vmatprep.subr.bf16.mxu0 %v7028_v0 }
 0x5e1   :  { %5748 = vmatpush3.bf16.msra.mxu0 %v7555_v14 }
 0x5e2   :  { %5749 = vmatprep.subr.bf16.mxu0 %v7028_v0 }
 0x5e5   :  { %5750 = vmatpush3.bf16.msra.mxu0 %v7629_v7 }
 0x5e6   :  { %5751 = vmatprep.subr.bf16.mxu0 %v7028_v0 }
 0x5e9   :  { %5752 = vmatpush3.bf16.msra.mxu0 %v7633_v57 }
 0x5ea   :  { %5777 = vmatprep.subr.bf16.mxu0 %v7028_v0 }
 0x5fb   :  { %v1670_v58 = vpop.f32.mrf.mxu1  ;;  %v1795_v12 = vpop.f32.mrf.mxu0 }
 0x5fc   :  { %v7638_v30 = vadd.f32 %v1670_v58, %v7548_v52  ;;  %v6672_v52 = vld [vmem:[#allocation3 + $0x178] sm:$0xff]   ;;  %v6678_v58 = vld [vmem:[#allocation3 + $0x148] sm:$0xff]  }
 0x5fd   :  { %v5615_v42 = vpop.f32.mrf.mxu1  ;;  %v5675_v15 = vpop.f32.mrf.mxu0 }
 0x5ff   :  { %v1673_v16 = vpop.f32.mrf.mxu1  ;;  %v1798_v56 = vpop.f32.mrf.mxu0 }
 0x601   :  { %v5616_v59 = vpop.f32.mrf.mxu1  ;;  %v5676_v62 = vpop.f32.mrf.mxu0 }
 0x61b   :  { %v1755_v2 = vpop.f32.mrf.mxu1 }
 0x61c   :  { %v1756_v6 = vadd.f32 %v7354_v4, %v1755_v2 }
 0x61d   :  { %v5655_v9 = vpop.f32.mrf.mxu1 }
 0x61e   :  { %v1801_v20 = vadd.f32 %v1795_v12, %v1756_v6 }
 0x61f   :  { %v1758_v22 = vpop.f32.mrf.mxu1 }
 0x620   :  { %6774 = vtanh.f32 %v1801_v20 }
 0x621   :  { %v5656_v36 = vpop.f32.mrf.mxu1 }
 0x62d   :  { %v6775_v37 = vpop.eup %6774 }
 0x62e   :  { %v1803_v38 = vpack.c.bf16 %v6775_v37, %v6775_v37 }
 0x630   :  { %5694 = vmatmul.mubr.bf16.vlgmr.msra.gmra.mxu1 %v1803_v38  ;;  %5754 = vmatmul.mubr.bf16.vlgmr.msra.gmra.mxu0 %v1803_v38 }
 0x631   :  { %5718 = vmatpush3.bf16.msra.mxu1 %v7450_v17  ;;  %5733 = vmatprep.mubr.msk.bf16.mxu1 %vm7029_vm0, %v7028_v0 }
 0x632   :  { %5719 = vmatprep.subr.bf16.mxu1 %v7028_v0  ;;  %5778 = vmatpush3.bf16.msra.mxu0 %v7395_v55 }
 0x633   :  { %5779 = vmatprep.subr.bf16.mxu0 %v7028_v0  ;;  %5793 = vmatprep.mubr.msk.bf16.mxu0 %vm7029_vm0, %v7028_v0 }
 0x635   :  { %5720 = vmatpush3.bf16.msra.mxu1 %v7460_v18 }
 0x636   :  { %5721 = vmatprep.subr.bf16.mxu1 %v7028_v0  ;;  %5780 = vmatpush3.bf16.msra.mxu0 %v7401_v35 }
 0x637   :  { %5781 = vmatprep.subr.bf16.mxu0 %v7028_v0 }
 0x639   :  { %5722 = vmatpush3.bf16.msra.mxu1 %v7466_v63 }
 0x63a   :  { %5723 = vmatprep.subr.bf16.mxu1 %v7028_v0  ;;  %5782 = vmatpush3.bf16.msra.mxu0 %v7470_v53 }
 0x63b   :  { %5783 = vmatprep.subr.bf16.mxu0 %v7028_v0 }
 0x63d   :  { %5724 = vmatpush3.bf16.msra.mxu1 %v7474_v8 }
 0x63e   :  { %5725 = vmatprep.subr.bf16.mxu1 %v7028_v0  ;;  %5784 = vmatpush3.bf16.msra.mxu0 %v7478_v10 }
 0x63f   :  { %5785 = vmatprep.subr.bf16.mxu0 %v7028_v0 }
 0x641   :  { %5726 = vmatpush3.bf16.msra.mxu1 %v7482_v11 }
 0x642   :  { %5727 = vmatprep.subr.bf16.mxu1 %v7028_v0  ;;  %5786 = vmatpush3.bf16.msra.mxu0 %v7486_v13 }
 0x643   :  { %5787 = vmatprep.subr.bf16.mxu0 %v7028_v0 }
 0x645   :  { %5728 = vmatpush3.bf16.msra.mxu1 %v7490_v24 }
 0x646   :  { %5729 = vmatprep.subr.bf16.mxu1 %v7028_v0  ;;  %5788 = vmatpush3.bf16.msra.mxu0 %v7494_v26 }
 0x647   :  { %5789 = vmatprep.subr.bf16.mxu0 %v7028_v0 }
 0x649   :  { %5730 = vmatpush3.bf16.msra.mxu1 %v7498_v27 }
 0x64a   :  { %5731 = vmatprep.subr.bf16.mxu1 %v7028_v0  ;;  %5790 = vmatpush3.bf16.msra.mxu0 %v7502_v54 }
 0x64b   :  { %5791 = vmatprep.subr.bf16.mxu0 %v7028_v0 }
 0x64d   :  { %5732 = vmatpush3.bf16.msra.mxu1 %v7506_v32 }
 0x64e   :  { %5792 = vmatpush3.bf16.msra.mxu0 %v7509_v34  ;;  %5757 = vmatprep.subr.bf16.mxu1 %v7028_v0 }
 0x64f   :  { %5817 = vmatprep.subr.bf16.mxu0 %v7028_v0 }
 0x650   :  { %5734 = vmatmul.mubr.bf16.vlgmr.msra.gmra.mxu1 %v7612_v60  ;;  %v6677_v60 = vld [vmem:[#allocation3 + $0x150] sm:$0xff]  }
 0x651   :  { %5773 = vmatprep.mubr.msk.bf16.mxu1 %vm7029_vm0, %v7028_v0  ;;  %5758 = vmatpush3.bf16.msra.mxu1 %v6672_v52 }
 0x652   :  { %5759 = vmatprep.subr.bf16.mxu1 %v7028_v0 }
 0x655   :  { %5760 = vmatpush3.bf16.msra.mxu1 %v6673_v39 }
 0x656   :  { %5761 = vmatprep.subr.bf16.mxu1 %v7028_v0 }
 0x659   :  { %5762 = vmatpush3.bf16.msra.mxu1 %v6674_v40 }
 0x65a   :  { %5763 = vmatprep.subr.bf16.mxu1 %v7028_v0 }
 0x65d   :  { %5764 = vmatpush3.bf16.msra.mxu1 %v6675_v45  ;;  %v6681_v45 = vld [vmem:[#allocation3 + $0x1b0] sm:$0xff]  }
 0x65e   :  { %5765 = vmatprep.subr.bf16.mxu1 %v7028_v0 }
 0x661   :  { %5766 = vmatpush3.bf16.msra.mxu1 %v6676_v50  ;;  %v6682_v50 = vld [vmem:[#allocation3 + $0x1a8] sm:$0xff]  }
 0x662   :  { %5767 = vmatprep.subr.bf16.mxu1 %v7028_v0 }
 0x665   :  { %5768 = vmatpush3.bf16.msra.mxu1 %v6677_v60  ;;  %v6684_v60 = vld [vmem:[#allocation3 + $0x198] sm:$0xff]  }
 0x666   :  { %5769 = vmatprep.subr.bf16.mxu1 %v7028_v0 }
 0x669   :  { %5770 = vmatpush3.bf16.msra.mxu1 %v6678_v58  ;;  %v6685_v58 = vld [vmem:[#allocation3 + $0x190] sm:$0xff]  }
 0x66a   :  { %5771 = vmatprep.subr.bf16.mxu1 %v7028_v0 }
 0x68c   :  { %v1946_v41 = vpop.f32.mrf.mxu0 }
 0x68d   :  { %v1952_v43 = vadd.f32 %v1946_v41, %v7149_v1  ;;  %v6679_v1 = vld [vmem:[#allocation3 + $0x140] sm:$0xff]  }
 0x68e   :  { %v5715_v44 = vpop.f32.mrf.mxu0  ;;  %5772 = vmatpush3.bf16.msra.mxu1 %v6679_v1 }
 0x68f   :  { %6776 = vtanh.f32 %v1952_v43  ;;  %5797 = vmatprep.subr.bf16.mxu1 %v7028_v0  ;;  %v6680_v44 = vld [vmem:[#allocation3 + $0x1b8] sm:$0xff]  }
 0x690   :  { %v1949_v48 = vpop.f32.mrf.mxu0 }
 0x692   :  { %v5716_v49 = vpop.f32.mrf.mxu0 }
 0x69c   :  { %v6777_v12 = vpop.eup %6776 }
 0x69d   :  { %v7687_v42 = vpack.c.bf16 %v6777_v12, %v6777_v12  ;;  %v6686_v12 = vld [vmem:[#allocation3 + $0x188] sm:$0xff]  }
 0x69f   :  { %5794 = vmatmul.mubr.bf16.vlgmr.msra.gmra.mxu0 %v7687_v42 }
 0x6a0   :  { %5818 = vmatpush3.bf16.msra.mxu0 %v7529_v46  ;;  %5833 = vmatprep.mubr.msk.bf16.mxu0 %vm7029_vm0, %v7028_v0 }
 0x6a1   :  { %5819 = vmatprep.subr.bf16.mxu0 %v7028_v0 }
 0x6a4   :  { %5820 = vmatpush3.bf16.msra.mxu0 %v7535_v47 }
 0x6a5   :  { %5821 = vmatprep.subr.bf16.mxu0 %v7028_v0 }
 0x6a8   :  { %5822 = vmatpush3.bf16.msra.mxu0 %v7539_v3 }
 0x6a9   :  { %5823 = vmatprep.subr.bf16.mxu0 %v7028_v0 }
 0x6ac   :  { %5824 = vmatpush3.bf16.msra.mxu0 %v7545_v51 }
 0x6ad   :  { %5825 = vmatprep.subr.bf16.mxu0 %v7028_v0 }
 0x6b0   :  { %5826 = vmatpush3.bf16.msra.mxu0 %v7551_v61 }
 0x6b1   :  { %5827 = vmatprep.subr.bf16.mxu0 %v7028_v0 }
 0x6b4   :  { %5828 = vmatpush3.bf16.msra.mxu0 %v7555_v14 }
 0x6b5   :  { %5829 = vmatprep.subr.bf16.mxu0 %v7028_v0 }
 0x6b8   :  { %5830 = vmatpush3.bf16.msra.mxu0 %v7629_v7 }
 0x6b9   :  { %5831 = vmatprep.subr.bf16.mxu0 %v7028_v0 }
 0x6bc   :  { %5832 = vmatpush3.bf16.msra.mxu0 %v7633_v57 }
 0x6bd   :  { %5857 = vmatprep.subr.bf16.mxu0 %v7028_v0 }
 0x6f0   :  { %v1903_v15 = vpop.f32.mrf.mxu1  ;;  %v2028_v16 = vpop.f32.mrf.mxu0 }
 0x6f1   :  { %v7711_v56 = vadd.f32 %v1903_v15, %v7638_v30 }
 0x6f2   :  { %v5695_v59 = vpop.f32.mrf.mxu1  ;;  %v5755_v62 = vpop.f32.mrf.mxu0 }
 0x6f4   :  { %v1906_v2 = vpop.f32.mrf.mxu1  ;;  %v2031_v6 = vpop.f32.mrf.mxu0 }
 0x6f6   :  { %v5696_v9 = vpop.f32.mrf.mxu1  ;;  %v5756_v20 = vpop.f32.mrf.mxu0 }
 0x710   :  { %v1988_v22 = vpop.f32.mrf.mxu1 }
 0x711   :  { %v1989_v36 = vadd.f32 %v7354_v4, %v1988_v22 }
 0x712   :  { %v5735_v37 = vpop.f32.mrf.mxu1 }
 0x713   :  { %v2034_v38 = vadd.f32 %v2028_v16, %v1989_v36  ;;  %v7789_v36 = vld [vmem:[%s8457_s4 + $0x1] ss:$0 sm:$0xff] }
 0x714   :  { %v1991_v52 = vpop.f32.mrf.mxu1 }
 0x715   :  { %6778 = vtanh.f32 %v2034_v38 }
 0x716   :  { %v5736_v39 = vpop.f32.mrf.mxu1 }
 0x722   :  { %v6779_v40 = vpop.eup %6778 }
 0x723   :  { %v2036_v41 = vpack.c.bf16 %v6779_v40, %v6779_v40 }
 0x725   :  { %5774 = vmatmul.mubr.bf16.vlgmr.msra.gmra.mxu1 %v2036_v41  ;;  %5834 = vmatmul.mubr.bf16.vlgmr.msra.gmra.mxu0 %v2036_v41 }
 0x726   :  { %5798 = vmatpush3.bf16.msra.mxu1 %v7450_v17  ;;  %5813 = vmatprep.mubr.msk.bf16.mxu1 %vm7029_vm0, %v7028_v0 }
 0x727   :  { %5799 = vmatprep.subr.bf16.mxu1 %v7028_v0  ;;  %5858 = vmatpush3.bf16.msra.mxu0 %v7395_v55 }
 0x728   :  { %5859 = vmatprep.subr.bf16.mxu0 %v7028_v0  ;;  %5873 = vmatprep.mubr.msk.bf16.mxu0 %vm7029_vm0, %v7028_v0 }
 0x72a   :  { %5800 = vmatpush3.bf16.msra.mxu1 %v7460_v18 }
 0x72b   :  { %5801 = vmatprep.subr.bf16.mxu1 %v7028_v0  ;;  %5860 = vmatpush3.bf16.msra.mxu0 %v7401_v35 }
 0x72c   :  { %5861 = vmatprep.subr.bf16.mxu0 %v7028_v0 }
 0x72e   :  { %5802 = vmatpush3.bf16.msra.mxu1 %v7466_v63 }
 0x72f   :  { %5803 = vmatprep.subr.bf16.mxu1 %v7028_v0  ;;  %5862 = vmatpush3.bf16.msra.mxu0 %v7470_v53 }
 0x730   :  { %5863 = vmatprep.subr.bf16.mxu0 %v7028_v0 }
 0x732   :  { %5804 = vmatpush3.bf16.msra.mxu1 %v7474_v8 }
 0x733   :  { %5805 = vmatprep.subr.bf16.mxu1 %v7028_v0  ;;  %5864 = vmatpush3.bf16.msra.mxu0 %v7478_v10 }
 0x734   :  { %5865 = vmatprep.subr.bf16.mxu0 %v7028_v0 }
 0x736   :  { %5806 = vmatpush3.bf16.msra.mxu1 %v7482_v11 }
 0x737   :  { %5807 = vmatprep.subr.bf16.mxu1 %v7028_v0  ;;  %5866 = vmatpush3.bf16.msra.mxu0 %v7486_v13 }
 0x738   :  { %5867 = vmatprep.subr.bf16.mxu0 %v7028_v0 }
 0x73a   :  { %5808 = vmatpush3.bf16.msra.mxu1 %v7490_v24 }
 0x73b   :  { %5809 = vmatprep.subr.bf16.mxu1 %v7028_v0  ;;  %5868 = vmatpush3.bf16.msra.mxu0 %v7494_v26 }
 0x73c   :  { %5869 = vmatprep.subr.bf16.mxu0 %v7028_v0 }
 0x73e   :  { %5810 = vmatpush3.bf16.msra.mxu1 %v7498_v27 }
 0x73f   :  { %5811 = vmatprep.subr.bf16.mxu1 %v7028_v0  ;;  %5870 = vmatpush3.bf16.msra.mxu0 %v7502_v54 }
 0x740   :  { %5871 = vmatprep.subr.bf16.mxu0 %v7028_v0 }
 0x742   :  { %5812 = vmatpush3.bf16.msra.mxu1 %v7506_v32 }
 0x743   :  { %5872 = vmatpush3.bf16.msra.mxu0 %v7509_v34  ;;  %5837 = vmatprep.subr.bf16.mxu1 %v7028_v0 }
 0x744   :  { %5897 = vmatprep.subr.bf16.mxu0 %v7028_v0 }
 0x745   :  { %5814 = vmatmul.mubr.bf16.vlgmr.msra.gmra.mxu1 %v7687_v42  ;;  %v6687_v42 = vld [vmem:[#allocation3 + $0x180] sm:$0xff]  }
 0x746   :  { %5853 = vmatprep.mubr.msk.bf16.mxu1 %vm7029_vm0, %v7028_v0  ;;  %5838 = vmatpush3.bf16.msra.mxu1 %v6680_v44 }
 0x747   :  { %5839 = vmatprep.subr.bf16.mxu1 %v7028_v0 }
 0x74a   :  { %5840 = vmatpush3.bf16.msra.mxu1 %v6681_v45 }
 0x74b   :  { %5841 = vmatprep.subr.bf16.mxu1 %v7028_v0 }
 0x74e   :  { %5842 = vmatpush3.bf16.msra.mxu1 %v6682_v50 }
 0x74f   :  { %5843 = vmatprep.subr.bf16.mxu1 %v7028_v0 }
 0x75f   :  { %v2179_v4 = vpop.f32.mrf.mxu0 }
 0x760   :  { %v2185_v55 = vadd.f32 %v2179_v4, %v7155_v5  ;;  %v6683_v5 = vld [vmem:[#allocation3 + $0x1a0] sm:$0xff]   ;;  %v7793_v4 = vld [vmem:[#allocation11 + $0x38] sm:$0xff]  }
 0x761   :  { %v5795_v35 = vpop.f32.mrf.mxu0  ;;  %5844 = vmatpush3.bf16.msra.mxu1 %v6683_v5 }
 0x762   :  { %6780 = vtanh.f32 %v2185_v55  ;;  %5845 = vmatprep.subr.bf16.mxu1 %v7028_v0  ;;  %v7803_v55 = vld [vmem:[#allocation11 + $0x30] sm:$0xff]  }
 0x763   :  { %v2182_v30 = vpop.f32.mrf.mxu0 }
 0x765   :  { %v5796_v43 = vpop.f32.mrf.mxu0  ;;  %5846 = vmatpush3.bf16.msra.mxu1 %v6684_v60 }
 0x766   :  { %5847 = vmatprep.subr.bf16.mxu1 %v7028_v0 }
 0x769   :  { %5848 = vmatpush3.bf16.msra.mxu1 %v6685_v58 }
 0x76a   :  { %5849 = vmatprep.subr.bf16.mxu1 %v7028_v0 }
 0x76d   :  { %5850 = vmatpush3.bf16.msra.mxu1 %v6686_v12 }
 0x76e   :  { %5851 = vmatprep.subr.bf16.mxu1 %v7028_v0 }
 0x76f   :  { %v6781_v48 = vpop.eup %6780 }
 0x770   :  { %v7755_v49 = vpack.c.bf16 %v6781_v48, %v6781_v48 }
 0x771   :  { %5852 = vmatpush3.bf16.msra.mxu1 %v6687_v42 }
 0x772   :  { %5874 = vmatmul.mubr.bf16.vlgmr.msra.gmra.mxu0 %v7755_v49  ;;  %5877 = vmatprep.subr.bf16.mxu1 %v7028_v0 }
 0x773   :  { %5898 = vmatpush3.bf16.msra.mxu0 %v7529_v46  ;;  %5913 = vmatprep.mubr.msk.bf16.mxu0 %vm7029_vm0, %v7028_v0 }
 0x774   :  { %5899 = vmatprep.subr.bf16.mxu0 %v7028_v0 }
 0x777   :  { %5900 = vmatpush3.bf16.msra.mxu0 %v7535_v47 }
 0x778   :  { %5901 = vmatprep.subr.bf16.mxu0 %v7028_v0 }
 0x77b   :  { %5902 = vmatpush3.bf16.msra.mxu0 %v7539_v3 }
 0x77c   :  { %5903 = vmatprep.subr.bf16.mxu0 %v7028_v0 }
 0x77f   :  { %5904 = vmatpush3.bf16.msra.mxu0 %v7545_v51 }
 0x780   :  { %5905 = vmatprep.subr.bf16.mxu0 %v7028_v0 }
 0x783   :  { %5906 = vmatpush3.bf16.msra.mxu0 %v7551_v61 }
 0x784   :  { %5907 = vmatprep.subr.bf16.mxu0 %v7028_v0 }
 0x787   :  { %5908 = vmatpush3.bf16.msra.mxu0 %v7555_v14 }
 0x788   :  { %5909 = vmatprep.subr.bf16.mxu0 %v7028_v0 }
 0x78b   :  { %5910 = vmatpush3.bf16.msra.mxu0 %v7629_v7 }
 0x78c   :  { %5911 = vmatprep.subr.bf16.mxu0 %v7028_v0 }
 0x78f   :  { %5912 = vmatpush3.bf16.msra.mxu0 %v7633_v57 }
 0x790   :  { %5937 = vmatprep.subr.bf16.mxu0 %v7028_v0 }
 0x7e5   :  { %v2136_v1 = vpop.f32.mrf.mxu1  ;;  %v2261_v15 = vpop.f32.mrf.mxu0 }
 0x7e6   :  { %v7784_v16 = vadd.f32 %v2136_v1, %v7711_v56 }
 0x7e7   :  { %v5775_v59 = vpop.f32.mrf.mxu1  ;;  %v5835_v62 = vpop.f32.mrf.mxu0 }
 0x7e9   :  { %v2139_v2 = vpop.f32.mrf.mxu1  ;;  %v2264_v6 = vpop.f32.mrf.mxu0 }
 0x7eb   :  { %v5776_v9 = vpop.f32.mrf.mxu1  ;;  %v5836_v20 = vpop.f32.mrf.mxu0 }
 0x7ec   :  { %v7869_v20 = vld [vmem:[#allocation10 + $0x38] sm:$0xff]  }
 0x805   :  { %v2221_v22 = vpop.f32.mrf.mxu1 }
 0x806   :  { %v2222_v37 = vadd.f32 %v7789_v36, %v2221_v22  ;;  %v7879_v22 = vld [vmem:[#allocation10 + $0x30] sm:$0xff]  }
 0x807   :  { %v5815_v38 = vpop.f32.mrf.mxu1 }
 0x808   :  { %v2267_v52 = vadd.f32 %v2261_v15, %v2222_v37  ;;  %v7885_v37 = vld [vmem:[#allocation10 + $0x28] sm:$0xff]  }
 0x809   :  { %v2224_v39 = vpop.f32.mrf.mxu1  ;;  %v7888_v38 = vld [vmem:[#allocation11 + $0x28] sm:$0xff]  }
 0x80a   :  { %6782 = vtanh.f32 %v2267_v52  ;;  %v7894_v39 = vld [vmem:[#allocation10 + $0x20] sm:$0xff]  }
 0x80b   :  { %v5816_v56 = vpop.f32.mrf.mxu1 }
 0x80c   :  { %v7897_v56 = vld [vmem:[#allocation11 + $0x20] sm:$0xff]  }
 0x817   :  { %v6783_v40 = vpop.eup %6782 }
 0x818   :  { %v2269_v41 = vpack.c.bf16 %v6783_v40, %v6783_v40  ;;  %v7902_v40 = vld [vmem:[#allocation10 + $0x18] sm:$0xff]  }
 0x81a   :  { %5854 = vmatmul.mubr.bf16.vlgmr.msra.gmra.mxu1 %v2269_v41  ;;  %5914 = vmatmul.mubr.bf16.vlgmr.msra.gmra.mxu0 %v2269_v41  ;;  %v7910_v41 = vld [vmem:[#allocation10 + $0x10] sm:$0xff]  }
 0x81b   :  { %5878 = vmatpush3.bf16.msra.mxu1 %v7450_v17  ;;  %5938 = vmatpush3.bf16.msra.mxu0 %v7793_v4 }
 0x81c   :  { %5879 = vmatprep.subr.bf16.mxu1 %v7028_v0  ;;  %5939 = vmatprep.subr.bf16.mxu0 %v7028_v0 }
 0x81d   :  { %5893 = vmatprep.mubr.msk.bf16.mxu1 %vm7029_vm0, %v7028_v0  ;;  %5953 = vmatprep.mubr.msk.bf16.mxu0 %vm7029_vm0, %v7028_v0 }
 0x81f   :  { %5880 = vmatpush3.bf16.msra.mxu1 %v7460_v18  ;;  %5940 = vmatpush3.bf16.msra.mxu0 %v7803_v55 }
 0x820   :  { %5881 = vmatprep.subr.bf16.mxu1 %v7028_v0  ;;  %5941 = vmatprep.subr.bf16.mxu0 %v7028_v0 }
 0x823   :  { %5882 = vmatpush3.bf16.msra.mxu1 %v7466_v63  ;;  %5942 = vmatpush3.bf16.msra.mxu0 %v7470_v53 }
 0x824   :  { %5883 = vmatprep.subr.bf16.mxu1 %v7028_v0  ;;  %5943 = vmatprep.subr.bf16.mxu0 %v7028_v0 }
 0x827   :  { %5884 = vmatpush3.bf16.msra.mxu1 %v7474_v8  ;;  %5944 = vmatpush3.bf16.msra.mxu0 %v7478_v10 }
 0x828   :  { %5885 = vmatprep.subr.bf16.mxu1 %v7028_v0  ;;  %5945 = vmatprep.subr.bf16.mxu0 %v7028_v0 }
 0x82b   :  { %5886 = vmatpush3.bf16.msra.mxu1 %v7482_v11  ;;  %5946 = vmatpush3.bf16.msra.mxu0 %v7486_v13  ;;  %v6688_v11 = vld [vmem:[#allocation3 + $0x1f8] sm:$0xff]   ;;  %v6689_v13 = vld [vmem:[#allocation3 + $0x1f0] sm:$0xff]  }
 0x82c   :  { %5887 = vmatprep.subr.bf16.mxu1 %v7028_v0  ;;  %5947 = vmatprep.subr.bf16.mxu0 %v7028_v0 }
 0x82f   :  { %5888 = vmatpush3.bf16.msra.mxu1 %v7490_v24  ;;  %5948 = vmatpush3.bf16.msra.mxu0 %v7494_v26  ;;  %v6690_v24 = vld [vmem:[#allocation3 + $0x1e8] sm:$0xff]   ;;  %v6691_v26 = vld [vmem:[#allocation3 + $0x1e0] sm:$0xff]  }
 0x830   :  { %5889 = vmatprep.subr.bf16.mxu1 %v7028_v0  ;;  %5949 = vmatprep.subr.bf16.mxu0 %v7028_v0 }
 0x832   :  { %v2412_v17 = vpop.f32.mrf.mxu0 }
 0x833   :  { %5890 = vmatpush3.bf16.msra.mxu1 %v7498_v27  ;;  %v2418_v18 = vadd.f32 %v2412_v17, %v7174_v21  ;;  %5950 = vmatpush3.bf16.msra.mxu0 %v7502_v54  ;;  %v6692_v27 = vld [vmem:[#allocation3 + $0x1d8] sm:$0xff]   ;;  %v6693_v54 = vld [vmem:[#allocation3 + $0x1d0] sm:$0xff]  }
 0x834   :  { %5891 = vmatprep.subr.bf16.mxu1 %v7028_v0  ;;  %v5875_v63 = vpop.f32.mrf.mxu0  ;;  %5951 = vmatprep.subr.bf16.mxu0 %v7028_v0  ;;  %v7913_v17 = vld [vmem:[#allocation11 + $0x10] sm:$0xff]  }
 0x835   :  { %6784 = vtanh.f32 %v2418_v18  ;;  %v7918_v18 = vld [vmem:[#allocation10 + $0x8] sm:$0xff]  }
 0x836   :  { %v2415_v53 = vpop.f32.mrf.mxu0  ;;  %v7921_v63 = vld [vmem:[#allocation11 + $0x8] sm:$0xff]  }
 0x837   :  { %5892 = vmatpush3.bf16.msra.mxu1 %v7506_v32  ;;  %5952 = vmatpush3.bf16.msra.mxu0 %v7509_v34  ;;  %v6694_v32 = vld [vmem:[#allocation3 + $0x1c8] sm:$0xff]   ;;  %v6695_v34 = vld [vmem:[#allocation3 + $0x1c0] sm:$0xff]  }
 0x838   :  { %v5876_v8 = vpop.f32.mrf.mxu0  ;;  %5917 = vmatprep.subr.bf16.mxu1 %v7028_v0  ;;  %5977 = vmatprep.subr.bf16.mxu0 %v7028_v0 }
 0x839   :  { %v7926_v8 = vld [vmem:[#allocation10] sm:$0xff]  }
 0x83a   :  { %5894 = vmatmul.mubr.bf16.vlgmr.msra.gmra.mxu1 %v7755_v49 }
 0x83b   :  { %5933 = vmatprep.mubr.msk.bf16.mxu1 %vm7029_vm0, %v7028_v0  ;;  %5918 = vmatpush3.bf16.msra.mxu1 %v6688_v11 }
 0x83c   :  { %5919 = vmatprep.subr.bf16.mxu1 %v7028_v0 }
 0x83f   :  { %5920 = vmatpush3.bf16.msra.mxu1 %v6689_v13  ;;  %v6703_v13 = vld [vmem:[#allocation3 + $0x200] sm:$0xff]  }
 0x840   :  { %5921 = vmatprep.subr.bf16.mxu1 %v7028_v0 }
 0x842   :  { %v6785_v21 = vpop.eup %6784 }
 0x843   :  { %v7836_v10 = vpack.c.bf16 %v6785_v21, %v6785_v21  ;;  %5922 = vmatpush3.bf16.msra.mxu1 %v6690_v24  ;;  %v7929_v21 = vld [vmem:[#allocation11] sm:$0xff]  }
 0x844   :  { %5923 = vmatprep.subr.bf16.mxu1 %v7028_v0 }
 0x845   :  { %5954 = vmatmul.mubr.bf16.vlgmr.msra.gmra.mxu0 %v7836_v10 }
 0x846   :  { %5978 = vmatpush3.bf16.msra.mxu0 %v7529_v46  ;;  %5993 = vmatprep.mubr.msk.bf16.mxu0 %vm7029_vm0, %v7028_v0 }
 0x847   :  { %5979 = vmatprep.subr.bf16.mxu0 %v7028_v0  ;;  %5924 = vmatpush3.bf16.msra.mxu1 %v6691_v26 }
 0x848   :  { %5925 = vmatprep.subr.bf16.mxu1 %v7028_v0 }
 0x84a   :  { %5980 = vmatpush3.bf16.msra.mxu0 %v7535_v47 }
 0x84b   :  { %5981 = vmatprep.subr.bf16.mxu0 %v7028_v0  ;;  %5926 = vmatpush3.bf16.msra.mxu1 %v6692_v27 }
 0x84c   :  { %5927 = vmatprep.subr.bf16.mxu1 %v7028_v0 }
 0x84e   :  { %5982 = vmatpush3.bf16.msra.mxu0 %v7539_v3 }
 0x84f   :  { %5983 = vmatprep.subr.bf16.mxu0 %v7028_v0  ;;  %5928 = vmatpush3.bf16.msra.mxu1 %v6693_v54 }
 0x850   :  { %5929 = vmatprep.subr.bf16.mxu1 %v7028_v0 }
 0x852   :  { %5984 = vmatpush3.bf16.msra.mxu0 %v7545_v51 }
 0x853   :  { %5985 = vmatprep.subr.bf16.mxu0 %v7028_v0  ;;  %5930 = vmatpush3.bf16.msra.mxu1 %v6694_v32 }
 0x854   :  { %5931 = vmatprep.subr.bf16.mxu1 %v7028_v0 }
 0x856   :  { %5986 = vmatpush3.bf16.msra.mxu0 %v7551_v61 }
 0x857   :  { %5987 = vmatprep.subr.bf16.mxu0 %v7028_v0  ;;  %5932 = vmatpush3.bf16.msra.mxu1 %v6695_v34 }
 0x858   :  { %5957 = vmatprep.subr.bf16.mxu1 %v7028_v0 }
 0x85a   :  { %5988 = vmatpush3.bf16.msra.mxu0 %v7555_v14 }
 0x85b   :  { %5989 = vmatprep.subr.bf16.mxu0 %v7028_v0 }
 0x85e   :  { %5990 = vmatpush3.bf16.msra.mxu0 %v7629_v7 }
 0x85f   :  { %5991 = vmatprep.subr.bf16.mxu0 %v7028_v0 }
 0x862   :  { %5992 = vmatpush3.bf16.msra.mxu0 %v7633_v57 }
 0x863   :  { %6017 = vmatprep.subr.bf16.mxu0 %v7028_v0 }
 0x8da   :  { %v2369_v35 = vpop.f32.mrf.mxu1  ;;  %v2494_v30 = vpop.f32.mrf.mxu0 }
 0x8db   :  { %v7866_v43 = vadd.f32 %v2369_v35, %v7784_v16 }
 0x8dc   :  { %v5855_v44 = vpop.f32.mrf.mxu1  ;;  %v5915_v45 = vpop.f32.mrf.mxu0 }
 0x8de   :  { %v2372_v48 = vpop.f32.mrf.mxu1  ;;  %v2497_v49 = vpop.f32.mrf.mxu0 }
 0x8e0   :  { %v5856_v50 = vpop.f32.mrf.mxu1  ;;  %v5916_v5 = vpop.f32.mrf.mxu0 }
 0x8fa   :  { %v2454_v60 = vpop.f32.mrf.mxu1 }
 0x8fb   :  { %v2455_v58 = vadd.f32 %v7789_v36, %v2454_v60 }
 0x8fc   :  { %v5895_v12 = vpop.f32.mrf.mxu1 }
 0x8fd   :  { %v2500_v42 = vadd.f32 %v2494_v30, %v2455_v58 }
 0x8fe   :  { %v2457_v1 = vpop.f32.mrf.mxu1 }
 0x8ff   :  { %6786 = vtanh.f32 %v2500_v42 }
 0x900   :  { %v5896_v15 = vpop.f32.mrf.mxu1 }
 0x905   :  { %v2645_v59 = vpop.f32.mrf.mxu0 }
 0x906   :  { %v2651_v52 = vadd.f32 %v2645_v59, %v7180_v25  ;;  %v7905_v25 = vld [vmem:[#allocation11 + $0x18] sm:$0xff]  }
 0x907   :  { %v5955_v62 = vpop.f32.mrf.mxu0 }
 0x908   :  { %6788 = vtanh.f32 %v2651_v52  ;;  %v8031_v52 = vld [vmem:[#allocation11 + $0x58] sm:$0xff]  }
 0x909   :  { %v2648_v2 = vpop.f32.mrf.mxu0 }
 0x90a   :  { %v8011_v2 = vld [vmem:[#allocation11 + $0x78] sm:$0xff]  }
 0x90b   :  { %v5956_v6 = vpop.f32.mrf.mxu0 }
 0x90c   :  { %v6787_v16 = vpop.eup %6786  ;;  %v8019_v6 = vld [vmem:[#allocation11 + $0x70] sm:$0xff]  }
 0x90d   :  { %v2502_v9 = vpack.c.bf16 %v6787_v16, %v6787_v16  ;;  %v8023_v16 = vld [vmem:[#allocation11 + $0x68] sm:$0xff]  }
 0x90f   :  { %5934 = vmatmul.mubr.bf16.vlgmr.msra.gmra.mxu1 %v2502_v9  ;;  %5994 = vmatmul.mubr.bf16.vlgmr.msra.gmra.mxu0 %v2502_v9  ;;  %v8027_v9 = vld [vmem:[#allocation11 + $0x60] sm:$0xff]  }
 0x910   :  { %5958 = vmatpush3.bf16.msra.mxu1 %v7869_v20  ;;  %6018 = vmatpush3.bf16.msra.mxu0 %v7793_v4 }
 0x911   :  { %5959 = vmatprep.subr.bf16.mxu1 %v7028_v0  ;;  %6019 = vmatprep.subr.bf16.mxu0 %v7028_v0 }
 0x912   :  { %5973 = vmatprep.mubr.msk.bf16.mxu1 %vm7029_vm0, %v7028_v0  ;;  %6033 = vmatprep.mubr.msk.bf16.mxu0 %vm7029_vm0, %v7028_v0 }
 0x914   :  { %5960 = vmatpush3.bf16.msra.mxu1 %v7879_v22  ;;  %6020 = vmatpush3.bf16.msra.mxu0 %v7803_v55 }
 0x915   :  { %5961 = vmatprep.subr.bf16.mxu1 %v7028_v0  ;;  %6021 = vmatprep.subr.bf16.mxu0 %v7028_v0  ;;  %v6789_v53 = vpop.eup %6788 }
 0x916   :  { %v7932_v11 = vpack.c.bf16 %v6789_v53, %v6789_v53  ;;  %v8035_v53 = vld [vmem:[#allocation11 + $0x50] sm:$0xff]  }
 0x918   :  { %5962 = vmatpush3.bf16.msra.mxu1 %v7885_v37  ;;  %6022 = vmatpush3.bf16.msra.mxu0 %v7888_v38 }
 0x919   :  { %5963 = vmatprep.subr.bf16.mxu1 %v7028_v0  ;;  %6023 = vmatprep.subr.bf16.mxu0 %v7028_v0 }
 0x91c   :  { %5964 = vmatpush3.bf16.msra.mxu1 %v7894_v39  ;;  %6024 = vmatpush3.bf16.msra.mxu0 %v7897_v56 }
 0x91d   :  { %5965 = vmatprep.subr.bf16.mxu1 %v7028_v0  ;;  %6025 = vmatprep.subr.bf16.mxu0 %v7028_v0 }
 0x920   :  { %5966 = vmatpush3.bf16.msra.mxu1 %v7902_v40  ;;  %6026 = vmatpush3.bf16.msra.mxu0 %v7905_v25 }
 0x921   :  { %5967 = vmatprep.subr.bf16.mxu1 %v7028_v0  ;;  %6027 = vmatprep.subr.bf16.mxu0 %v7028_v0 }
 0x924   :  { %5968 = vmatpush3.bf16.msra.mxu1 %v7910_v41  ;;  %6028 = vmatpush3.bf16.msra.mxu0 %v7913_v17 }
 0x925   :  { %5969 = vmatprep.subr.bf16.mxu1 %v7028_v0  ;;  %6029 = vmatprep.subr.bf16.mxu0 %v7028_v0 }
 0x928   :  { %5970 = vmatpush3.bf16.msra.mxu1 %v7918_v18  ;;  %6030 = vmatpush3.bf16.msra.mxu0 %v7921_v63 }
 0x929   :  { %5971 = vmatprep.subr.bf16.mxu1 %v7028_v0  ;;  %6031 = vmatprep.subr.bf16.mxu0 %v7028_v0 }
 0x92c   :  { %5972 = vmatpush3.bf16.msra.mxu1 %v7926_v8  ;;  %6032 = vmatpush3.bf16.msra.mxu0 %v7929_v21 }
 0x92d   :  { %5997 = vmatprep.subr.bf16.mxu1 %v7028_v0  ;;  %6057 = vmatprep.subr.bf16.mxu0 %v7028_v0 }
 0x92f   :  { %5974 = vmatmul.mubr.bf16.vlgmr.msra.gmra.mxu1 %v7836_v10  ;;  %6034 = vmatmul.mubr.bf16.vlgmr.msra.gmra.mxu0 %v7932_v11  ;;  %v6702_v10 = vld [vmem:[#allocation3 + $0x208] sm:$0xff]  }
 0x930   :  { %6058 = vmatpush3.bf16.msra.mxu0 %v7529_v46  ;;  %6013 = vmatprep.mubr.msk.bf16.mxu1 %vm7029_vm0, %v7028_v0  ;;  %v6696_v46 = vld [vmem:[#allocation3 + $0x238] sm:$0xff]  }
 0x931   :  { %6059 = vmatprep.subr.bf16.mxu0 %v7028_v0  ;;  %6073 = vmatprep.mubr.msk.bf16.mxu0 %vm7029_vm0, %v7028_v0 }
 0x932   :  { %5998 = vmatpush3.bf16.msra.mxu1 %v6696_v46  ;;  %v6705_v46 = vld [vmem:[#allocation3 + $0x270] sm:$0xff]  }
 0x933   :  { %5999 = vmatprep.subr.bf16.mxu1 %v7028_v0 }
 0x934   :  { %6060 = vmatpush3.bf16.msra.mxu0 %v7535_v47  ;;  %v6697_v47 = vld [vmem:[#allocation3 + $0x230] sm:$0xff]  }
 0x935   :  { %6061 = vmatprep.subr.bf16.mxu0 %v7028_v0 }
 0x936   :  { %6000 = vmatpush3.bf16.msra.mxu1 %v6697_v47  ;;  %v6706_v47 = vld [vmem:[#allocation3 + $0x268] sm:$0xff]  }
 0x937   :  { %6001 = vmatprep.subr.bf16.mxu1 %v7028_v0 }
 0x938   :  { %6062 = vmatpush3.bf16.msra.mxu0 %v7539_v3  ;;  %v6698_v3 = vld [vmem:[#allocation3 + $0x228] sm:$0xff]  }
 0x939   :  { %6063 = vmatprep.subr.bf16.mxu0 %v7028_v0 }
 0x93a   :  { %6002 = vmatpush3.bf16.msra.mxu1 %v6698_v3  ;;  %v6707_v3 = vld [vmem:[#allocation3 + $0x260] sm:$0xff]  }
 0x93b   :  { %6003 = vmatprep.subr.bf16.mxu1 %v7028_v0 }
 0x93c   :  { %6064 = vmatpush3.bf16.msra.mxu0 %v7545_v51  ;;  %v6699_v51 = vld [vmem:[#allocation3 + $0x220] sm:$0xff]  }
 0x93d   :  { %6065 = vmatprep.subr.bf16.mxu0 %v7028_v0 }
 0x93e   :  { %6004 = vmatpush3.bf16.msra.mxu1 %v6699_v51  ;;  %v6710_v51 = vld [vmem:[#allocation3 + $0x248] sm:$0xff]  }
 0x93f   :  { %6005 = vmatprep.subr.bf16.mxu1 %v7028_v0 }
 0x940   :  { %6066 = vmatpush3.bf16.msra.mxu0 %v7551_v61  ;;  %v6700_v61 = vld [vmem:[#allocation3 + $0x218] sm:$0xff]  }
 0x941   :  { %6067 = vmatprep.subr.bf16.mxu0 %v7028_v0 }
 0x942   :  { %6006 = vmatpush3.bf16.msra.mxu1 %v6700_v61  ;;  %v6711_v61 = vld [vmem:[#allocation3 + $0x240] sm:$0xff]  }
 0x943   :  { %6007 = vmatprep.subr.bf16.mxu1 %v7028_v0 }
 0x944   :  { %6068 = vmatpush3.bf16.msra.mxu0 %v7555_v14  ;;  %v6701_v14 = vld [vmem:[#allocation3 + $0x210] sm:$0xff]  }
 0x945   :  { %6069 = vmatprep.subr.bf16.mxu0 %v7028_v0 }
 0x946   :  { %6008 = vmatpush3.bf16.msra.mxu1 %v6701_v14 }
 0x947   :  { %6009 = vmatprep.subr.bf16.mxu1 %v7028_v0 }
 0x948   :  { %6070 = vmatpush3.bf16.msra.mxu0 %v7629_v7 }
 0x949   :  { %6071 = vmatprep.subr.bf16.mxu0 %v7028_v0 }
 0x94a   :  { %6010 = vmatpush3.bf16.msra.mxu1 %v6702_v10 }
 0x94b   :  { %6011 = vmatprep.subr.bf16.mxu1 %v7028_v0 }
 0x94c   :  { %6072 = vmatpush3.bf16.msra.mxu0 %v7633_v57 }
 0x94d   :  { %6097 = vmatprep.subr.bf16.mxu0 %v7028_v0 }
 0x94e   :  { %6012 = vmatpush3.bf16.msra.mxu1 %v6703_v13 }
 0x94f   :  { %6037 = vmatprep.subr.bf16.mxu1 %v7028_v0 }
 0x9cf   :  { %v2602_v24 = vpop.f32.mrf.mxu1  ;;  %v2727_v26 = vpop.f32.mrf.mxu0 }
 0x9d0   :  { %v7967_v27 = vadd.f32 %v2602_v24, %v7866_v43 }
 0x9d1   :  { %v5935_v54 = vpop.f32.mrf.mxu1  ;;  %v5995_v32 = vpop.f32.mrf.mxu0 }
 0x9d3   :  { %v2605_v34 = vpop.f32.mrf.mxu1  ;;  %v2730_v35 = vpop.f32.mrf.mxu0 }
 0x9d5   :  { %v5936_v30 = vpop.f32.mrf.mxu1  ;;  %v5996_v44 = vpop.f32.mrf.mxu0 }
 0x9ef   :  { %v2687_v45 = vpop.f32.mrf.mxu1  ;;  %v2878_v48 = vpop.f32.mrf.mxu0 }
 0x9f0   :  { %v2688_v49 = vadd.f32 %v7789_v36, %v2687_v45  ;;  %v2884_v59 = vadd.f32 %v2878_v48, %v7171_v19 }
 0x9f1   :  { %v5975_v50 = vpop.f32.mrf.mxu1  ;;  %v6035_v5 = vpop.f32.mrf.mxu0 }
 0x9f2   :  { %v2733_v60 = vadd.f32 %v2727_v26, %v2688_v49 }
 0x9f3   :  { %v2690_v58 = vpop.f32.mrf.mxu1  ;;  %v2881_v12 = vpop.f32.mrf.mxu0 }
 0x9f4   :  { %6790 = vtanh.f32 %v2733_v60 }
 0x9f5   :  { %v5976_v42 = vpop.f32.mrf.mxu1  ;;  %v6036_v1 = vpop.f32.mrf.mxu0  ;;  %6792 = vtanh.f32 %v2884_v59  ;;  %v8116_v59 = vld [vmem:[#allocation11 + $0x40] sm:$0xff]  }
 0xa01   :  { %v6791_v43 = vpop.eup %6790 }
 0xa02   :  { %v2735_v15 = vpack.c.bf16 %v6791_v43, %v6791_v43  ;;  %v6793_v19 = vpop.eup %6792 }
 0xa03   :  { %v8005_v62 = vpack.c.bf16 %v6793_v19, %v6793_v19  ;;  %v6712_v19 = vld [vmem:[#allocation3 + $0x2b8] sm:$0xff]  }
 0xa04   :  { %6014 = vmatmul.mubr.bf16.vlgmr.msra.gmra.mxu1 %v2735_v15  ;;  %6074 = vmatmul.mubr.bf16.vlgmr.msra.gmra.mxu0 %v2735_v15  ;;  %v8112_v15 = vld [vmem:[#allocation11 + $0x48] sm:$0xff]  }
 0xa05   :  { %6038 = vmatpush3.bf16.msra.mxu1 %v7869_v20  ;;  %6098 = vmatpush3.bf16.msra.mxu0 %v7793_v4 }
 0xa06   :  { %6039 = vmatprep.subr.bf16.mxu1 %v7028_v0  ;;  %6099 = vmatprep.subr.bf16.mxu0 %v7028_v0 }
 0xa07   :  { %6053 = vmatprep.mubr.msk.bf16.mxu1 %vm7029_vm0, %v7028_v0  ;;  %6113 = vmatprep.mubr.msk.bf16.mxu0 %vm7029_vm0, %v7028_v0 }
 0xa09   :  { %6040 = vmatpush3.bf16.msra.mxu1 %v7879_v22  ;;  %6100 = vmatpush3.bf16.msra.mxu0 %v7803_v55 }
 0xa0a   :  { %6041 = vmatprep.subr.bf16.mxu1 %v7028_v0  ;;  %6101 = vmatprep.subr.bf16.mxu0 %v7028_v0 }
 0xa0d   :  { %6042 = vmatpush3.bf16.msra.mxu1 %v7885_v37  ;;  %6102 = vmatpush3.bf16.msra.mxu0 %v7888_v38 }
 0xa0e   :  { %6043 = vmatprep.subr.bf16.mxu1 %v7028_v0  ;;  %6103 = vmatprep.subr.bf16.mxu0 %v7028_v0 }
 0xa11   :  { %6044 = vmatpush3.bf16.msra.mxu1 %v7894_v39  ;;  %6104 = vmatpush3.bf16.msra.mxu0 %v7897_v56 }
 0xa12   :  { %6045 = vmatprep.subr.bf16.mxu1 %v7028_v0  ;;  %6105 = vmatprep.subr.bf16.mxu0 %v7028_v0 }
 0xa15   :  { %6046 = vmatpush3.bf16.msra.mxu1 %v7902_v40  ;;  %6106 = vmatpush3.bf16.msra.mxu0 %v7905_v25 }
 0xa16   :  { %6047 = vmatprep.subr.bf16.mxu1 %v7028_v0  ;;  %6107 = vmatprep.subr.bf16.mxu0 %v7028_v0 }
 0xa19   :  { %6048 = vmatpush3.bf16.msra.mxu1 %v7910_v41  ;;  %6108 = vmatpush3.bf16.msra.mxu0 %v7913_v17 }
 0xa1a   :  { %6049 = vmatprep.subr.bf16.mxu1 %v7028_v0  ;;  %6109 = vmatprep.subr.bf16.mxu0 %v7028_v0 }
 0xa1d   :  { %6050 = vmatpush3.bf16.msra.mxu1 %v7918_v18  ;;  %6110 = vmatpush3.bf16.msra.mxu0 %v7921_v63 }
 0xa1e   :  { %6051 = vmatprep.subr.bf16.mxu1 %v7028_v0  ;;  %6111 = vmatprep.subr.bf16.mxu0 %v7028_v0 }
 0xa21   :  { %6052 = vmatpush3.bf16.msra.mxu1 %v7926_v8  ;;  %6112 = vmatpush3.bf16.msra.mxu0 %v7929_v21 }
 0xa22   :  { %6077 = vmatprep.subr.bf16.mxu1 %v7028_v0  ;;  %6137 = vmatprep.subr.bf16.mxu0 %v7028_v0 }
 0xa24   :  { %6054 = vmatmul.mubr.bf16.vlgmr.msra.gmra.mxu1 %v7932_v11  ;;  %6114 = vmatmul.mubr.bf16.vlgmr.msra.gmra.mxu0 %v8005_v62  ;;  %v6704_v11 = vld [vmem:[#allocation3 + $0x278] sm:$0xff]  }
 0xa25   :  { %6138 = vmatpush3.bf16.msra.mxu0 %v8011_v2  ;;  %6093 = vmatprep.mubr.msk.bf16.mxu1 %vm7029_vm0, %v7028_v0 }
 0xa26   :  { %6139 = vmatprep.subr.bf16.mxu0 %v7028_v0  ;;  %6153 = vmatprep.mubr.msk.bf16.mxu0 %vm7029_vm0, %v7028_v0 }
 0xa27   :  { %6078 = vmatpush3.bf16.msra.mxu1 %v6704_v11  ;;  %v6714_v11 = vld [vmem:[#allocation3 + $0x2a8] sm:$0xff]  }
 0xa28   :  { %6079 = vmatprep.subr.bf16.mxu1 %v7028_v0 }
 0xa29   :  { %6140 = vmatpush3.bf16.msra.mxu0 %v8019_v6 }
 0xa2a   :  { %6141 = vmatprep.subr.bf16.mxu0 %v7028_v0 }
 0xa2b   :  { %6080 = vmatpush3.bf16.msra.mxu1 %v6705_v46  ;;  %v6715_v46 = vld [vmem:[#allocation3 + $0x2a0] sm:$0xff]  }
 0xa2c   :  { %6081 = vmatprep.subr.bf16.mxu1 %v7028_v0 }
 0xa2d   :  { %6142 = vmatpush3.bf16.msra.mxu0 %v8023_v16 }
 0xa2e   :  { %6143 = vmatprep.subr.bf16.mxu0 %v7028_v0 }
 0xa2f   :  { %6082 = vmatpush3.bf16.msra.mxu1 %v6706_v47  ;;  %v6716_v47 = vld [vmem:[#allocation3 + $0x298] sm:$0xff]  }
 0xa30   :  { %6083 = vmatprep.subr.bf16.mxu1 %v7028_v0 }
 0xa31   :  { %6144 = vmatpush3.bf16.msra.mxu0 %v8027_v9 }
 0xa32   :  { %6145 = vmatprep.subr.bf16.mxu0 %v7028_v0 }
 0xa33   :  { %6084 = vmatpush3.bf16.msra.mxu1 %v6707_v3  ;;  %v6717_v3 = vld [vmem:[#allocation3 + $0x290] sm:$0xff]  }
 0xa34   :  { %6085 = vmatprep.subr.bf16.mxu1 %v7028_v0 }
 0xa35   :  { %6146 = vmatpush3.bf16.msra.mxu0 %v8031_v52 }
 0xa36   :  { %6147 = vmatprep.subr.bf16.mxu0 %v7028_v0 }
 0xa39   :  { %6148 = vmatpush3.bf16.msra.mxu0 %v8035_v53 }
 0xa3a   :  { %6149 = vmatprep.subr.bf16.mxu0 %v7028_v0 }
 0xa3d   :  { %6150 = vmatpush3.bf16.msra.mxu0 %v7629_v7  ;;  %v6708_v7 = vld [vmem:[#allocation3 + $0x258] sm:$0xff]  }
 0xa3e   :  { %6151 = vmatprep.subr.bf16.mxu0 %v7028_v0  ;;  %6086 = vmatpush3.bf16.msra.mxu1 %v6708_v7  ;;  %v6718_v7 = vld [vmem:[#allocation3 + $0x288] sm:$0xff]  }
 0xa3f   :  { %6087 = vmatprep.subr.bf16.mxu1 %v7028_v0 }
 0xa41   :  { %6152 = vmatpush3.bf16.msra.mxu0 %v7633_v57  ;;  %v6709_v57 = vld [vmem:[#allocation3 + $0x250] sm:$0xff]  }
 0xa42   :  { %6177 = vmatprep.subr.bf16.mxu0 %v7028_v0  ;;  %6088 = vmatpush3.bf16.msra.mxu1 %v6709_v57  ;;  %v6719_v57 = vld [vmem:[#allocation3 + $0x280] sm:$0xff]  }
 0xa43   :  { %6089 = vmatprep.subr.bf16.mxu1 %v7028_v0 }
 0xa46   :  { %6090 = vmatpush3.bf16.msra.mxu1 %v6710_v51 }
 0xa47   :  { %6091 = vmatprep.subr.bf16.mxu1 %v7028_v0 }
 0xa4a   :  { %6092 = vmatpush3.bf16.msra.mxu1 %v6711_v61 }
 0xa4b   :  { %6117 = vmatprep.subr.bf16.mxu1 %v7028_v0 }
 0xac4   :  { %v2835_v14 = vpop.f32.mrf.mxu1  ;;  %v2960_v10 = vpop.f32.mrf.mxu0 }
 0xac5   :  { %v8052_v13 = vadd.f32 %v2835_v14, %v7967_v27 }
 0xac6   :  { %v6015_v24 = vpop.f32.mrf.mxu1  ;;  %v6075_v26 = vpop.f32.mrf.mxu0 }
 0xac8   :  { %v2838_v54 = vpop.f32.mrf.mxu1  ;;  %v2963_v32 = vpop.f32.mrf.mxu0 }
 0xaca   :  { %v6016_v34 = vpop.f32.mrf.mxu1  ;;  %v6076_v35 = vpop.f32.mrf.mxu0 }
 0xae4   :  { %v2920_v30 = vpop.f32.mrf.mxu1  ;;  %v3111_v44 = vpop.f32.mrf.mxu0 }
 0xae5   :  { %v2921_v45 = vadd.f32 %v7789_v36, %v2920_v30  ;;  %v3117_v1 = vadd.f32 %v3111_v44, %v7177_v23 }
 0xae6   :  { %v6055_v48 = vpop.f32.mrf.mxu1  ;;  %v6115_v49 = vpop.f32.mrf.mxu0 }
 0xae7   :  { %v2966_v50 = vadd.f32 %v2960_v10, %v2921_v45 }
 0xae8   :  { %v2923_v5 = vpop.f32.mrf.mxu1  ;;  %v3114_v60 = vpop.f32.mrf.mxu0 }
 0xae9   :  { %6794 = vtanh.f32 %v2966_v50 }
 0xaea   :  { %v6056_v58 = vpop.f32.mrf.mxu1  ;;  %v6116_v12 = vpop.f32.mrf.mxu0  ;;  %6796 = vtanh.f32 %v3117_v1  ;;  %v6723_v1 = vld [vmem:[#allocation3 + $0x2e0] sm:$0xff]  }
 0xaf6   :  { %v6795_v27 = vpop.eup %6794 }
 0xaf7   :  { %v2968_v42 = vpack.c.bf16 %v6795_v27, %v6795_v27  ;;  %v6797_v23 = vpop.eup %6796  ;;  %v6721_v27 = vld [vmem:[#allocation3 + $0x2f0] sm:$0xff]  }
 0xaf8   :  { %v8090_v43 = vpack.c.bf16 %v6797_v23, %v6797_v23  ;;  %v6724_v23 = vld [vmem:[#allocation3 + $0x2d8] sm:$0xff]  }
 0xaf9   :  { %6094 = vmatmul.mubr.bf16.vlgmr.msra.gmra.mxu1 %v2968_v42  ;;  %6154 = vmatmul.mubr.bf16.vlgmr.msra.gmra.mxu0 %v2968_v42  ;;  %v6722_v42 = vld [vmem:[#allocation3 + $0x2e8] sm:$0xff]  }
 0xafa   :  { %6118 = vmatpush3.bf16.msra.mxu1 %v7869_v20  ;;  %6178 = vmatpush3.bf16.msra.mxu0 %v7793_v4 }
 0xafb   :  { %6119 = vmatprep.subr.bf16.mxu1 %v7028_v0  ;;  %6179 = vmatprep.subr.bf16.mxu0 %v7028_v0 }
 0xafc   :  { %6133 = vmatprep.mubr.msk.bf16.mxu1 %vm7029_vm0, %v7028_v0  ;;  %6193 = vmatprep.mubr.msk.bf16.mxu0 %vm7029_vm0, %v7028_v0 }
 0xafe   :  { %6120 = vmatpush3.bf16.msra.mxu1 %v7879_v22  ;;  %6180 = vmatpush3.bf16.msra.mxu0 %v7803_v55 }
 0xaff   :  { %6121 = vmatprep.subr.bf16.mxu1 %v7028_v0  ;;  %6181 = vmatprep.subr.bf16.mxu0 %v7028_v0 }
 0xb02   :  { %6122 = vmatpush3.bf16.msra.mxu1 %v7885_v37  ;;  %6182 = vmatpush3.bf16.msra.mxu0 %v7888_v38 }
 0xb03   :  { %6123 = vmatprep.subr.bf16.mxu1 %v7028_v0  ;;  %6183 = vmatprep.subr.bf16.mxu0 %v7028_v0 }
 0xb06   :  { %6124 = vmatpush3.bf16.msra.mxu1 %v7894_v39  ;;  %6184 = vmatpush3.bf16.msra.mxu0 %v7897_v56 }
 0xb07   :  { %6125 = vmatprep.subr.bf16.mxu1 %v7028_v0  ;;  %6185 = vmatprep.subr.bf16.mxu0 %v7028_v0 }
 0xb0a   :  { %6126 = vmatpush3.bf16.msra.mxu1 %v7902_v40  ;;  %6186 = vmatpush3.bf16.msra.mxu0 %v7905_v25 }
 0xb0b   :  { %6127 = vmatprep.subr.bf16.mxu1 %v7028_v0  ;;  %6187 = vmatprep.subr.bf16.mxu0 %v7028_v0 }
 0xb0e   :  { %6128 = vmatpush3.bf16.msra.mxu1 %v7910_v41  ;;  %6188 = vmatpush3.bf16.msra.mxu0 %v7913_v17 }
 0xb0f   :  { %6129 = vmatprep.subr.bf16.mxu1 %v7028_v0  ;;  %6189 = vmatprep.subr.bf16.mxu0 %v7028_v0 }
 0xb12   :  { %6130 = vmatpush3.bf16.msra.mxu1 %v7918_v18  ;;  %6190 = vmatpush3.bf16.msra.mxu0 %v7921_v63 }
 0xb13   :  { %6131 = vmatprep.subr.bf16.mxu1 %v7028_v0  ;;  %6191 = vmatprep.subr.bf16.mxu0 %v7028_v0 }
 0xb16   :  { %6132 = vmatpush3.bf16.msra.mxu1 %v7926_v8  ;;  %6192 = vmatpush3.bf16.msra.mxu0 %v7929_v21 }
 0xb17   :  { %6157 = vmatprep.subr.bf16.mxu1 %v7028_v0  ;;  %6217 = vmatprep.subr.bf16.mxu0 %v7028_v0 }
 0xb19   :  { %6134 = vmatmul.mubr.bf16.vlgmr.msra.gmra.mxu1 %v8005_v62  ;;  %6194 = vmatmul.mubr.bf16.vlgmr.msra.gmra.mxu0 %v8090_v43  ;;  %v6713_v62 = vld [vmem:[#allocation3 + $0x2b0] sm:$0xff]  }
 0xb1a   :  { %6218 = vmatpush3.bf16.msra.mxu0 %v8011_v2  ;;  %6173 = vmatprep.mubr.msk.bf16.mxu1 %vm7029_vm0, %v7028_v0 }
 0xb1b   :  { %6219 = vmatprep.subr.bf16.mxu0 %v7028_v0  ;;  %6233 = vmatprep.mubr.msk.bf16.mxu0 %vm7029_vm0, %v7028_v0 }
 0xb1c   :  { %6158 = vmatpush3.bf16.msra.mxu1 %v6712_v19  ;;  %v6726_v19 = vld [vmem:[#allocation3 + $0x2c8] sm:$0xff]  }
 0xb1d   :  { %6159 = vmatprep.subr.bf16.mxu1 %v7028_v0 }
 0xb1e   :  { %6220 = vmatpush3.bf16.msra.mxu0 %v8019_v6 }
 0xb1f   :  { %6221 = vmatprep.subr.bf16.mxu0 %v7028_v0 }
 0xb20   :  { %6160 = vmatpush3.bf16.msra.mxu1 %v6713_v62  ;;  %v6727_v62 = vld [vmem:[#allocation3 + $0x2c0] sm:$0xff]  }
 0xb21   :  { %6161 = vmatprep.subr.bf16.mxu1 %v7028_v0 }
 0xb22   :  { %6222 = vmatpush3.bf16.msra.mxu0 %v8023_v16 }
 0xb23   :  { %6223 = vmatprep.subr.bf16.mxu0 %v7028_v0 }
 0xb24   :  { %6162 = vmatpush3.bf16.msra.mxu1 %v6714_v11 }
 0xb25   :  { %6163 = vmatprep.subr.bf16.mxu1 %v7028_v0 }
 0xb26   :  { %6224 = vmatpush3.bf16.msra.mxu0 %v8027_v9 }
 0xb27   :  { %6225 = vmatprep.subr.bf16.mxu0 %v7028_v0 }
 0xb28   :  { %6164 = vmatpush3.bf16.msra.mxu1 %v6715_v46 }
 0xb29   :  { %6165 = vmatprep.subr.bf16.mxu1 %v7028_v0 }
 0xb2a   :  { %6226 = vmatpush3.bf16.msra.mxu0 %v8031_v52 }
 0xb2b   :  { %6227 = vmatprep.subr.bf16.mxu0 %v7028_v0 }
 0xb2c   :  { %6166 = vmatpush3.bf16.msra.mxu1 %v6716_v47 }
 0xb2d   :  { %6167 = vmatprep.subr.bf16.mxu1 %v7028_v0 }
 0xb2e   :  { %6228 = vmatpush3.bf16.msra.mxu0 %v8035_v53 }
 0xb2f   :  { %6229 = vmatprep.subr.bf16.mxu0 %v7028_v0 }
 0xb30   :  { %6168 = vmatpush3.bf16.msra.mxu1 %v6717_v3 }
 0xb31   :  { %6169 = vmatprep.subr.bf16.mxu1 %v7028_v0 }
 0xb32   :  { %6230 = vmatpush3.bf16.msra.mxu0 %v8112_v15 }
 0xb33   :  { %6231 = vmatprep.subr.bf16.mxu0 %v7028_v0 }
 0xb34   :  { %6170 = vmatpush3.bf16.msra.mxu1 %v6718_v7 }
 0xb35   :  { %6171 = vmatprep.subr.bf16.mxu1 %v7028_v0 }
 0xb36   :  { %6232 = vmatpush3.bf16.msra.mxu0 %v8116_v59 }
 0xb37   :  { %6257 = vmatprep.subr.bf16.mxu0 %v7028_v0 }
 0xb38   :  { %6172 = vmatpush3.bf16.msra.mxu1 %v6719_v57 }
 0xb39   :  { %6197 = vmatprep.subr.bf16.mxu1 %v7028_v0 }
 0xbb9   :  { %v3068_v51 = vpop.f32.mrf.mxu1  ;;  %v3193_v61 = vpop.f32.mrf.mxu0 }
 0xbba   :  { %v8129_v14 = vadd.f32 %v3068_v51, %v8052_v13 }
 0xbbb   :  { %v6095_v10 = vpop.f32.mrf.mxu1  ;;  %v6155_v24 = vpop.f32.mrf.mxu0 }
 0xbbd   :  { %v3071_v26 = vpop.f32.mrf.mxu1  ;;  %v3196_v54 = vpop.f32.mrf.mxu0 }
 0xbbe   :  { %v8207_v54 = vld [vmem:[%s8457_s4 + $0x1] ss:$0 sm:$0xff] }
 0xbbf   :  { %v6096_v32 = vpop.f32.mrf.mxu1  ;;  %v6156_v34 = vpop.f32.mrf.mxu0 }
 0xbd9   :  { %v3153_v35 = vpop.f32.mrf.mxu1  ;;  %v3344_v30 = vpop.f32.mrf.mxu0 }
 0xbda   :  { %v3154_v44 = vadd.f32 %v7789_v36, %v3153_v35  ;;  %v3350_v36 = vadd.f32 %v3344_v30, %v7186_v29 }
 0xbdb   :  { %v6135_v45 = vpop.f32.mrf.mxu1  ;;  %v6195_v48 = vpop.f32.mrf.mxu0 }
 0xbdc   :  { %v3199_v49 = vadd.f32 %v3193_v61, %v3154_v44 }
 0xbdd   :  { %v3156_v50 = vpop.f32.mrf.mxu1  ;;  %v3347_v5 = vpop.f32.mrf.mxu0 }
 0xbde   :  { %6798 = vtanh.f32 %v3199_v49  ;;  %v8211_v5 = vld [vmem:[#allocation11 + $0x38] sm:$0xff]  }
 0xbdf   :  { %v6136_v60 = vpop.f32.mrf.mxu1  ;;  %v6196_v58 = vpop.f32.mrf.mxu0  ;;  %6800 = vtanh.f32 %v3350_v36 }
 0xbe0   :  { %v8221_v60 = vld [vmem:[#allocation11 + $0x30] sm:$0xff]  }
 0xbeb   :  { %v6799_v13 = vpop.eup %6798 }
 0xbec   :  { %v3201_v12 = vpack.c.bf16 %v6799_v13, %v6799_v13  ;;  %v6801_v29 = vpop.eup %6800 }
 0xbee   :  { %6174 = vmatmul.mubr.bf16.vlgmr.msra.gmra.mxu1 %v3201_v12  ;;  %6234 = vmatmul.mubr.bf16.vlgmr.msra.gmra.mxu0 %v3201_v12 }
 0xbef   :  { %6198 = vmatpush3.bf16.msra.mxu1 %v7869_v20  ;;  %6258 = vmatpush3.bf16.msra.mxu0 %v7793_v4  ;;  %v8167_v4 = vpack.c.bf16 %v6801_v29, %v6801_v29 }
 0xbf0   :  { %6199 = vmatprep.subr.bf16.mxu1 %v7028_v0  ;;  %6259 = vmatprep.subr.bf16.mxu0 %v7028_v0 }
 0xbf1   :  { %6213 = vmatprep.mubr.msk.bf16.mxu1 %vm7029_vm0, %v7028_v0  ;;  %6273 = vmatprep.mubr.msk.bf16.mxu0 %vm7029_vm0, %v7028_v0 }
 0xbf3   :  { %6200 = vmatpush3.bf16.msra.mxu1 %v7879_v22  ;;  %6260 = vmatpush3.bf16.msra.mxu0 %v7803_v55  ;;  %v6720_v55 = vld [vmem:[#allocation3 + $0x2f8] sm:$0xff]  }
 0xbf4   :  { %6201 = vmatprep.subr.bf16.mxu1 %v7028_v0  ;;  %6261 = vmatprep.subr.bf16.mxu0 %v7028_v0 }
 0xbf7   :  { %6202 = vmatpush3.bf16.msra.mxu1 %v7885_v37  ;;  %6262 = vmatpush3.bf16.msra.mxu0 %v7888_v38 }
 0xbf8   :  { %6203 = vmatprep.subr.bf16.mxu1 %v7028_v0  ;;  %6263 = vmatprep.subr.bf16.mxu0 %v7028_v0 }
 0xbfb   :  { %6204 = vmatpush3.bf16.msra.mxu1 %v7894_v39  ;;  %6264 = vmatpush3.bf16.msra.mxu0 %v7897_v56 }
 0xbfc   :  { %6205 = vmatprep.subr.bf16.mxu1 %v7028_v0  ;;  %6265 = vmatprep.subr.bf16.mxu0 %v7028_v0 }
 0xbff   :  { %6206 = vmatpush3.bf16.msra.mxu1 %v7902_v40  ;;  %6266 = vmatpush3.bf16.msra.mxu0 %v7905_v25 }
 0xc00   :  { %6207 = vmatprep.subr.bf16.mxu1 %v7028_v0  ;;  %6267 = vmatprep.subr.bf16.mxu0 %v7028_v0 }
 0xc03   :  { %6208 = vmatpush3.bf16.msra.mxu1 %v7910_v41  ;;  %6268 = vmatpush3.bf16.msra.mxu0 %v7913_v17 }
 0xc04   :  { %6209 = vmatprep.subr.bf16.mxu1 %v7028_v0  ;;  %6269 = vmatprep.subr.bf16.mxu0 %v7028_v0 }
 0xc07   :  { %6210 = vmatpush3.bf16.msra.mxu1 %v7918_v18  ;;  %6270 = vmatpush3.bf16.msra.mxu0 %v7921_v63 }
 0xc08   :  { %6211 = vmatprep.subr.bf16.mxu1 %v7028_v0  ;;  %6271 = vmatprep.subr.bf16.mxu0 %v7028_v0 }
 0xc0b   :  { %6212 = vmatpush3.bf16.msra.mxu1 %v7926_v8  ;;  %6272 = vmatpush3.bf16.msra.mxu0 %v7929_v21 }
 0xc0c   :  { %6237 = vmatprep.subr.bf16.mxu1 %v7028_v0  ;;  %6297 = vmatprep.subr.bf16.mxu0 %v7028_v0 }
 0xc0e   :  { %6214 = vmatmul.mubr.bf16.vlgmr.msra.gmra.mxu1 %v8090_v43  ;;  %6274 = vmatmul.mubr.bf16.vlgmr.msra.gmra.mxu0 %v8167_v4  ;;  %v6725_v43 = vld [vmem:[#allocation3 + $0x2d0] sm:$0xff]  }
 0xc0f   :  { %6298 = vmatpush3.bf16.msra.mxu0 %v8011_v2  ;;  %6253 = vmatprep.mubr.msk.bf16.mxu1 %vm7029_vm0, %v7028_v0 }
 0xc10   :  { %6299 = vmatprep.subr.bf16.mxu0 %v7028_v0  ;;  %6313 = vmatprep.mubr.msk.bf16.mxu0 %vm7029_vm0, %v7028_v0 }
 0xc11   :  { %6238 = vmatpush3.bf16.msra.mxu1 %v6720_v55 }
 0xc12   :  { %6239 = vmatprep.subr.bf16.mxu1 %v7028_v0 }
 0xc13   :  { %6300 = vmatpush3.bf16.msra.mxu0 %v8019_v6 }
 0xc14   :  { %6301 = vmatprep.subr.bf16.mxu0 %v7028_v0 }
 0xc15   :  { %6240 = vmatpush3.bf16.msra.mxu1 %v6721_v27 }
 0xc16   :  { %6241 = vmatprep.subr.bf16.mxu1 %v7028_v0 }
 0xc17   :  { %6302 = vmatpush3.bf16.msra.mxu0 %v8023_v16 }
 0xc18   :  { %6303 = vmatprep.subr.bf16.mxu0 %v7028_v0 }
 0xc19   :  { %6242 = vmatpush3.bf16.msra.mxu1 %v6722_v42 }
 0xc1a   :  { %6243 = vmatprep.subr.bf16.mxu1 %v7028_v0 }
 0xc1b   :  { %6304 = vmatpush3.bf16.msra.mxu0 %v8027_v9 }
 0xc1c   :  { %6305 = vmatprep.subr.bf16.mxu0 %v7028_v0 }
 0xc1d   :  { %6244 = vmatpush3.bf16.msra.mxu1 %v6723_v1 }
 0xc1e   :  { %6245 = vmatprep.subr.bf16.mxu1 %v7028_v0 }
 0xc1f   :  { %6306 = vmatpush3.bf16.msra.mxu0 %v8031_v52 }
 0xc20   :  { %6307 = vmatprep.subr.bf16.mxu0 %v7028_v0 }
 0xc21   :  { %6246 = vmatpush3.bf16.msra.mxu1 %v6724_v23 }
 0xc22   :  { %6247 = vmatprep.subr.bf16.mxu1 %v7028_v0 }
 0xc23   :  { %6308 = vmatpush3.bf16.msra.mxu0 %v8035_v53 }
 0xc24   :  { %6309 = vmatprep.subr.bf16.mxu0 %v7028_v0 }
 0xc25   :  { %6248 = vmatpush3.bf16.msra.mxu1 %v6725_v43 }
 0xc26   :  { %6249 = vmatprep.subr.bf16.mxu1 %v7028_v0 }
 0xc27   :  { %6310 = vmatpush3.bf16.msra.mxu0 %v8112_v15 }
 0xc28   :  { %6311 = vmatprep.subr.bf16.mxu0 %v7028_v0 }
 0xc29   :  { %6250 = vmatpush3.bf16.msra.mxu1 %v6726_v19 }
 0xc2a   :  { %6251 = vmatprep.subr.bf16.mxu1 %v7028_v0 }
 0xc2b   :  { %6312 = vmatpush3.bf16.msra.mxu0 %v8116_v59 }
 0xc2c   :  { %6337 = vmatprep.subr.bf16.mxu0 %v7028_v0 }
 0xc2d   :  { %6252 = vmatpush3.bf16.msra.mxu1 %v6727_v62 }
 0xc2e   :  { %6277 = vmatprep.subr.bf16.mxu1 %v7028_v0 }
 0xcae   :  { %v3301_v11 = vpop.f32.mrf.mxu1  ;;  %v3426_v46 = vpop.f32.mrf.mxu0 }
 0xcaf   :  { %v8202_v47 = vadd.f32 %v3301_v11, %v8129_v14 }
 0xcb0   :  { %v6175_v3 = vpop.f32.mrf.mxu1  ;;  %v6235_v7 = vpop.f32.mrf.mxu0 }
 0xcb1   :  { %v8287_v3 = vld [vmem:[#allocation10 + $0x38] sm:$0xff]   ;;  %v8297_v7 = vld [vmem:[#allocation10 + $0x30] sm:$0xff]  }
 0xcb2   :  { %v3304_v57 = vpop.f32.mrf.mxu1  ;;  %v3429_v51 = vpop.f32.mrf.mxu0 }
 0xcb3   :  { %v8303_v57 = vld [vmem:[#allocation10 + $0x28] sm:$0xff]  }
 0xcb4   :  { %v6176_v61 = vpop.f32.mrf.mxu1  ;;  %v6236_v10 = vpop.f32.mrf.mxu0  ;;  %v6873_v51 = vld [vmem:[#allocation11 + $0x28] sm:$0xff]  }
 0xcb5   :  { %v8309_v10 = vld [vmem:[#allocation10 + $0x20] sm:$0xff]  }
 0xcce   :  { %v3386_v24 = vpop.f32.mrf.mxu1  ;;  %v3577_v26 = vpop.f32.mrf.mxu0 }
 0xccf   :  { %v3387_v32 = vadd.f32 %v8207_v54, %v3386_v24  ;;  %v6875_v24 = vld [vmem:[#allocation11 + $0x20] sm:$0xff]  }
 0xcd0   :  { %v6215_v34 = vpop.f32.mrf.mxu1  ;;  %v6275_v35 = vpop.f32.mrf.mxu0 }
 0xcd1   :  { %v3432_v30 = vadd.f32 %v3426_v46, %v3387_v32  ;;  %v8319_v32 = vld [vmem:[#allocation10 + $0x10] sm:$0xff]   ;;  %v8324_v35 = vld [vmem:[#allocation10 + $0x8] sm:$0xff]  }
 0xcd2   :  { %v3389_v14 = vpop.f32.mrf.mxu1  ;;  %v3580_v44 = vpop.f32.mrf.mxu0  ;;  %v6879_v34 = vld [vmem:[#allocation11 + $0x10] sm:$0xff]  }
 0xcd3   :  { %6802 = vtanh.f32 %v3432_v30  ;;  %v6881_v30 = vld [vmem:[#allocation11 + $0x8] sm:$0xff]   ;;  %v8329_v44 = vld [vmem:[#allocation10] sm:$0xff]  }
 0xcd4   :  { %v6216_v45 = vpop.f32.mrf.mxu1  ;;  %v6276_v48 = vpop.f32.mrf.mxu0 }
 0xcd5   :  { %v6883_v45 = vld [vmem:[#allocation11] sm:$0xff]  }
 0xce0   :  { %v6803_v49 = vpop.eup %6802 }
 0xce1   :  { %v3434_v50 = vpack.c.bf16 %v6803_v49, %v6803_v49  ;;  %v6742_v49 = vld [vmem:[#allocation3 + $0x348] sm:$0xff]  }
 0xce3   :  { %6254 = vmatmul.mubr.bf16.vlgmr.msra.gmra.mxu1 %v3434_v50  ;;  %6314 = vmatmul.mubr.bf16.vlgmr.msra.gmra.mxu0 %v3434_v50  ;;  %v6743_v50 = vld [vmem:[#allocation3 + $0x340] sm:$0xff]  }
 0xce4   :  { %6278 = vmatpush3.bf16.msra.mxu1 %v7869_v20  ;;  %6338 = vmatpush3.bf16.msra.mxu0 %v8211_v5  ;;  %v3583_v20 = vadd.f32 %v3577_v26, %v7192_v33  ;;  %v8314_v26 = vld [vmem:[#allocation10 + $0x18] sm:$0xff]  }
 0xce5   :  { %6279 = vmatprep.subr.bf16.mxu1 %v7028_v0  ;;  %6339 = vmatprep.subr.bf16.mxu0 %v7028_v0 }
 0xce6   :  { %6293 = vmatprep.mubr.msk.bf16.mxu1 %vm7029_vm0, %v7028_v0  ;;  %6353 = vmatprep.mubr.msk.bf16.mxu0 %vm7029_vm0, %v7028_v0  ;;  %6804 = vtanh.f32 %v3583_v20 }
 0xce8   :  { %6280 = vmatpush3.bf16.msra.mxu1 %v7879_v22  ;;  %6340 = vmatpush3.bf16.msra.mxu0 %v8221_v60 }
 0xce9   :  { %6281 = vmatprep.subr.bf16.mxu1 %v7028_v0  ;;  %6341 = vmatprep.subr.bf16.mxu0 %v7028_v0 }
 0xcec   :  { %6282 = vmatpush3.bf16.msra.mxu1 %v7885_v37  ;;  %6342 = vmatpush3.bf16.msra.mxu0 %v7888_v38  ;;  %v6728_v37 = vld [vmem:[#allocation3 + $0x338] sm:$0xff]   ;;  %v6729_v38 = vld [vmem:[#allocation3 + $0x330] sm:$0xff]  }
 0xced   :  { %6283 = vmatprep.subr.bf16.mxu1 %v7028_v0  ;;  %6343 = vmatprep.subr.bf16.mxu0 %v7028_v0 }
 0xcf0   :  { %6284 = vmatpush3.bf16.msra.mxu1 %v7894_v39  ;;  %6344 = vmatpush3.bf16.msra.mxu0 %v7897_v56  ;;  %v6730_v39 = vld [vmem:[#allocation3 + $0x328] sm:$0xff]   ;;  %v6731_v56 = vld [vmem:[#allocation3 + $0x320] sm:$0xff]  }
 0xcf1   :  { %6285 = vmatprep.subr.bf16.mxu1 %v7028_v0  ;;  %6345 = vmatprep.subr.bf16.mxu0 %v7028_v0 }
 0xcf3   :  { %v6805_v33 = vpop.eup %6804 }
 0xcf4   :  { %6286 = vmatpush3.bf16.msra.mxu1 %v7902_v40  ;;  %6346 = vmatpush3.bf16.msra.mxu0 %v7905_v25  ;;  %v8249_v22 = vpack.c.bf16 %v6805_v33, %v6805_v33  ;;  %v6732_v40 = vld [vmem:[#allocation3 + $0x318] sm:$0xff]   ;;  %v6733_v25 = vld [vmem:[#allocation3 + $0x310] sm:$0xff]  }
 0xcf5   :  { %6287 = vmatprep.subr.bf16.mxu1 %v7028_v0  ;;  %6347 = vmatprep.subr.bf16.mxu0 %v7028_v0 }
 0xcf8   :  { %6288 = vmatpush3.bf16.msra.mxu1 %v7910_v41  ;;  %6348 = vmatpush3.bf16.msra.mxu0 %v7913_v17  ;;  %v6734_v41 = vld [vmem:[#allocation3 + $0x308] sm:$0xff]   ;;  %v6735_v17 = vld [vmem:[#allocation3 + $0x300] sm:$0xff]  }
 0xcf9   :  { %6289 = vmatprep.subr.bf16.mxu1 %v7028_v0  ;;  %6349 = vmatprep.subr.bf16.mxu0 %v7028_v0 }
 0xcfc   :  { %6290 = vmatpush3.bf16.msra.mxu1 %v7918_v18  ;;  %6350 = vmatpush3.bf16.msra.mxu0 %v7921_v63 }
 0xcfd   :  { %6291 = vmatprep.subr.bf16.mxu1 %v7028_v0  ;;  %6351 = vmatprep.subr.bf16.mxu0 %v7028_v0 }
 0xd00   :  { %6292 = vmatpush3.bf16.msra.mxu1 %v7926_v8  ;;  %6352 = vmatpush3.bf16.msra.mxu0 %v7929_v21 }
 0xd01   :  { %6317 = vmatprep.subr.bf16.mxu1 %v7028_v0  ;;  %6377 = vmatprep.subr.bf16.mxu0 %v7028_v0 }
 0xd03   :  { %6294 = vmatmul.mubr.bf16.vlgmr.msra.gmra.mxu1 %v8167_v4  ;;  %6354 = vmatmul.mubr.bf16.vlgmr.msra.gmra.mxu0 %v8249_v22 }
 0xd04   :  { %6378 = vmatpush3.bf16.msra.mxu0 %v8011_v2  ;;  %6333 = vmatprep.mubr.msk.bf16.mxu1 %vm7029_vm0, %v7028_v0 }
 0xd05   :  { %6379 = vmatprep.subr.bf16.mxu0 %v7028_v0  ;;  %6393 = vmatprep.mubr.msk.bf16.mxu0 %vm7029_vm0, %v7028_v0 }
 0xd06   :  { %6318 = vmatpush3.bf16.msra.mxu1 %v6728_v37 }
 0xd07   :  { %6319 = vmatprep.subr.bf16.mxu1 %v7028_v0 }
 0xd08   :  { %6380 = vmatpush3.bf16.msra.mxu0 %v8019_v6 }
 0xd09   :  { %6381 = vmatprep.subr.bf16.mxu0 %v7028_v0 }
 0xd0a   :  { %6320 = vmatpush3.bf16.msra.mxu1 %v6729_v38 }
 0xd0b   :  { %6321 = vmatprep.subr.bf16.mxu1 %v7028_v0 }
 0xd0c   :  { %6382 = vmatpush3.bf16.msra.mxu0 %v8023_v16 }
 0xd0d   :  { %6383 = vmatprep.subr.bf16.mxu0 %v7028_v0 }
 0xd0e   :  { %6322 = vmatpush3.bf16.msra.mxu1 %v6730_v39 }
 0xd0f   :  { %6323 = vmatprep.subr.bf16.mxu1 %v7028_v0 }
 0xd10   :  { %6384 = vmatpush3.bf16.msra.mxu0 %v8027_v9 }
 0xd11   :  { %6385 = vmatprep.subr.bf16.mxu0 %v7028_v0 }
 0xd12   :  { %6324 = vmatpush3.bf16.msra.mxu1 %v6731_v56 }
 0xd13   :  { %6325 = vmatprep.subr.bf16.mxu1 %v7028_v0 }
 0xd14   :  { %6386 = vmatpush3.bf16.msra.mxu0 %v8031_v52 }
 0xd15   :  { %6387 = vmatprep.subr.bf16.mxu0 %v7028_v0 }
 0xd16   :  { %6326 = vmatpush3.bf16.msra.mxu1 %v6732_v40 }
 0xd17   :  { %6327 = vmatprep.subr.bf16.mxu1 %v7028_v0 }
 0xd18   :  { %6388 = vmatpush3.bf16.msra.mxu0 %v8035_v53 }
 0xd19   :  { %6389 = vmatprep.subr.bf16.mxu0 %v7028_v0 }
 0xd1a   :  { %6328 = vmatpush3.bf16.msra.mxu1 %v6733_v25 }
 0xd1b   :  { %6329 = vmatprep.subr.bf16.mxu1 %v7028_v0 }
 0xd1c   :  { %6390 = vmatpush3.bf16.msra.mxu0 %v8112_v15 }
 0xd1d   :  { %6391 = vmatprep.subr.bf16.mxu0 %v7028_v0 }
 0xd1e   :  { %6330 = vmatpush3.bf16.msra.mxu1 %v6734_v41 }
 0xd1f   :  { %6331 = vmatprep.subr.bf16.mxu1 %v7028_v0 }
 0xd20   :  { %6392 = vmatpush3.bf16.msra.mxu0 %v8116_v59 }
 0xd21   :  { %6417 = vmatprep.subr.bf16.mxu0 %v7028_v0 }
 0xd22   :  { %6332 = vmatpush3.bf16.msra.mxu1 %v6735_v17 }
 0xd23   :  { %6357 = vmatprep.subr.bf16.mxu1 %v7028_v0 }
 0xda3   :  { %v3534_v18 = vpop.f32.mrf.mxu1  ;;  %v3659_v63 = vpop.f32.mrf.mxu0 }
 0xda4   :  { %v8284_v8 = vadd.f32 %v3534_v18, %v8202_v47 }
 0xda5   :  { %v6255_v21 = vpop.f32.mrf.mxu1  ;;  %v6315_v58 = vpop.f32.mrf.mxu0 }
 0xda7   :  { %v3537_v13 = vpop.f32.mrf.mxu1  ;;  %v3662_v12 = vpop.f32.mrf.mxu0 }
 0xda9   :  { %v6256_v36 = vpop.f32.mrf.mxu1  ;;  %v6316_v29 = vpop.f32.mrf.mxu0 }
 0xdc3   :  { %v3619_v4 = vpop.f32.mrf.mxu1  ;;  %v3810_v55 = vpop.f32.mrf.mxu0 }
 0xdc4   :  { %v3620_v27 = vadd.f32 %v8207_v54, %v3619_v4  ;;  %v3816_v61 = vadd.f32 %v3810_v55, %v7183_v28  ;;  %v6877_v28 = vld [vmem:[#allocation11 + $0x18] sm:$0xff]  }
 0xdc5   :  { %v6295_v42 = vpop.f32.mrf.mxu1  ;;  %v6355_v1 = vpop.f32.mrf.mxu0  ;;  %v6744_v55 = vld [vmem:[#allocation3 + $0x3b8] sm:$0xff]  }
 0xdc6   :  { %v3665_v23 = vadd.f32 %v3659_v63, %v3620_v27  ;;  %v6745_v27 = vld [vmem:[#allocation3 + $0x3b0] sm:$0xff]   ;;  %v6746_v42 = vld [vmem:[#allocation3 + $0x3a8] sm:$0xff]   ;;  %v6747_v1 = vld [vmem:[#allocation3 + $0x3a0] sm:$0xff]  }
 0xdc7   :  { %v3622_v43 = vpop.f32.mrf.mxu1  ;;  %v3813_v19 = vpop.f32.mrf.mxu0 }
 0xdc8   :  { %6806 = vtanh.f32 %v3665_v23  ;;  %v6748_v23 = vld [vmem:[#allocation3 + $0x398] sm:$0xff]   ;;  %v6749_v43 = vld [vmem:[#allocation3 + $0x390] sm:$0xff]   ;;  %v6750_v19 = vld [vmem:[#allocation3 + $0x388] sm:$0xff]  }
 0xdc9   :  { %v6296_v62 = vpop.f32.mrf.mxu1  ;;  %v6356_v11 = vpop.f32.mrf.mxu0  ;;  %6808 = vtanh.f32 %v3816_v61 }
 0xdca   :  { %v6751_v62 = vld [vmem:[#allocation3 + $0x380] sm:$0xff]  }
 0xdd5   :  { %v6807_v46 = vpop.eup %6806 }
 0xdd6   :  { %v3667_v47 = vpack.c.bf16 %v6807_v46, %v6807_v46  ;;  %v6809_v14 = vpop.eup %6808 }
 0xdd7   :  { %v8332_v48 = vpack.c.bf16 %v6809_v14, %v6809_v14 }
 0xdd8   :  { %6334 = vmatmul.mubr.bf16.vlgmr.msra.gmra.mxu1 %v3667_v47  ;;  %6394 = vmatmul.mubr.bf16.vlgmr.msra.gmra.mxu0 %v3667_v47 }
 0xdd9   :  { %6358 = vmatpush3.bf16.msra.mxu1 %v8287_v3  ;;  %6418 = vmatpush3.bf16.msra.mxu0 %v8211_v5 }
 0xdda   :  { %6359 = vmatprep.subr.bf16.mxu1 %v7028_v0  ;;  %6419 = vmatprep.subr.bf16.mxu0 %v7028_v0 }
 0xddb   :  { %6373 = vmatprep.mubr.msk.bf16.mxu1 %vm7029_vm0, %v7028_v0  ;;  %6433 = vmatprep.mubr.msk.bf16.mxu0 %vm7029_vm0, %v7028_v0 }
 0xddd   :  { %6360 = vmatpush3.bf16.msra.mxu1 %v8297_v7  ;;  %6420 = vmatpush3.bf16.msra.mxu0 %v8221_v60 }
 0xdde   :  { %6361 = vmatprep.subr.bf16.mxu1 %v7028_v0  ;;  %6421 = vmatprep.subr.bf16.mxu0 %v7028_v0 }
 0xde1   :  { %6362 = vmatpush3.bf16.msra.mxu1 %v8303_v57  ;;  %6422 = vmatpush3.bf16.msra.mxu0 %v6873_v51 }
 0xde2   :  { %6363 = vmatprep.subr.bf16.mxu1 %v7028_v0  ;;  %6423 = vmatprep.subr.bf16.mxu0 %v7028_v0 }
 0xde5   :  { %6364 = vmatpush3.bf16.msra.mxu1 %v8309_v10  ;;  %6424 = vmatpush3.bf16.msra.mxu0 %v6875_v24 }
 0xde6   :  { %6365 = vmatprep.subr.bf16.mxu1 %v7028_v0  ;;  %6425 = vmatprep.subr.bf16.mxu0 %v7028_v0 }
 0xde9   :  { %6366 = vmatpush3.bf16.msra.mxu1 %v8314_v26  ;;  %6426 = vmatpush3.bf16.msra.mxu0 %v6877_v28 }
 0xdea   :  { %6367 = vmatprep.subr.bf16.mxu1 %v7028_v0  ;;  %6427 = vmatprep.subr.bf16.mxu0 %v7028_v0 }
 0xded   :  { %6368 = vmatpush3.bf16.msra.mxu1 %v8319_v32  ;;  %6428 = vmatpush3.bf16.msra.mxu0 %v6879_v34 }
 0xdee   :  { %6369 = vmatprep.subr.bf16.mxu1 %v7028_v0  ;;  %6429 = vmatprep.subr.bf16.mxu0 %v7028_v0 }
 0xdf1   :  { %6370 = vmatpush3.bf16.msra.mxu1 %v8324_v35  ;;  %6430 = vmatpush3.bf16.msra.mxu0 %v6881_v30 }
 0xdf2   :  { %6371 = vmatprep.subr.bf16.mxu1 %v7028_v0  ;;  %6431 = vmatprep.subr.bf16.mxu0 %v7028_v0 }
 0xdf5   :  { %6372 = vmatpush3.bf16.msra.mxu1 %v8329_v44  ;;  %6432 = vmatpush3.bf16.msra.mxu0 %v6883_v45 }
 0xdf6   :  { %6397 = vmatprep.subr.bf16.mxu1 %v7028_v0  ;;  %6457 = vmatprep.subr.bf16.mxu0 %v7028_v0 }
 0xdf8   :  { %6374 = vmatmul.mubr.bf16.vlgmr.msra.gmra.mxu1 %v8249_v22  ;;  %6434 = vmatmul.mubr.bf16.vlgmr.msra.gmra.mxu0 %v8332_v48 }
 0xdf9   :  { %6458 = vmatpush3.bf16.msra.mxu0 %v8011_v2  ;;  %6413 = vmatprep.mubr.msk.bf16.mxu1 %vm7029_vm0, %v7028_v0  ;;  %v6736_v2 = vld [vmem:[#allocation3 + $0x378] sm:$0xff]  }
 0xdfa   :  { %6459 = vmatprep.subr.bf16.mxu0 %v7028_v0  ;;  %6473 = vmatprep.mubr.msk.bf16.mxu0 %vm7029_vm0, %v7028_v0 }
 0xdfb   :  { %6398 = vmatpush3.bf16.msra.mxu1 %v6736_v2 }
 0xdfc   :  { %6399 = vmatprep.subr.bf16.mxu1 %v7028_v0 }
 0xdfd   :  { %6460 = vmatpush3.bf16.msra.mxu0 %v8019_v6  ;;  %v6737_v6 = vld [vmem:[#allocation3 + $0x370] sm:$0xff]  }
 0xdfe   :  { %6461 = vmatprep.subr.bf16.mxu0 %v7028_v0 }
 0xdff   :  { %6400 = vmatpush3.bf16.msra.mxu1 %v6737_v6  ;;  %v6884_v6 = vld [vmem:[#allocation11 + $0x78] sm:$0xff]  }
 0xe00   :  { %6401 = vmatprep.subr.bf16.mxu1 %v7028_v0 }
 0xe01   :  { %6462 = vmatpush3.bf16.msra.mxu0 %v8023_v16  ;;  %v6738_v16 = vld [vmem:[#allocation3 + $0x368] sm:$0xff]  }
 0xe02   :  { %6463 = vmatprep.subr.bf16.mxu0 %v7028_v0 }
 0xe03   :  { %6402 = vmatpush3.bf16.msra.mxu1 %v6738_v16  ;;  %v6885_v16 = vld [vmem:[#allocation11 + $0x70] sm:$0xff]  }
 0xe04   :  { %6403 = vmatprep.subr.bf16.mxu1 %v7028_v0 }
 0xe05   :  { %6464 = vmatpush3.bf16.msra.mxu0 %v8027_v9  ;;  %v6739_v9 = vld [vmem:[#allocation3 + $0x360] sm:$0xff]  }
 0xe06   :  { %6465 = vmatprep.subr.bf16.mxu0 %v7028_v0 }
 0xe07   :  { %6404 = vmatpush3.bf16.msra.mxu1 %v6739_v9  ;;  %v6886_v9 = vld [vmem:[#allocation11 + $0x68] sm:$0xff]  }
 0xe08   :  { %6405 = vmatprep.subr.bf16.mxu1 %v7028_v0 }
 0xe09   :  { %6466 = vmatpush3.bf16.msra.mxu0 %v8031_v52  ;;  %v6740_v52 = vld [vmem:[#allocation3 + $0x358] sm:$0xff]  }
 0xe0a   :  { %6467 = vmatprep.subr.bf16.mxu0 %v7028_v0 }
 0xe0b   :  { %6406 = vmatpush3.bf16.msra.mxu1 %v6740_v52  ;;  %v6887_v52 = vld [vmem:[#allocation11 + $0x60] sm:$0xff]  }
 0xe0c   :  { %6407 = vmatprep.subr.bf16.mxu1 %v7028_v0 }
 0xe0d   :  { %6468 = vmatpush3.bf16.msra.mxu0 %v8035_v53  ;;  %v6741_v53 = vld [vmem:[#allocation3 + $0x350] sm:$0xff]  }
 0xe0e   :  { %6469 = vmatprep.subr.bf16.mxu0 %v7028_v0 }
 0xe0f   :  { %6408 = vmatpush3.bf16.msra.mxu1 %v6741_v53  ;;  %v6888_v53 = vld [vmem:[#allocation11 + $0x58] sm:$0xff]  }
 0xe10   :  { %6409 = vmatprep.subr.bf16.mxu1 %v7028_v0 }
 0xe11   :  { %6470 = vmatpush3.bf16.msra.mxu0 %v8112_v15 }
 0xe12   :  { %6471 = vmatprep.subr.bf16.mxu0 %v7028_v0 }
 0xe13   :  { %6410 = vmatpush3.bf16.msra.mxu1 %v6742_v49  ;;  %v6889_v49 = vld [vmem:[#allocation11 + $0x50] sm:$0xff]  }
 0xe14   :  { %6411 = vmatprep.subr.bf16.mxu1 %v7028_v0 }
 0xe15   :  { %6472 = vmatpush3.bf16.msra.mxu0 %v8116_v59 }
 0xe16   :  { %6497 = vmatprep.subr.bf16.mxu0 %v7028_v0 }
 0xe17   :  { %6412 = vmatpush3.bf16.msra.mxu1 %v6743_v50  ;;  %v6752_v50 = vld [vmem:[#allocation3 + $0x3f8] sm:$0xff]  }
 0xe18   :  { %6437 = vmatprep.subr.bf16.mxu1 %v7028_v0 }
 0xe98   :  { %v3767_v5 = vpop.f32.mrf.mxu1  ;;  %v3892_v60 = vpop.f32.mrf.mxu0 }
 0xe99   :  { %v8367_v20 = vadd.f32 %v3767_v5, %v8284_v8  ;;  %v6753_v5 = vld [vmem:[#allocation3 + $0x3f0] sm:$0xff]  }
 0xe9a   :  { %v6335_v33 = vpop.f32.mrf.mxu1  ;;  %v6395_v22 = vpop.f32.mrf.mxu0 }
 0xe9b   :  { %v6758_v33 = vld [vmem:[#allocation3 + $0x3c8] sm:$0xff]   ;;  %v6759_v22 = vld [vmem:[#allocation3 + $0x3c0] sm:$0xff]  }
 0xe9c   :  { %v3770_v37 = vpop.f32.mrf.mxu1  ;;  %v3895_v38 = vpop.f32.mrf.mxu0 }
 0xe9e   :  { %v6336_v39 = vpop.f32.mrf.mxu1  ;;  %v6396_v56 = vpop.f32.mrf.mxu0 }
 0xeb8   :  { %v3852_v40 = vpop.f32.mrf.mxu1  ;;  %v4043_v25 = vpop.f32.mrf.mxu0 }
 0xeb9   :  { %v3853_v41 = vadd.f32 %v8207_v54, %v3852_v40  ;;  %v4049_v29 = vadd.f32 %v4043_v25, %v7189_v31 }
 0xeba   :  { %v6375_v17 = vpop.f32.mrf.mxu1  ;;  %v6435_v18 = vpop.f32.mrf.mxu0 }
 0xebb   :  { %v3898_v63 = vadd.f32 %v3892_v60, %v3853_v41  ;;  %v6754_v60 = vld [vmem:[#allocation3 + $0x3e8] sm:$0xff]  }
 0xebc   :  { %v3855_v21 = vpop.f32.mrf.mxu1  ;;  %v4046_v58 = vpop.f32.mrf.mxu0 }
 0xebd   :  { %6810 = vtanh.f32 %v3898_v63 }
 0xebe   :  { %v6376_v13 = vpop.f32.mrf.mxu1  ;;  %v6436_v12 = vpop.f32.mrf.mxu0  ;;  %6812 = vtanh.f32 %v4049_v29 }
 0xebf   :  { %v4651_v12 = vld [vmem:[%s8459_s6] ss:$0 sm:$0xff] }
 0xeca   :  { %v6811_v8 = vpop.eup %6810 }
 0xecb   :  { %v3900_v36 = vpack.c.bf16 %v6811_v8, %v6811_v8  ;;  %v6813_v31 = vpop.eup %6812 }
 0xecc   :  { %v4240_v4 = vpack.c.bf16 %v6813_v31, %v6813_v31 }
 0xecd   :  { %6414 = vmatmul.mubr.bf16.vlgmr.msra.gmra.mxu1 %v3900_v36  ;;  %6474 = vmatmul.mubr.bf16.vlgmr.msra.gmra.mxu0 %v3900_v36 }
 0xece   :  { %6438 = vmatpush3.bf16.msra.mxu1 %v8287_v3  ;;  %6498 = vmatpush3.bf16.msra.mxu0 %v8287_v3 }
 0xecf   :  { %6439 = vmatprep.subr.bf16.mxu1 %v7028_v0  ;;  %6499 = vmatprep.subr.bf16.mxu0 %v7028_v0 }
 0xed0   :  { %6453 = vmatprep.mubr.msk.bf16.mxu1 %vm7029_vm0, %v7028_v0  ;;  %6513 = vmatprep.mubr.msk.bf16.mxu0 %vm7029_vm0, %v7028_v0 }
 0xed2   :  { %6440 = vmatpush3.bf16.msra.mxu1 %v8297_v7  ;;  %6500 = vmatpush3.bf16.msra.mxu0 %v8297_v7 }
 0xed3   :  { %6441 = vmatprep.subr.bf16.mxu1 %v7028_v0  ;;  %6501 = vmatprep.subr.bf16.mxu0 %v7028_v0 }
 0xed6   :  { %6442 = vmatpush3.bf16.msra.mxu1 %v8303_v57  ;;  %6502 = vmatpush3.bf16.msra.mxu0 %v8303_v57 }
 0xed7   :  { %6443 = vmatprep.subr.bf16.mxu1 %v7028_v0  ;;  %6503 = vmatprep.subr.bf16.mxu0 %v7028_v0 }
 0xeda   :  { %6444 = vmatpush3.bf16.msra.mxu1 %v8309_v10  ;;  %6504 = vmatpush3.bf16.msra.mxu0 %v8309_v10 }
 0xedb   :  { %6445 = vmatprep.subr.bf16.mxu1 %v7028_v0  ;;  %6505 = vmatprep.subr.bf16.mxu0 %v7028_v0 }
 0xede   :  { %6446 = vmatpush3.bf16.msra.mxu1 %v8314_v26  ;;  %6506 = vmatpush3.bf16.msra.mxu0 %v8314_v26 }
 0xedf   :  { %6447 = vmatprep.subr.bf16.mxu1 %v7028_v0  ;;  %6507 = vmatprep.subr.bf16.mxu0 %v7028_v0 }
 0xee2   :  { %6448 = vmatpush3.bf16.msra.mxu1 %v8319_v32  ;;  %6508 = vmatpush3.bf16.msra.mxu0 %v8319_v32 }
 0xee3   :  { %6449 = vmatprep.subr.bf16.mxu1 %v7028_v0  ;;  %6509 = vmatprep.subr.bf16.mxu0 %v7028_v0 }
 0xee6   :  { %6450 = vmatpush3.bf16.msra.mxu1 %v8324_v35  ;;  %6510 = vmatpush3.bf16.msra.mxu0 %v8324_v35 }
 0xee7   :  { %6451 = vmatprep.subr.bf16.mxu1 %v7028_v0  ;;  %6511 = vmatprep.subr.bf16.mxu0 %v7028_v0 }
 0xeea   :  { %6452 = vmatpush3.bf16.msra.mxu1 %v8329_v44  ;;  %6512 = vmatpush3.bf16.msra.mxu0 %v8329_v44 }
 0xeeb   :  { %6477 = vmatprep.subr.bf16.mxu1 %v7028_v0  ;;  %6537 = vmatprep.subr.bf16.mxu0 %v7028_v0 }
 0xeed   :  { %6454 = vmatmul.mubr.bf16.vlgmr.msra.gmra.mxu1 %v8332_v48  ;;  %6514 = vmatmul.mubr.bf16.vlgmr.msra.gmra.mxu0 %v4240_v4 }
 0xeee   :  { %6493 = vmatprep.mubr.msk.bf16.mxu1 %vm7029_vm0, %v7028_v0  ;;  %6553 = vmatprep.mubr.msk.bf16.mxu0 %vm7029_vm0, %v7028_v0 }
 0xeef   :  { %6478 = vmatpush3.bf16.msra.mxu1 %v6744_v55  ;;  %6538 = vmatpush3.bf16.msra.mxu0 %v6752_v50 }
 0xef0   :  { %6479 = vmatprep.subr.bf16.mxu1 %v7028_v0  ;;  %6539 = vmatprep.subr.bf16.mxu0 %v7028_v0 }
 0xef3   :  { %6480 = vmatpush3.bf16.msra.mxu1 %v6745_v27  ;;  %6540 = vmatpush3.bf16.msra.mxu0 %v6753_v5 }
 0xef4   :  { %6481 = vmatprep.subr.bf16.mxu1 %v7028_v0  ;;  %6541 = vmatprep.subr.bf16.mxu0 %v7028_v0 }
 0xef7   :  { %6482 = vmatpush3.bf16.msra.mxu1 %v6746_v42  ;;  %6542 = vmatpush3.bf16.msra.mxu0 %v6754_v60 }
 0xef8   :  { %6483 = vmatprep.subr.bf16.mxu1 %v7028_v0  ;;  %6543 = vmatprep.subr.bf16.mxu0 %v7028_v0 }
 0xefb   :  { %6484 = vmatpush3.bf16.msra.mxu1 %v6747_v1 }
 0xefc   :  { %6485 = vmatprep.subr.bf16.mxu1 %v7028_v0 }
 0xeff   :  { %6486 = vmatpush3.bf16.msra.mxu1 %v6748_v23 }
 0xf00   :  { %6487 = vmatprep.subr.bf16.mxu1 %v7028_v0 }
 0xf03   :  { %6488 = vmatpush3.bf16.msra.mxu1 %v6749_v43 }
 0xf04   :  { %6489 = vmatprep.subr.bf16.mxu1 %v7028_v0 }
 0xf07   :  { %6490 = vmatpush3.bf16.msra.mxu1 %v6750_v19 }
 0xf08   :  { %6491 = vmatprep.subr.bf16.mxu1 %v7028_v0 }
 0xf0b   :  { %6492 = vmatpush3.bf16.msra.mxu1 %v6751_v62 }
 0xf0c   :  { %6517 = vmatprep.subr.bf16.mxu1 %v7028_v0 }
 0xf8d   :  { %v4000_v11 = vpop.f32.mrf.mxu1  ;;  %v4125_v46 = vpop.f32.mrf.mxu0 }
 0xf8e   :  { %v8421_v47 = vadd.f32 %v4000_v11, %v8367_v20  ;;  %v6755_v20 = vld [vmem:[#allocation3 + $0x3e0] sm:$0xff]  }
 0xf8f   :  { %v6415_v3 = vpop.f32.mrf.mxu1  ;;  %v6475_v7 = vpop.f32.mrf.mxu0  ;;  %6544 = vmatpush3.bf16.msra.mxu0 %v6755_v20 }
 0xf90   :  { %6545 = vmatprep.subr.bf16.mxu0 %v7028_v0 }
 0xf91   :  { %v4003_v57 = vpop.f32.mrf.mxu1  ;;  %v4128_v51 = vpop.f32.mrf.mxu0 }
 0xf93   :  { %v6416_v61 = vpop.f32.mrf.mxu1  ;;  %v6476_v10 = vpop.f32.mrf.mxu0 }
 0xfad   :  { %v4085_v24 = vpop.f32.mrf.mxu1  ;;  %v8423_v26 = vpop.f32.mrf.mxu0 }
 0xfae   :  { %v4086_v28 = vadd.f32 %v8207_v54, %v4085_v24  ;;  %v4276_v25 = vadd.f32 %v8207_v54, %v8423_v26 }
 0xfaf   :  { %v6455_v32 = vpop.f32.mrf.mxu1  ;;  %v6515_v34 = vpop.f32.mrf.mxu0 }
 0xfb0   :  { %v4131_v35 = vadd.f32 %v4125_v46, %v4086_v28 }
 0xfb1   :  { %v4088_v30 = vpop.f32.mrf.mxu1  ;;  %v4278_v14 = vpop.f32.mrf.mxu0 }
 0xfb2   :  { %6814 = vtanh.f32 %v4131_v35 }
 0xfb3   :  { %v6456_v44 = vpop.f32.mrf.mxu1  ;;  %v6516_v45 = vpop.f32.mrf.mxu0 }
 0xfbf   :  { %v6815_v48 = vpop.eup %6814 }
 0xfc0   :  { %v4133_v2 = vpack.c.bf16 %v6815_v48, %v6815_v48 }
 0xfc2   :  { %6494 = vmatmul.mubr.bf16.vlgmr.msra.gmra.mxu1 %v4133_v2 }
 0xfc3   :  { %6518 = vmatpush3.bf16.msra.mxu1 %v6884_v6  ;;  %6533 = vmatprep.mubr.msk.bf16.mxu1 %vm7029_vm0, %v7028_v0 }
 0xfc4   :  { %6519 = vmatprep.subr.bf16.mxu1 %v7028_v0 }
 0xfc7   :  { %6520 = vmatpush3.bf16.msra.mxu1 %v6885_v16 }
 0xfc8   :  { %6521 = vmatprep.subr.bf16.mxu1 %v7028_v0 }
 0xfcb   :  { %6522 = vmatpush3.bf16.msra.mxu1 %v6886_v9 }
 0xfcc   :  { %6523 = vmatprep.subr.bf16.mxu1 %v7028_v0 }
 0xfcf   :  { %6524 = vmatpush3.bf16.msra.mxu1 %v6887_v52 }
 0xfd0   :  { %6525 = vmatprep.subr.bf16.mxu1 %v7028_v0 }
 0xfd3   :  { %6526 = vmatpush3.bf16.msra.mxu1 %v6888_v53 }
 0xfd4   :  { %6527 = vmatprep.subr.bf16.mxu1 %v7028_v0 }
 0xfd7   :  { %6528 = vmatpush3.bf16.msra.mxu1 %v6889_v49 }
 0xfd8   :  { %6529 = vmatprep.subr.bf16.mxu1 %v7028_v0 }
 0xfdb   :  { %6530 = vmatpush3.bf16.msra.mxu1 %v8112_v15  ;;  %v6756_v15 = vld [vmem:[#allocation3 + $0x3d8] sm:$0xff]  }
 0xfdc   :  { %6531 = vmatprep.subr.bf16.mxu1 %v7028_v0  ;;  %6546 = vmatpush3.bf16.msra.mxu0 %v6756_v15 }
 0xfdd   :  { %6547 = vmatprep.subr.bf16.mxu0 %v7028_v0 }
 0xfdf   :  { %6532 = vmatpush3.bf16.msra.mxu1 %v8116_v59  ;;  %v6757_v59 = vld [vmem:[#allocation3 + $0x3d0] sm:$0xff]  }
 0xfe0   :  { %6548 = vmatpush3.bf16.msra.mxu0 %v6757_v59 }
 0xfe1   :  { %6549 = vmatprep.subr.bf16.mxu0 %v7028_v0 }
 0xfe2   :  { %6534 = vmatmul.mubr.bf16.vlgmr.msra.gmra.mxu1 %v4133_v2 }
 0xfe4   :  { %6550 = vmatpush3.bf16.msra.mxu0 %v6758_v33 }
 0xfe5   :  { %6551 = vmatprep.subr.bf16.mxu0 %v7028_v0 }
 0xfe8   :  { %6552 = vmatpush3.bf16.msra.mxu0 %v6759_v22 }
0x1082   :  { %v4233_v37 = vpop.f32.mrf.mxu1 }
0x1083   :  { %v4239_v38 = vadd.f32 %v4233_v37, %v8421_v47 }
0x1084   :  { %v6495_v39 = vpop.f32.mrf.mxu1 }
0x1086   :  { %v4236_v56 = vpop.f32.mrf.mxu1 }
0x1088   :  { %v6496_v40 = vpop.f32.mrf.mxu1 }
0x10a2   :  { %v4315_v41 = vpop.f32.mrf.mxu1 }
0x10a3   :  { %v4321_v17 = vadd.f32 %v4315_v41, %v4276_v25 }
0x10a4   :  { %v6535_v18 = vpop.f32.mrf.mxu1 }
0x10a5   :  { %6816 = vtanh.f32 %v4321_v17 }
0x10a6   :  { %v4318_v63 = vpop.f32.mrf.mxu1 }
0x10a8   :  { %v6536_v21 = vpop.f32.mrf.mxu1 }
0x10b2   :  { %v6817_v58 = vpop.eup %6816 }
0x10b3   :  { %v4323_v13 = vpack.c.bf16 %v6817_v58, %v6817_v58 }
0x10b5   :  { %6554 = vmatmul.mubr.bf16.vlgmr.msra.gmra.mxu0 %v4323_v13 }
0x1175   :  { %v4423_v0 = vpop.f32.mrf.mxu0 }
0x1176   :  { %v4429_v8 = vadd.f32 %v4423_v0, %v4239_v38 }
0x1177   :  { %v6555_v36 = vpop.f32.mrf.mxu0 }
0x1178   :  { %v4437_v29 = vadd.f32 %v4651_v12, %v4429_v8 }
0x1179   :  { %v4426_v54 = vpop.f32.mrf.mxu0 }
0x117a   :  { %4438 = vst [vmem:[#allocation13] sm:$0xff] %v4437_v29 }
0x117b   :  { %v6556_v31 = vpop.f32.mrf.mxu0 }
0x117c   :  { %7001 = shalt.err (!%p6998_p1)
}
0x117d   :  { %4448 = dma.vmem_to_hbm [thread:$0]  %s4446_s14, 128, %s8460_s7, [#allocation7]  }
0x117e   :  { %7018 = dma.done.wait [#allocation7], 128  }
0x117f   :  { %7019 = vsyncadd [#allocation7], 4294967168 }
0x1180   :  { %4452 = vsyncpa [#allocation6], 1 }
0x1181   :  { %4453 = vsyncpa [#allocation9], 1 }
0x1182   :  { %4454 = vsyncpa [#allocation12], 1 }
0x1183   :  { %4455 = vsyncpa [#allocation7], 1 }
0x1184   :  { %4456 = vsyncmov [#allocation4] }
0x1187   :  { %s4457_s6 = vpop.sfrf %4456 }
0x1188   :  { %p4652_p2 = scmp.ne.s32.totalorder %s4457_s6, 0 }
0x118a   :  { %4461 = shalt.err (%p4652_p2)  }

</bundles_post_ra>
